<compile_context>
chip_gen: v7x
topology: tpu7x:2x2x1
jax: 0.10.0
libtpu: 0.0.40
codegen_flags: <defaults>
</compile_context>

<pallas_src>
import functools

import jax
import jax.numpy as jnp
from jax.experimental import pallas as pl
from jax.experimental.pallas import tpu as pltpu


def _default_vmem_limit():
    """~Half of physical VMEM: 32 MiB on v7x (64 MiB/TC), 64 MiB on v5e/v6e (128 MiB)."""
    try:
        cap = int(pltpu.get_tpu_info().vmem_capacity_bytes)
        return max(32 * 1024 * 1024, min(cap // 2, 100 * 1024 * 1024))
    except Exception:
        return 32 * 1024 * 1024


_VMEM_LIMIT = _default_vmem_limit()


def _round_up(x, m):
    return ((x + m - 1) // m) * m


def _choose_tiles(n_pad):
    """Pick (tile_m, tile_k) for a padded node count (multiple of 512)."""
    # Keep >= 2 row tiles so the "parallel" row axis can be megacore-sharded (v7x).
    tile_m = 256 if n_pad == 512 else 512
    tile_k = 512
    for cand in (2048, 1536, 1024):
        if n_pad % cand == 0:
            tile_k = cand
            break
    return tile_m, tile_k


# --------------------------------------------------------------------------- #
# Kernel 1: feature transform  H0 = X @ W0  (bf16 in, f32 acc, bf16 out)      #
# --------------------------------------------------------------------------- #
def _feature_transform_kernel(x_ref, w_ref, h_ref):
    h_ref[...] = jnp.dot(
        x_ref[...], w_ref[...], preferred_element_type=jnp.float32
    ).astype(h_ref.dtype)


def feature_transform(x_bf16, w_bf16, *, tile_m):
    n, f_in = x_bf16.shape
    f_out = w_bf16.shape[1]
    assert n % tile_m == 0
    return pl.pallas_call(
        _feature_transform_kernel,
        out_shape=jax.ShapeDtypeStruct((n, f_out), jnp.bfloat16),
        grid_spec=pltpu.PrefetchScalarGridSpec(
            num_scalar_prefetch=0,
            grid=(n // tile_m,),
            in_specs=[
                pl.BlockSpec((tile_m, f_in), lambda i: (i, 0)),   # X row tile (bf16)
                pl.BlockSpec((f_in, f_out), lambda i: (0, 0)),    # full W (small, bf16)
            ],
            out_specs=pl.BlockSpec((tile_m, f_out), lambda i: (i, 0)),
        ),
        compiler_params=pltpu.CompilerParams(
            dimension_semantics=("parallel",),
            vmem_limit_bytes=_VMEM_LIMIT,
        ),
    )(x_bf16, w_bf16)


# --------------------------------------------------------------------------- #
# Kernel 2: fused aggregation + next-layer transform                          #
#   H_next = relu(A @ H + b) @ W_next   (K-tiled, f32 acc, bf16 out)          #
# --------------------------------------------------------------------------- #
def _aggregate_fused_kernel(a_ref, h_ref, b_ref, w_next_ref, hnext_ref, acc_ref):
    k = pl.program_id(1)

    @pl.when(k == 0)
    def _():
        acc_ref[...] = jnp.zeros_like(acc_ref)

    # adjacency tile (bf16, 0/1 exact) @ H K-tile (bf16) -> f32 accumulate
    acc_ref[...] += jnp.dot(
        a_ref[...], h_ref[...], preferred_element_type=jnp.float32
    )

    @pl.when(k == pl.num_programs(1) - 1)
    def _():
        act = jnp.maximum(acc_ref[...] + b_ref[...], 0.0)          # bias + ReLU in f32
        hnext_ref[...] = jnp.dot(                                   # fused X@W_next
            act.astype(jnp.bfloat16), w_next_ref[...],
            preferred_element_type=jnp.float32,
        ).astype(hnext_ref.dtype)


def aggregate_fuse_next(adj_bf16, h_bf16, b, w_next_bf16, *, tile_m, tile_k):
    n = adj_bf16.shape[0]
    f_out = h_bf16.shape[1]
    f_next = w_next_bf16.shape[1]
    assert adj_bf16.shape == (n, n) and n % tile_m == 0 and n % tile_k == 0
    return pl.pallas_call(
        _aggregate_fused_kernel,
        out_shape=jax.ShapeDtypeStruct((n, f_next), jnp.bfloat16),
        grid_spec=pltpu.PrefetchScalarGridSpec(
            num_scalar_prefetch=0,
            grid=(n // tile_m, n // tile_k),                        # rows, reduction last
            in_specs=[
                pl.BlockSpec((tile_m, tile_k), lambda i, k: (i, k)),    # adjacency tile
                pl.BlockSpec((tile_k, f_out), lambda i, k: (k, 0)),     # H K-tile (bf16)
                pl.BlockSpec((1, f_out), lambda i, k: (0, 0)),          # bias
                pl.BlockSpec((f_out, f_next), lambda i, k: (0, 0)),     # W_next (bf16)
            ],
            out_specs=pl.BlockSpec((tile_m, f_next), lambda i, k: (i, 0)),
            scratch_shapes=[pltpu.VMEM((tile_m, f_out), jnp.float32)],
        ),
        compiler_params=pltpu.CompilerParams(
            dimension_semantics=("parallel", "arbitrary"),
            vmem_limit_bytes=_VMEM_LIMIT,
        ),
    )(adj_bf16, h_bf16, b, w_next_bf16)


# --------------------------------------------------------------------------- #
# Kernel 3: final aggregation  out = A @ H + b  (f32 output, no ReLU)         #
# --------------------------------------------------------------------------- #
def _aggregate_final_kernel(a_ref, h_ref, b_ref, o_ref, acc_ref):
    k = pl.program_id(1)

    @pl.when(k == 0)
    def _():
        acc_ref[...] = jnp.zeros_like(acc_ref)

    acc_ref[...] += jnp.dot(
        a_ref[...], h_ref[...], preferred_element_type=jnp.float32
    )

    @pl.when(k == pl.num_programs(1) - 1)
    def _():
        o_ref[...] = (acc_ref[...] + b_ref[...]).astype(o_ref.dtype)


def aggregate_final(adj_bf16, h_bf16, b, *, tile_m, tile_k):
    n = adj_bf16.shape[0]
    f_out = h_bf16.shape[1]
    assert adj_bf16.shape == (n, n) and n % tile_m == 0 and n % tile_k == 0
    return pl.pallas_call(
        _aggregate_final_kernel,
        out_shape=jax.ShapeDtypeStruct((n, f_out), jnp.float32),
        grid_spec=pltpu.PrefetchScalarGridSpec(
            num_scalar_prefetch=0,
            grid=(n // tile_m, n // tile_k),
            in_specs=[
                pl.BlockSpec((tile_m, tile_k), lambda i, k: (i, k)),
                pl.BlockSpec((tile_k, f_out), lambda i, k: (k, 0)),
                pl.BlockSpec((1, f_out), lambda i, k: (0, 0)),
            ],
            out_specs=pl.BlockSpec((tile_m, f_out), lambda i, k: (i, 0)),
            scratch_shapes=[pltpu.VMEM((tile_m, f_out), jnp.float32)],
        ),
        compiler_params=pltpu.CompilerParams(
            dimension_semantics=("parallel", "arbitrary"),
            vmem_limit_bytes=_VMEM_LIMIT,
        ),
    )(adj_bf16, h_bf16, b)


# --------------------------------------------------------------------------- #
# GCN forward                                                                 #
# --------------------------------------------------------------------------- #
def gcn_forward(x, adj, params):
    """GCN.forward: conv -> relu -> dropout (identity, eval) per layer, then conv."""
    n = x.shape[0]
    n_pad = _round_up(n, 512)
    tile_m, tile_k = _choose_tiles(n_pad)

    if n_pad != n:
        # Zero padding: padded adjacency rows/cols are zero, so padded nodes never
        # contribute to real rows; padded output rows are sliced off below.
        x = jnp.pad(x, ((0, n_pad - n), (0, 0)))
        adj = jnp.pad(adj, ((0, n_pad - n), (0, n_pad - n)))

    # Pre-cast once in the wrapper: halves HBM traffic of the dominant streams and
    # removes per-grid-step VPU casts inside the kernels (0/1 adjacency -> exact).
    adj_bf16 = adj.astype(jnp.bfloat16)
    x_bf16 = x.astype(jnp.bfloat16)
    ws = [w.astype(jnp.bfloat16) for w, _ in params]
    bs = [b for _, b in params]                      # f32 (1, f_out)

    # H0 = X @ W0 (computed once).
    h = feature_transform(x_bf16, ws[0], tile_m=tile_m)

    # Layers 0..L-2: aggregation fused with the NEXT layer's feature transform.
    for i in range(len(params) - 1):
        h = aggregate_fuse_next(adj_bf16, h, bs[i], ws[i + 1],
                                tile_m=tile_m, tile_k=tile_k)
        # F.dropout(p, training=self.training): identity in eval mode.

    # Last layer: aggregation + bias only (no ReLU), f32 output.
    out = aggregate_final(adj_bf16, h, bs[-1], tile_m=tile_m, tile_k=tile_k)
    return out[:n]


# --------------------------------------------------------------------------- #
# Setup / references / test                                                   #
# --------------------------------------------------------------------------- #
def _make_params(key, in_channels, hidden_channels, out_channels, num_layers):
    dims = [in_channels] + [hidden_channels] * (num_layers - 1) + [out_channels]
    params = []
    keys = jax.random.split(key, 2 * num_layers)
    for l in range(num_layers):
        fan_in, fan_out = dims[l], dims[l + 1]
        limit = jnp.sqrt(6.0 / (fan_in + fan_out))
        w = jax.random.uniform(keys[2 * l], (fan_in, fan_out),
                               minval=-limit, maxval=limit, dtype=jnp.float32)
        b = 0.1 * jax.random.normal(keys[2 * l + 1], (1, fan_out), dtype=jnp.float32)
        params.append((w, b))
    return params


def _reference_forward_mirror(x, adj, params):
    """Pure-JAX reference mirroring the kernel numerics (bf16 operands, f32 acc)."""
    adj_bf16 = adj.astype(jnp.bfloat16)
    ws = [w.astype(jnp.bfloat16) for w, _ in params]
    bs = [b for _, b in params]
    h = jnp.dot(x.astype(jnp.bfloat16), ws[0],
                preferred_element_type=jnp.float32).astype(jnp.bfloat16)
    for i in range(len(params) - 1):
        agg = jnp.dot(adj_bf16, h, preferred_element_type=jnp.float32)
        act = jnp.maximum(agg + bs[i], 0.0)
        h = jnp.dot(act.astype(jnp.bfloat16), ws[i + 1],
                    preferred_element_type=jnp.float32).astype(jnp.bfloat16)
    return jnp.dot(adj_bf16, h, preferred_element_type=jnp.float32) + bs[-1]


def _reference_forward_f32(x, adj, params):
    """Full-f32 ground truth (bounds the bf16 quantization error)."""
    h = x
    n_layers = len(params)
    for i, (w, b) in enumerate(params):
        h = adj @ (h @ w) + b
        if i < n_layers - 1:
            h = jnp.maximum(h, 0.0)
    return h


if __name__ == "__main__":
    key = jax.random.PRNGKey(0)
    k_x, k_adj, k_par = jax.random.split(key, 3)

    # Small synthetic problem: 512 nodes, in=64, hidden=128 (lane-dense), out=32.
    N, in_channels, hidden_channels, out_channels = 512, 64, 128, 32
    num_layers = 3  # dropout=0.5 is a no-op in eval mode

    x = jax.random.normal(k_x, (N, in_channels), dtype=jnp.float32)
    # Dense "adj_t" (normalize=False => used as-is); sparse 0/1 adjacency.
    adj = (jax.random.uniform(k_adj, (N, N)) < 0.05).astype(jnp.float32)

    params = _make_params(k_par, in_channels, hidden_channels,
                          out_channels, num_layers)

    out = jax.jit(gcn_forward)(x, adj, params)
    out = jax.block_until_ready(out)
    assert out.shape == (N, out_channels)

    # 1) Exact-recipe check against a bf16-mirrored pure-JAX reference.
    ref = _reference_forward_mirror(x, adj, params)
    assert jnp.allclose(out, ref, atol=1e-2, rtol=1e-3), float(
        jnp.max(jnp.abs(out - ref)))

    # 2) Sanity check vs full-f32 ground truth (bounds bf16 quantization error).
    ref32 = _reference_forward_f32(x, adj, params)
    rel = float(jnp.max(jnp.abs(out - ref32)) / (jnp.max(jnp.abs(ref32)) + 1e-6))
    assert rel < 0.1, rel

    print("KERNEL_OK")
</pallas_src>

<mosaic_0001>
module attributes {stable_mosaic.version = 11 : i64} {
  func.func @_feature_transform_kernel(%arg0: i32, %arg1: memref<256x64xbf16, #tpu.memory_space<vmem>>, %arg2: memref<64x128xbf16, #tpu.memory_space<vmem>>, %arg3: memref<256x128xbf16, #tpu.memory_space<vmem>>) attributes {dimension_semantics = [#tpu.dimension_semantics<parallel>], iteration_bounds = array<i64: 2>, scalar_prefetch = 0 : i64, scratch_operands = 0 : i64, tpu.core_type = #tpu.core_type<tc>, window_params = [{transform_indices = @transform_0, window_bounds = array<i64: 256, 64>}, {pipeline_mode = #tpu.pipeline_mode<synchronous>, transform_indices = @transform_1, window_bounds = array<i64: 64, 128>}, {transform_indices = @transform_2, window_bounds = array<i64: 256, 128>}]} {
    %c0 = arith.constant 0 : index
    %c0_0 = arith.constant 0 : index
    %0 = vector.load %arg1[%c0, %c0_0] : memref<256x64xbf16, #tpu.memory_space<vmem>>, vector<256x64xbf16>
    %c0_1 = arith.constant 0 : index
    %c0_2 = arith.constant 0 : index
    %1 = vector.load %arg2[%c0_1, %c0_2] : memref<64x128xbf16, #tpu.memory_space<vmem>>, vector<64x128xbf16>
    %cst = arith.constant dense<0.000000e+00> : vector<256x128xf32>
    %2 = tpu.matmul %0, %1, %cst {dimension_numbers = #tpu.dot_dimension_numbers<[1], [0], [0], [1], [0, 0, 1, 1], [], []>} : vector<256x64xbf16>, vector<64x128xbf16>, vector<256x128xf32> -> vector<256x128xf32>
    %3 = arith.truncf %2 : vector<256x128xf32> to vector<256x128xbf16>
    %c0_3 = arith.constant 0 : index
    %c0_4 = arith.constant 0 : index
    %4 = vector.load %arg3[%c0_3, %c0_4] : memref<256x128xbf16, #tpu.memory_space<vmem>>, vector<256x128xbf16>
    tpu.vector_store %arg3[%c0_3, %c0_4], %3 {strides = array<i32>} : memref<256x128xbf16, #tpu.memory_space<vmem>>, vector<256x128xbf16>,
    return
  }
  func.func @transform_0(%arg0: i32) -> (i32, i32) {
    %c0_i32 = arith.constant 0 : i32
    %c0_i32_0 = arith.constant 0 : i32
    return %arg0, %c0_i32 : i32, i32
  }
  func.func @transform_1(%arg0: i32) -> (i32, i32) {
    %c0_i32 = arith.constant 0 : i32
    %c0_i32_0 = arith.constant 0 : i32
    %c0_i32_1 = arith.constant 0 : i32
    return %c0_i32, %c0_i32_0 : i32, i32
  }
  func.func @transform_2(%arg0: i32) -> (i32, i32) {
    %c0_i32 = arith.constant 0 : i32
    %c0_i32_0 = arith.constant 0 : i32
    return %arg0, %c0_i32 : i32, i32
  }
}

module attributes {stable_mosaic.version = 11 : i64} {
  func.func @_aggregate_fused_kernel(%arg0: i32, %arg1: i32, %arg2: memref<256x512xbf16, #tpu.memory_space<vmem>>, %arg3: memref<512x128xbf16, #tpu.memory_space<vmem>>, %arg4: memref<1x128xf32, #tpu.memory_space<vmem>>, %arg5: memref<128x128xbf16, #tpu.memory_space<vmem>>, %arg6: memref<256x128xbf16, #tpu.memory_space<vmem>>, %arg7: memref<256x128xf32, #tpu.memory_space<vmem>>) attributes {dimension_semantics = [#tpu.dimension_semantics<parallel>, #tpu.dimension_semantics<arbitrary>], iteration_bounds = array<i64: 2, 1>, scalar_prefetch = 0 : i64, scratch_operands = 1 : i64, tpu.core_type = #tpu.core_type<tc>, window_params = [{transform_indices = @transform_0, window_bounds = array<i64: 256, 512>}, {transform_indices = @transform_1, window_bounds = array<i64: 512, 128>}, {pipeline_mode = #tpu.pipeline_mode<synchronous>, transform_indices = @transform_2, window_bounds = array<i64: 1, 128>}, {pipeline_mode = #tpu.pipeline_mode<synchronous>, transform_indices = @transform_3, window_bounds = array<i64: 128, 128>}, {transform_indices = @transform_4, window_bounds = array<i64: 256, 128>}]} {
    %c0_i32 = arith.constant 0 : i32
    %0 = arith.cmpi eq, %arg1, %c0_i32 : i32
    %1 = arith.extui %0 : i1 to i32
    %c0_i32_0 = arith.constant 0 : i32
    %2 = arith.cmpi ne, %1, %c0_i32_0 : i32
    scf.if %2 {
      %cst_10 = arith.constant 0.000000e+00 : f32
      %12 = vector.broadcast %cst_10 : f32 to vector<256x128xf32>
      %c0_11 = arith.constant 0 : index
      %c0_12 = arith.constant 0 : index
      %13 = vector.load %arg7[%c0_11, %c0_12] : memref<256x128xf32, #tpu.memory_space<vmem>>, vector<256x128xf32>
      tpu.vector_store %arg7[%c0_11, %c0_12], %12 {strides = array<i32>} : memref<256x128xf32, #tpu.memory_space<vmem>>, vector<256x128xf32>,
    } else {
    }
    %c0 = arith.constant 0 : index
    %c0_1 = arith.constant 0 : index
    %3 = vector.load %arg7[%c0, %c0_1] : memref<256x128xf32, #tpu.memory_space<vmem>>, vector<256x128xf32>
    %c0_2 = arith.constant 0 : index
    %c0_3 = arith.constant 0 : index
    %4 = vector.load %arg2[%c0_2, %c0_3] : memref<256x512xbf16, #tpu.memory_space<vmem>>, vector<256x512xbf16>
    %c0_4 = arith.constant 0 : index
    %c0_5 = arith.constant 0 : index
    %5 = vector.load %arg3[%c0_4, %c0_5] : memref<512x128xbf16, #tpu.memory_space<vmem>>, vector<512x128xbf16>
    %cst = arith.constant dense<0.000000e+00> : vector<256x128xf32>
    %6 = tpu.matmul %4, %5, %cst {dimension_numbers = #tpu.dot_dimension_numbers<[1], [0], [0], [1], [0, 0, 1, 1], [], []>} : vector<256x512xbf16>, vector<512x128xbf16>, vector<256x128xf32> -> vector<256x128xf32>
    %7 = arith.addf %3, %6 : vector<256x128xf32>
    %c0_6 = arith.constant 0 : index
    %c0_7 = arith.constant 0 : index
    %8 = vector.load %arg7[%c0_6, %c0_7] : memref<256x128xf32, #tpu.memory_space<vmem>>, vector<256x128xf32>
    tpu.vector_store %arg7[%c0_6, %c0_7], %7 {strides = array<i32>} : memref<256x128xf32, #tpu.memory_space<vmem>>, vector<256x128xf32>,
    %c0_i32_8 = arith.constant 0 : i32
    %9 = arith.cmpi eq, %arg1, %c0_i32_8 : i32
    %10 = arith.extui %9 : i1 to i32
    %c0_i32_9 = arith.constant 0 : i32
    %11 = arith.cmpi ne, %10, %c0_i32_9 : i32
    scf.if %11 {
      %c0_10 = arith.constant 0 : index
      %c0_11 = arith.constant 0 : index
      %12 = vector.load %arg7[%c0_10, %c0_11] : memref<256x128xf32, #tpu.memory_space<vmem>>, vector<256x128xf32>
      %c0_12 = arith.constant 0 : index
      %c0_13 = arith.constant 0 : index
      %13 = vector.load %arg4[%c0_12, %c0_13] : memref<1x128xf32, #tpu.memory_space<vmem>>, vector<1x128xf32>
      %14 = vector.broadcast %13 : vector<1x128xf32> to vector<256x128xf32>
      %15 = arith.addf %12, %14 : vector<256x128xf32>
      %cst_14 = arith.constant 0.000000e+00 : f32
      %16 = vector.broadcast %cst_14 : f32 to vector<256x128xf32>
      %17 = arith.maximumf %15, %16 : vector<256x128xf32>
      %18 = arith.truncf %17 : vector<256x128xf32> to vector<256x128xbf16>
      %c0_15 = arith.constant 0 : index
      %c0_16 = arith.constant 0 : index
      %19 = vector.load %arg5[%c0_15, %c0_16] : memref<128x128xbf16, #tpu.memory_space<vmem>>, vector<128x128xbf16>
      %cst_17 = arith.constant dense<0.000000e+00> : vector<256x128xf32>
      %20 = tpu.matmul %18, %19, %cst_17 {dimension_numbers = #tpu.dot_dimension_numbers<[1], [0], [0], [1], [0, 0, 1, 1], [], []>} : vector<256x128xbf16>, vector<128x128xbf16>, vector<256x128xf32> -> vector<256x128xf32>
      %21 = arith.truncf %20 : vector<256x128xf32> to vector<256x128xbf16>
      %c0_18 = arith.constant 0 : index
      %c0_19 = arith.constant 0 : index
      %22 = vector.load %arg6[%c0_18, %c0_19] : memref<256x128xbf16, #tpu.memory_space<vmem>>, vector<256x128xbf16>
      tpu.vector_store %arg6[%c0_18, %c0_19], %21 {strides = array<i32>} : memref<256x128xbf16, #tpu.memory_space<vmem>>, vector<256x128xbf16>,
    } else {
    }
    return
  }
  func.func @transform_0(%arg0: i32, %arg1: i32) -> (i32, i32) {
    %c0_i32 = arith.constant 0 : i32
    return %arg0, %arg1 : i32, i32
  }
  func.func @transform_1(%arg0: i32, %arg1: i32) -> (i32, i32) {
    %c0_i32 = arith.constant 0 : i32
    %c0_i32_0 = arith.constant 0 : i32
    return %arg1, %c0_i32 : i32, i32
  }
  func.func @transform_2(%arg0: i32, %arg1: i32) -> (i32, i32) {
    %c0_i32 = arith.constant 0 : i32
    %c0_i32_0 = arith.constant 0 : i32
    %c0_i32_1 = arith.constant 0 : i32
    return %c0_i32, %c0_i32_0 : i32, i32
  }
  func.func @transform_3(%arg0: i32, %arg1: i32) -> (i32, i32) {
    %c0_i32 = arith.constant 0 : i32
    %c0_i32_0 = arith.constant 0 : i32
    %c0_i32_1 = arith.constant 0 : i32
    return %c0_i32, %c0_i32_0 : i32, i32
  }
  func.func @transform_4(%arg0: i32, %arg1: i32) -> (i32, i32) {
    %c0_i32 = arith.constant 0 : i32
    %c0_i32_0 = arith.constant 0 : i32
    return %arg0, %c0_i32 : i32, i32
  }
}

module attributes {stable_mosaic.version = 11 : i64} {
  func.func @_aggregate_fused_kernel(%arg0: i32, %arg1: i32, %arg2: memref<256x512xbf16, #tpu.memory_space<vmem>>, %arg3: memref<512x128xbf16, #tpu.memory_space<vmem>>, %arg4: memref<1x128xf32, #tpu.memory_space<vmem>>, %arg5: memref<128x32xbf16, #tpu.memory_space<vmem>>, %arg6: memref<256x32xbf16, #tpu.memory_space<vmem>>, %arg7: memref<256x128xf32, #tpu.memory_space<vmem>>) attributes {dimension_semantics = [#tpu.dimension_semantics<parallel>, #tpu.dimension_semantics<arbitrary>], iteration_bounds = array<i64: 2, 1>, scalar_prefetch = 0 : i64, scratch_operands = 1 : i64, tpu.core_type = #tpu.core_type<tc>, window_params = [{transform_indices = @transform_0, window_bounds = array<i64: 256, 512>}, {transform_indices = @transform_1, window_bounds = array<i64: 512, 128>}, {pipeline_mode = #tpu.pipeline_mode<synchronous>, transform_indices = @transform_2, window_bounds = array<i64: 1, 128>}, {pipeline_mode = #tpu.pipeline_mode<synchronous>, transform_indices = @transform_3, window_bounds = array<i64: 128, 32>}, {transform_indices = @transform_4, window_bounds = array<i64: 256, 32>}]} {
    %c0_i32 = arith.constant 0 : i32
    %0 = arith.cmpi eq, %arg1, %c0_i32 : i32
    %1 = arith.extui %0 : i1 to i32
    %c0_i32_0 = arith.constant 0 : i32
    %2 = arith.cmpi ne, %1, %c0_i32_0 : i32
    scf.if %2 {
      %cst_10 = arith.constant 0.000000e+00 : f32
      %12 = vector.broadcast %cst_10 : f32 to vector<256x128xf32>
      %c0_11 = arith.constant 0 : index
      %c0_12 = arith.constant 0 : index
      %13 = vector.load %arg7[%c0_11, %c0_12] : memref<256x128xf32, #tpu.memory_space<vmem>>, vector<256x128xf32>
      tpu.vector_store %arg7[%c0_11, %c0_12], %12 {strides = array<i32>} : memref<256x128xf32, #tpu.memory_space<vmem>>, vector<256x128xf32>,
    } else {
    }
    %c0 = arith.constant 0 : index
    %c0_1 = arith.constant 0 : index
    %3 = vector.load %arg7[%c0, %c0_1] : memref<256x128xf32, #tpu.memory_space<vmem>>, vector<256x128xf32>
    %c0_2 = arith.constant 0 : index
    %c0_3 = arith.constant 0 : index
    %4 = vector.load %arg2[%c0_2, %c0_3] : memref<256x512xbf16, #tpu.memory_space<vmem>>, vector<256x512xbf16>
    %c0_4 = arith.constant 0 : index
    %c0_5 = arith.constant 0 : index
    %5 = vector.load %arg3[%c0_4, %c0_5] : memref<512x128xbf16, #tpu.memory_space<vmem>>, vector<512x128xbf16>
    %cst = arith.constant dense<0.000000e+00> : vector<256x128xf32>
    %6 = tpu.matmul %4, %5, %cst {dimension_numbers = #tpu.dot_dimension_numbers<[1], [0], [0], [1], [0, 0, 1, 1], [], []>} : vector<256x512xbf16>, vector<512x128xbf16>, vector<256x128xf32> -> vector<256x128xf32>
    %7 = arith.addf %3, %6 : vector<256x128xf32>
    %c0_6 = arith.constant 0 : index
    %c0_7 = arith.constant 0 : index
    %8 = vector.load %arg7[%c0_6, %c0_7] : memref<256x128xf32, #tpu.memory_space<vmem>>, vector<256x128xf32>
    tpu.vector_store %arg7[%c0_6, %c0_7], %7 {strides = array<i32>} : memref<256x128xf32, #tpu.memory_space<vmem>>, vector<256x128xf32>,
    %c0_i32_8 = arith.constant 0 : i32
    %9 = arith.cmpi eq, %arg1, %c0_i32_8 : i32
    %10 = arith.extui %9 : i1 to i32
    %c0_i32_9 = arith.constant 0 : i32
    %11 = arith.cmpi ne, %10, %c0_i32_9 : i32
    scf.if %11 {
      %c0_10 = arith.constant 0 : index
      %c0_11 = arith.constant 0 : index
      %12 = vector.load %arg7[%c0_10, %c0_11] : memref<256x128xf32, #tpu.memory_space<vmem>>, vector<256x128xf32>
      %c0_12 = arith.constant 0 : index
      %c0_13 = arith.constant 0 : index
      %13 = vector.load %arg4[%c0_12, %c0_13] : memref<1x128xf32, #tpu.memory_space<vmem>>, vector<1x128xf32>
      %14 = vector.broadcast %13 : vector<1x128xf32> to vector<256x128xf32>
      %15 = arith.addf %12, %14 : vector<256x128xf32>
      %cst_14 = arith.constant 0.000000e+00 : f32
      %16 = vector.broadcast %cst_14 : f32 to vector<256x128xf32>
      %17 = arith.maximumf %15, %16 : vector<256x128xf32>
      %18 = arith.truncf %17 : vector<256x128xf32> to vector<256x128xbf16>
      %c0_15 = arith.constant 0 : index
      %c0_16 = arith.constant 0 : index
      %19 = vector.load %arg5[%c0_15, %c0_16] : memref<128x32xbf16, #tpu.memory_space<vmem>>, vector<128x32xbf16>
      %cst_17 = arith.constant dense<0.000000e+00> : vector<256x32xf32>
      %20 = tpu.matmul %18, %19, %cst_17 {dimension_numbers = #tpu.dot_dimension_numbers<[1], [0], [0], [1], [0, 0, 1, 1], [], []>} : vector<256x128xbf16>, vector<128x32xbf16>, vector<256x32xf32> -> vector<256x32xf32>
      %21 = arith.truncf %20 : vector<256x32xf32> to vector<256x32xbf16>
      %c0_18 = arith.constant 0 : index
      %c0_19 = arith.constant 0 : index
      %22 = vector.load %arg6[%c0_18, %c0_19] : memref<256x32xbf16, #tpu.memory_space<vmem>>, vector<256x32xbf16>
      tpu.vector_store %arg6[%c0_18, %c0_19], %21 {strides = array<i32>} : memref<256x32xbf16, #tpu.memory_space<vmem>>, vector<256x32xbf16>,
    } else {
    }
    return
  }
  func.func @transform_0(%arg0: i32, %arg1: i32) -> (i32, i32) {
    %c0_i32 = arith.constant 0 : i32
    return %arg0, %arg1 : i32, i32
  }
  func.func @transform_1(%arg0: i32, %arg1: i32) -> (i32, i32) {
    %c0_i32 = arith.constant 0 : i32
    %c0_i32_0 = arith.constant 0 : i32
    return %arg1, %c0_i32 : i32, i32
  }
  func.func @transform_2(%arg0: i32, %arg1: i32) -> (i32, i32) {
    %c0_i32 = arith.constant 0 : i32
    %c0_i32_0 = arith.constant 0 : i32
    %c0_i32_1 = arith.constant 0 : i32
    return %c0_i32, %c0_i32_0 : i32, i32
  }
  func.func @transform_3(%arg0: i32, %arg1: i32) -> (i32, i32) {
    %c0_i32 = arith.constant 0 : i32
    %c0_i32_0 = arith.constant 0 : i32
    %c0_i32_1 = arith.constant 0 : i32
    return %c0_i32, %c0_i32_0 : i32, i32
  }
  func.func @transform_4(%arg0: i32, %arg1: i32) -> (i32, i32) {
    %c0_i32 = arith.constant 0 : i32
    %c0_i32_0 = arith.constant 0 : i32
    return %arg0, %c0_i32 : i32, i32
  }
}

module attributes {stable_mosaic.version = 11 : i64} {
  func.func @_aggregate_final_kernel(%arg0: i32, %arg1: i32, %arg2: memref<256x512xbf16, #tpu.memory_space<vmem>>, %arg3: memref<512x32xbf16, #tpu.memory_space<vmem>>, %arg4: memref<1x32xf32, #tpu.memory_space<vmem>>, %arg5: memref<256x32xf32, #tpu.memory_space<vmem>>, %arg6: memref<256x32xf32, #tpu.memory_space<vmem>>) attributes {dimension_semantics = [#tpu.dimension_semantics<parallel>, #tpu.dimension_semantics<arbitrary>], iteration_bounds = array<i64: 2, 1>, scalar_prefetch = 0 : i64, scratch_operands = 1 : i64, tpu.core_type = #tpu.core_type<tc>, window_params = [{transform_indices = @transform_0, window_bounds = array<i64: 256, 512>}, {transform_indices = @transform_1, window_bounds = array<i64: 512, 32>}, {pipeline_mode = #tpu.pipeline_mode<synchronous>, transform_indices = @transform_2, window_bounds = array<i64: 1, 32>}, {transform_indices = @transform_3, window_bounds = array<i64: 256, 32>}]} {
    %c0_i32 = arith.constant 0 : i32
    %0 = arith.cmpi eq, %arg1, %c0_i32 : i32
    %1 = arith.extui %0 : i1 to i32
    %c0_i32_0 = arith.constant 0 : i32
    %2 = arith.cmpi ne, %1, %c0_i32_0 : i32
    scf.if %2 {
      %cst_10 = arith.constant 0.000000e+00 : f32
      %12 = vector.broadcast %cst_10 : f32 to vector<256x32xf32>
      %c0_11 = arith.constant 0 : index
      %c0_12 = arith.constant 0 : index
      %13 = vector.load %arg6[%c0_11, %c0_12] : memref<256x32xf32, #tpu.memory_space<vmem>>, vector<256x32xf32>
      tpu.vector_store %arg6[%c0_11, %c0_12], %12 {strides = array<i32>} : memref<256x32xf32, #tpu.memory_space<vmem>>, vector<256x32xf32>,
    } else {
    }
    %c0 = arith.constant 0 : index
    %c0_1 = arith.constant 0 : index
    %3 = vector.load %arg6[%c0, %c0_1] : memref<256x32xf32, #tpu.memory_space<vmem>>, vector<256x32xf32>
    %c0_2 = arith.constant 0 : index
    %c0_3 = arith.constant 0 : index
    %4 = vector.load %arg2[%c0_2, %c0_3] : memref<256x512xbf16, #tpu.memory_space<vmem>>, vector<256x512xbf16>
    %c0_4 = arith.constant 0 : index
    %c0_5 = arith.constant 0 : index
    %5 = vector.load %arg3[%c0_4, %c0_5] : memref<512x32xbf16, #tpu.memory_space<vmem>>, vector<512x32xbf16>
    %cst = arith.constant dense<0.000000e+00> : vector<256x32xf32>
    %6 = tpu.matmul %4, %5, %cst {dimension_numbers = #tpu.dot_dimension_numbers<[1], [0], [0], [1], [0, 0, 1, 1], [], []>} : vector<256x512xbf16>, vector<512x32xbf16>, vector<256x32xf32> -> vector<256x32xf32>
    %7 = arith.addf %3, %6 : vector<256x32xf32>
    %c0_6 = arith.constant 0 : index
    %c0_7 = arith.constant 0 : index
    %8 = vector.load %arg6[%c0_6, %c0_7] : memref<256x32xf32, #tpu.memory_space<vmem>>, vector<256x32xf32>
    tpu.vector_store %arg6[%c0_6, %c0_7], %7 {strides = array<i32>} : memref<256x32xf32, #tpu.memory_space<vmem>>, vector<256x32xf32>,
    %c0_i32_8 = arith.constant 0 : i32
    %9 = arith.cmpi eq, %arg1, %c0_i32_8 : i32
    %10 = arith.extui %9 : i1 to i32
    %c0_i32_9 = arith.constant 0 : i32
    %11 = arith.cmpi ne, %10, %c0_i32_9 : i32
    scf.if %11 {
      %c0_10 = arith.constant 0 : index
      %c0_11 = arith.constant 0 : index
      %12 = vector.load %arg6[%c0_10, %c0_11] : memref<256x32xf32, #tpu.memory_space<vmem>>, vector<256x32xf32>
      %c0_12 = arith.constant 0 : index
      %c0_13 = arith.constant 0 : index
      %13 = vector.load %arg4[%c0_12, %c0_13] : memref<1x32xf32, #tpu.memory_space<vmem>>, vector<1x32xf32>
      %14 = vector.broadcast %13 : vector<1x32xf32> to vector<256x32xf32>
      %15 = arith.addf %12, %14 : vector<256x32xf32>
      %c0_14 = arith.constant 0 : index
      %c0_15 = arith.constant 0 : index
      %16 = vector.load %arg5[%c0_14, %c0_15] : memref<256x32xf32, #tpu.memory_space<vmem>>, vector<256x32xf32>
      tpu.vector_store %arg5[%c0_14, %c0_15], %15 {strides = array<i32>} : memref<256x32xf32, #tpu.memory_space<vmem>>, vector<256x32xf32>,
    } else {
    }
    return
  }
  func.func @transform_0(%arg0: i32, %arg1: i32) -> (i32, i32) {
    %c0_i32 = arith.constant 0 : i32
    return %arg0, %arg1 : i32, i32
  }
  func.func @transform_1(%arg0: i32, %arg1: i32) -> (i32, i32) {
    %c0_i32 = arith.constant 0 : i32
    %c0_i32_0 = arith.constant 0 : i32
    return %arg1, %c0_i32 : i32, i32
  }
  func.func @transform_2(%arg0: i32, %arg1: i32) -> (i32, i32) {
    %c0_i32 = arith.constant 0 : i32
    %c0_i32_0 = arith.constant 0 : i32
    %c0_i32_1 = arith.constant 0 : i32
    return %c0_i32, %c0_i32_0 : i32, i32
  }
  func.func @transform_3(%arg0: i32, %arg1: i32) -> (i32, i32) {
    %c0_i32 = arith.constant 0 : i32
    %c0_i32_0 = arith.constant 0 : i32
    return %arg0, %c0_i32 : i32, i32
  }
}

</mosaic_0001>

<bundles_post_ra>
// kernel: gcn_forward.4
= control target key start
LH: loop header
LB: loop body
LE: loop exit
PB: predicated region body
PF: predicated region fallthrough
CT: control target
= control target key end

     0   :  { %s1043_s9 = smov 0   ;;  %s1131_s0 = inlined_call_operand.vmem [shape: bf16[512,64], index: 0, kind: input, shape index: {}]   ;;  %s1132_s1 = inlined_call_operand.vmem [shape: bf16[64,128], index: 1, kind: input, shape index: {}]   ;;  %s1133_s2 = inlined_call_operand.vmem [shape: bf16[512,128], index: 2, kind: output, shape index: {}]  }
   0x1 LB: > { %s718_s10 = sadd.s32 4294967295, %s1026_s9   ;;  %p722_p0 = scmp.ge.s32.totalorder %s1026_s9, 1  ;;  %s1026_s9 = sphi %s1043_s9, %s12_s9  }
   0x2   : > { %p113_p1 = scmp.lt.s32.totalorder %s1026_s9, 3 }
   0x4   : > { %p114_p2 = pnand %p722_p0, %p113_p1 }
   0x5   : > { %v1000_v0 = vld [vmem:[%s1132_s1] sm:$0xff] (!%p114_p2)   ;;  %s723_s13 = sshll.u32 (!%p114_p2), %s718_s10, 5  ;;  %v1001_v1 = vld [vmem:[%s1132_s1 + $0x8] sm:$0xff] (!%p114_p2)   ;;  %v1002_v2 = vld [vmem:[%s1132_s1 + $0x10] sm:$0xff] (!%p114_p2)   ;;  %vm292_vm0 = vcmask (!%p114_p2), 523264  }
   0x6   : > { %117 = sbr.rel (%p114_p2) target bundleno = 264 (0x108), region = 28  ;;  %p136_p3 = scmp.lt.s32.totalorder (!%p114_p2), %s723_s13, 63  ;;  %944 = vmatprep.subr.bf16.mxu0 (!%p114_p2), %v1000_v0  ;;  %984 = vmatprep.subr.bf16.mxu1 (!%p114_p2), %v1000_v0  ;;  %v1003_v3 = vld [vmem:[%s1132_s1 + $0x18] sm:$0xff] (!%p114_p2)  }
   0x7   : > { %945 = vmatpush3.bf16.msra.mxu0 (!%p114_p2), %v1000_v0  ;;  %988 = vmatpush3.bf16.msra.mxu1 (!%p114_p2), %v1000_v0 }
   0x8   : > { %946 = vmatprep.subr.bf16.mxu0 (!%p114_p2), %v1001_v1  ;;  %985 = vmatprep.subr.bf16.mxu1 (!%p114_p2), %v1001_v1 }
   0xb   : > { %947 = vmatpush3.bf16.msra.mxu0 (!%p114_p2), %v1001_v1  ;;  %989 = vmatpush3.bf16.msra.mxu1 (!%p114_p2), %v1001_v1 }
   0xc   : > { %948 = vmatprep.subr.bf16.mxu0 (!%p114_p2), %v1002_v2  ;;  %986 = vmatprep.subr.bf16.mxu1 (!%p114_p2), %v1002_v2 }
   0xd   : > { %s1135_s13 = smov (!%p136_p3, %s723_s13), 63 }
   0xe   : > { %s724_s18 = sshll.u32 %s1135_s13, 2 }
   0xf   : > { %s1071_s23 = scalar_lea.vmem %s1131_s0, %s724_s18  ;;  %949 = vmatpush3.bf16.msra.mxu0 %v1002_v2  ;;  %990 = vmatpush3.bf16.msra.mxu1 %v1002_v2  ;;  %s1110_s26 = scalar_lea.vmem %s1133_s2, %s724_s18 }
  0x10   : > { %v1004_v4 = vld [vmem:[%s1071_s23] sm:$0xff]   ;;  %950 = vmatprep.subr.bf16.mxu0 %v1003_v3  ;;  %987 = vmatprep.subr.bf16.mxu1 %v1003_v3  ;;  %v1006_v6 = vld [vmem:[%s1071_s23 + $0x8] sm:$0xff]   ;;  %v1008_v8 = vld [vmem:[%s1071_s23 + $0x10] sm:$0xff]  }
  0x11   : > { %v1005_v5 = vld [vmem:[%s1071_s23 + $0x40] sm:$0xff]   ;;  %952 = vmatprep.mubr.msk.bf16.mxu0 %vm292_vm0, %v1004_v4  ;;  %v1007_v7 = vld [vmem:[%s1071_s23 + $0x48] sm:$0xff]   ;;  %v1009_v9 = vld [vmem:[%s1071_s23 + $0x50] sm:$0xff]  }
  0x12   : > { %968 = vmatprep.mubr.msk.bf16.mxu1 %vm292_vm0, %v1005_v5  ;;  %v1010_v10 = vld [vmem:[%s1071_s23 + $0x18] sm:$0xff]   ;;  %v1012_v12 = vld [vmem:[%s1071_s23 + $0x20] sm:$0xff]   ;;  %v1014_v14 = vld [vmem:[%s1071_s23 + $0x28] sm:$0xff]  }
  0x13   : > { %951 = vmatpush3.bf16.msra.mxu0 %v1003_v3  ;;  %991 = vmatpush3.bf16.msra.mxu1 %v1003_v3  ;;  %v1011_v11 = vld [vmem:[%s1071_s23 + $0x58] sm:$0xff]   ;;  %v1013_v13 = vld [vmem:[%s1071_s23 + $0x60] sm:$0xff]   ;;  %v1015_v15 = vld [vmem:[%s1071_s23 + $0x68] sm:$0xff]  }
  0x14   : > { %v1016_v16 = vld [vmem:[%s1071_s23 + $0x30] sm:$0xff]   ;;  %v1018_v18 = vld [vmem:[%s1071_s23 + $0x38] sm:$0xff]  }
  0x15   : > { %v1017_v17 = vld [vmem:[%s1071_s23 + $0x70] sm:$0xff]   ;;  %v1019_v19 = vld [vmem:[%s1071_s23 + $0x78] sm:$0xff]  }
  0x16   : > { %953 = vmatmul.mubr.msk.bf16.vlgmr.msra.gmra.mrb[0].mxu0 %vm292_vm0, %v1006_v6  ;;  %969 = vmatmul.mubr.msk.bf16.vlgmr.msra.gmra.mrb[0].mxu1 %vm292_vm0, %v1007_v7 }
  0x17   : > { %956 = vmatprep.mubr.msk.bf16.mxu0 %vm292_vm0, %v1008_v8  ;;  %972 = vmatprep.mubr.msk.bf16.mxu1 %vm292_vm0, %v1009_v9 }
  0x1e   : > { %957 = vmatmul.mubr.msk.bf16.gmra.mrb[4].mxu0 %vm292_vm0, %v1010_v10  ;;  %973 = vmatmul.mubr.msk.bf16.gmra.mrb[4].mxu1 %vm292_vm0, %v1011_v11 }
  0x1f   : > { %960 = vmatprep.mubr.msk.bf16.mxu0 %vm292_vm0, %v1012_v12  ;;  %976 = vmatprep.mubr.msk.bf16.mxu1 %vm292_vm0, %v1013_v13 }
  0x26   : > { %961 = vmatmul.mubr.msk.bf16.gmra.mrb[8].mxu0 %vm292_vm0, %v1014_v14  ;;  %977 = vmatmul.mubr.msk.bf16.gmra.mrb[8].mxu1 %vm292_vm0, %v1015_v15 }
  0x27   : > { %964 = vmatprep.mubr.msk.bf16.mxu0 %vm292_vm0, %v1016_v16  ;;  %980 = vmatprep.mubr.msk.bf16.mxu1 %vm292_vm0, %v1017_v17 }
  0x2e   : > { %965 = vmatmul.mubr.msk.bf16.gmra.mrb[12].mxu0 %vm292_vm0, %v1018_v18  ;;  %981 = vmatmul.mubr.msk.bf16.gmra.mrb[12].mxu1 %vm292_vm0, %v1019_v19 }
  0xe9   : > { %v954_v20 = vpop.f32.mrb[0].mxu0  ;;  %v970_v21 = vpop.f32.mrb[0].mxu1 }
  0xea   : > { %v375_v22 = vpop.f32.mrb[1].mxu0  ;;  %v439_v23 = vpop.f32.mrb[1].mxu1 }
  0xeb   : > { %v955_v24 = vpop.f32.mrb[2].mxu0  ;;  %v971_v25 = vpop.f32.mrb[2].mxu1 }
  0xec   : > { %v837_v26 = vpack.c.bf16 %v955_v24, %v954_v20  ;;  %v877_v27 = vpack.c.bf16 %v971_v25, %v970_v21  ;;  %v378_v28 = vpop.f32.mrb[3].mxu0  ;;  %v442_v29 = vpop.f32.mrb[3].mxu1 }
  0xed   : > { %v832_v30 = vpack.c.bf16 %v378_v28, %v375_v22  ;;  %v872_v31 = vpack.c.bf16 %v442_v29, %v439_v23 }
  0xee   : > { %909 = vst [vmem:[%s1110_s26 + $0x8] sm:$0xff] %v837_v26   ;;  %917 = vst [vmem:[%s1110_s26 + $0x48] sm:$0xff] %v877_v27  }
  0xef   : > { %833 = vst [vmem:[%s1110_s26] sm:$0xff] %v832_v30   ;;  %916 = vst [vmem:[%s1110_s26 + $0x40] sm:$0xff] %v872_v31  }
  0xf1   : > { %v958_v32 = vpop.f32.mrb[4].mxu0  ;;  %v974_v33 = vpop.f32.mrb[4].mxu1 }
  0xf2   : > { %v391_v34 = vpop.f32.mrb[5].mxu0  ;;  %v455_v35 = vpop.f32.mrb[5].mxu1 }
  0xf3   : > { %v959_v36 = vpop.f32.mrb[6].mxu0  ;;  %v975_v37 = vpop.f32.mrb[6].mxu1 }
  0xf4   : > { %v847_v38 = vpack.c.bf16 %v959_v36, %v958_v32  ;;  %v887_v39 = vpack.c.bf16 %v975_v37, %v974_v33  ;;  %v394_v40 = vpop.f32.mrb[7].mxu0  ;;  %v458_v41 = vpop.f32.mrb[7].mxu1 }
  0xf5   : > { %v842_v42 = vpack.c.bf16 %v394_v40, %v391_v34  ;;  %v882_v43 = vpack.c.bf16 %v458_v41, %v455_v35 }
  0xf6   : > { %911 = vst [vmem:[%s1110_s26 + $0x18] sm:$0xff] %v847_v38   ;;  %919 = vst [vmem:[%s1110_s26 + $0x58] sm:$0xff] %v887_v39  }
  0xf7   : > { %910 = vst [vmem:[%s1110_s26 + $0x10] sm:$0xff] %v842_v42   ;;  %918 = vst [vmem:[%s1110_s26 + $0x50] sm:$0xff] %v882_v43  }
  0xf9   : > { %v962_v44 = vpop.f32.mrb[8].mxu0  ;;  %v978_v45 = vpop.f32.mrb[8].mxu1 }
  0xfa   : > { %v407_v46 = vpop.f32.mrb[9].mxu0  ;;  %v471_v47 = vpop.f32.mrb[9].mxu1 }
  0xfb   : > { %v963_v48 = vpop.f32.mrb[10].mxu0  ;;  %v979_v49 = vpop.f32.mrb[10].mxu1 }
  0xfc   : > { %v857_v50 = vpack.c.bf16 %v963_v48, %v962_v44  ;;  %v897_v51 = vpack.c.bf16 %v979_v49, %v978_v45  ;;  %v410_v52 = vpop.f32.mrb[11].mxu0  ;;  %v474_v53 = vpop.f32.mrb[11].mxu1 }
  0xfd   : > { %v852_v54 = vpack.c.bf16 %v410_v52, %v407_v46  ;;  %v892_v55 = vpack.c.bf16 %v474_v53, %v471_v47 }
  0xfe   : > { %913 = vst [vmem:[%s1110_s26 + $0x28] sm:$0xff] %v857_v50   ;;  %921 = vst [vmem:[%s1110_s26 + $0x68] sm:$0xff] %v897_v51  }
  0xff   : > { %912 = vst [vmem:[%s1110_s26 + $0x20] sm:$0xff] %v852_v54   ;;  %920 = vst [vmem:[%s1110_s26 + $0x60] sm:$0xff] %v892_v55  }
 0x101   : > { %v966_v56 = vpop.f32.mrb[12].mxu0  ;;  %v982_v57 = vpop.f32.mrb[12].mxu1 }
 0x102   : > { %v423_v58 = vpop.f32.mrb[13].mxu0  ;;  %v487_v59 = vpop.f32.mrb[13].mxu1 }
 0x103   : > { %v967_v60 = vpop.f32.mrb[14].mxu0  ;;  %v983_v61 = vpop.f32.mrb[14].mxu1 }
 0x104   : > { %v867_v62 = vpack.c.bf16 %v967_v60, %v966_v56  ;;  %v907_v63 = vpack.c.bf16 %v983_v61, %v982_v57  ;;  %v426_v0 = vpop.f32.mrb[15].mxu0  ;;  %v490_v1 = vpop.f32.mrb[15].mxu1 }
 0x105   : > { %v862_v2 = vpack.c.bf16 %v426_v0, %v423_v58  ;;  %v902_v3 = vpack.c.bf16 %v490_v1, %v487_v59 }
 0x106   : > { %915 = vst [vmem:[%s1110_s26 + $0x38] sm:$0xff] %v867_v62   ;;  %923 = vst [vmem:[%s1110_s26 + $0x78] sm:$0xff] %v907_v63  }
 0x107   : > { %914 = vst [vmem:[%s1110_s26 + $0x30] sm:$0xff] %v862_v2   ;;  %922 = vst [vmem:[%s1110_s26 + $0x70] sm:$0xff] %v902_v3  }
 0x108 PF: > { %s12_s9 = sadd.s32 1, %s1026_s9  }
 0x109   : > { %p9_p4 = scmp.ge.s32.totalorder %s12_s9, 4  }
 0x10b   :  { %11 = sbr.rel (!%p9_p4) target bundleno = 1 (0x1), region = 58 }

// kernel: gcn_forward.5
= control target key start
LH: loop header
LB: loop body
LE: loop exit
PB: predicated region body
PF: predicated region fallthrough
CT: control target
= control target key end

     0   :  { %s2741_s15 = smov 0   ;;  %s2743_s16 = smov 0   ;;  %s3082_s0 = inlined_call_operand.vmem [shape: bf16[512,512], index: 0, kind: input, shape index: {}]   ;;  %s3083_s1 = inlined_call_operand.vmem [shape: bf16[512,128], index: 1, kind: input, shape index: {}]   ;;  %s3084_s2 = inlined_call_operand.vmem [shape: f32[1,128], index: 2, kind: input, shape index: {}]   ;;  %s3085_s3 = inlined_call_operand.vmem [shape: bf16[128,128], index: 3, kind: input, shape index: {}]   ;;  %s3086_s4 = inlined_call_operand.vmem [shape: bf16[512,128], index: 4, kind: output, shape index: {}]  }
   0x1   :  { %s2745_s17 = smov 0  }
   0x2 LB: > { %s26_s18 = sadd.s32 1, %s2710_s16  ;;  %p1947_p0 = scmp.ge.s32.totalorder %s2714_s17, 1  ;;  %s2714_s17 = sphi %s2745_s17, %s14_s17   ;;  %s2710_s16 = sphi %s2743_s16, %s3088_s16   ;;  %s2706_s15 = sphi %s2741_s15, %s3087_s15  }
   0x3   : > { %p28_p1 = scmp.ge.s32.totalorder %s26_s18, 2  ;;  %p194_p2 = scmp.lt.s32.totalorder %s2714_s17, 3 }
   0x5   : > { %s3090_s18 = smov (%p28_p1, %s26_s18), 0  ;;  %p195_p3 = pnand %p1947_p0, %p194_p2 }
   0x6   : > { %v2556_v0 = vld [vmem:[%s3083_s1 + $0x40] sm:$0xff] (!%p195_p3)   ;;  %s1948_s21 = sshll.u32 (!%p195_p3), %s2706_s15, 5  ;;  %v2558_v2 = vld [vmem:[%s3083_s1 + $0x48] sm:$0xff] (!%p195_p3)   ;;  %v2560_v4 = vld [vmem:[%s3083_s1 + $0x50] sm:$0xff] (!%p195_p3)  }
   0x7   : > { %198 = sbr.rel (%p195_p3) target bundleno = 634 (0x27a), region = 36  ;;  %v2557_v1 = vld [vmem:[%s3083_s1] sm:$0xff] (!%p195_p3)   ;;  %2516 = vmatprep.subr.bf16.mxu1 (!%p195_p3), %v2556_v0  ;;  %2220 = vmatprep.subr.bf16.mxu0 (!%p195_p3), %v2556_v0  ;;  %v2559_v3 = vld [vmem:[%s3083_s1 + $0x8] sm:$0xff] (!%p195_p3)   ;;  %p232_p4 = scmp.lt.s32.totalorder (!%p195_p3), %s1948_s21, 63  ;;  %v2561_v5 = vld [vmem:[%s3083_s1 + $0x10] sm:$0xff] (!%p195_p3)  }
   0x8   : > { %2524 = vmatpush3.bf16.msra.mxu1 (!%p195_p3), %v2557_v1  ;;  %2221 = vmatpush3.bf16.msra.mxu0 (!%p195_p3), %v2557_v1  ;;  %v2562_v6 = vld [vmem:[%s3083_s1 + $0x58] sm:$0xff] (!%p195_p3)   ;;  %v2564_v8 = vld [vmem:[%s3083_s1 + $0x60] sm:$0xff] (!%p195_p3)   ;;  %v2566_v10 = vld [vmem:[%s3083_s1 + $0x68] sm:$0xff] (!%p195_p3)  }
   0x9   : > { %2517 = vmatprep.subr.bf16.mxu1 (!%p195_p3), %v2558_v2  ;;  %2222 = vmatprep.subr.bf16.mxu0 (!%p195_p3), %v2558_v2  ;;  %v2563_v7 = vld [vmem:[%s3083_s1 + $0x18] sm:$0xff] (!%p195_p3)   ;;  %v2565_v9 = vld [vmem:[%s3083_s1 + $0x20] sm:$0xff] (!%p195_p3)   ;;  %v2567_v12 = vld [vmem:[%s3083_s1 + $0x28] sm:$0xff] (!%p195_p3)  }
   0xa   : > { %v2568_v13 = vld [vmem:[%s3083_s1 + $0x70] sm:$0xff] (!%p195_p3)   ;;  %v2570_v15 = vld [vmem:[%s3083_s1 + $0x78] sm:$0xff] (!%p195_p3)   ;;  %v2575_v17 = vld [vmem:[%s3083_s1 + $0xc0] sm:$0xff] (!%p195_p3)  }
   0xb   : > { %v2569_v14 = vld [vmem:[%s3083_s1 + $0x30] sm:$0xff] (!%p195_p3)   ;;  %v2571_v16 = vld [vmem:[%s3083_s1 + $0x38] sm:$0xff] (!%p195_p3)   ;;  %v2576_v19 = vld [vmem:[%s3083_s1 + $0x80] sm:$0xff] (!%p195_p3)  }
   0xc   : > { %2525 = vmatpush3.bf16.msra.mxu1 (!%p195_p3), %v2559_v3  ;;  %2223 = vmatpush3.bf16.msra.mxu0 (!%p195_p3), %v2559_v3  ;;  %v2577_v21 = vld [vmem:[%s3083_s1 + $0xc8] sm:$0xff] (!%p195_p3)   ;;  %v2582_v24 = vld [vmem:[%s3083_s1 + $0xd0] sm:$0xff] (!%p195_p3)   ;;  %v2584_v28 = vld [vmem:[%s3083_s1 + $0xd8] sm:$0xff] (!%p195_p3)  }
   0xd   : > { %2518 = vmatprep.subr.bf16.mxu1 (!%p195_p3), %v2560_v4  ;;  %2224 = vmatprep.subr.bf16.mxu0 (!%p195_p3), %v2560_v4  ;;  %v2578_v22 = vld [vmem:[%s3083_s1 + $0x88] sm:$0xff] (!%p195_p3)   ;;  %v2583_v25 = vld [vmem:[%s3083_s1 + $0x90] sm:$0xff] (!%p195_p3)   ;;  %v2585_v31 = vld [vmem:[%s3083_s1 + $0x98] sm:$0xff] (!%p195_p3)  }
   0xe   : > { %s3092_s21 = smov (!%p232_p4, %s1948_s21), 63  ;;  %v2589_v33 = vld [vmem:[%s3083_s1 + $0xe0] sm:$0xff]   ;;  %v2591_v38 = vld [vmem:[%s3083_s1 + $0xe8] sm:$0xff]   ;;  %v2596_v41 = vld [vmem:[%s3083_s1 + $0xf0] sm:$0xff]  }
   0xf   : > { %s2092_s10 = sshll.u32 %s3092_s21, 4  ;;  %v2590_v36 = vld [vmem:[%s3083_s1 + $0xa0] sm:$0xff]   ;;  %v2592_v39 = vld [vmem:[%s3083_s1 + $0xa8] sm:$0xff]   ;;  %v2597_v44 = vld [vmem:[%s3083_s1 + $0xb0] sm:$0xff]   ;;  %s1952_s19 = sshll.u32 %s3092_s21, 2 }
  0x10   : > { %2526 = vmatpush3.bf16.msra.mxu1 %v2561_v5  ;;  %2225 = vmatpush3.bf16.msra.mxu0 %v2561_v5  ;;  %s2792_s15 = scalar_lea.vmem %s3082_s0, %s2092_s10  ;;  %v2598_v46 = vld [vmem:[%s3083_s1 + $0xf8] sm:$0xff]   ;;  %s3055_s23 = scalar_lea.vmem %s3086_s4, %s1952_s19 }
  0x11   : > { %2519 = vmatprep.subr.bf16.mxu1 %v2562_v6  ;;  %2226 = vmatprep.subr.bf16.mxu0 %v2562_v6  ;;  %v2574_v11 = vld [vmem:[%s2792_s15 + $0x184] ss:$16 sps:$4 sm:$0xff]   ;;  %v2572_v18 = vld [vmem:[%s2792_s15 + $0x180] ss:$16 sps:$4 sm:$0xff]   ;;  %v2605_v45 = vld [vmem:[%s2792_s15 + $0xc] ss:$16 sps:$4 sm:$0xff]  }
  0x12   : > { %1091 = vmatprep.mubr.bf16.mxu1 %v2574_v11  ;;  %v2579_v20 = vld [vmem:[%s2792_s15 + $0x1a4] ss:$16 sps:$4 sm:$0xff]   ;;  %v2581_v23 = vld [vmem:[%s2792_s15 + $0x1a0] ss:$16 sps:$4 sm:$0xff]   ;;  %v2599_v47 = vld [vmem:[%s3083_s1 + $0xb8] sm:$0xff]  }
  0x13   : > { %v2600_v26 = vld [vmem:[%s2792_s15] ss:$16 sps:$4 sm:$0xff]   ;;  %v2602_v27 = vld [vmem:[%s2792_s15 + $0x4] ss:$16 sps:$4 sm:$0xff]   ;;  %v2603_v48 = vld [vmem:[%s2792_s15 + $0x8] ss:$16 sps:$4 sm:$0xff]  }
  0x14   : > { %2527 = vmatpush3.bf16.msra.mxu1 %v2563_v7  ;;  %2227 = vmatpush3.bf16.msra.mxu0 %v2563_v7  ;;  %v2586_v29 = vld [vmem:[%s2792_s15 + $0x1c4] ss:$16 sps:$4 sm:$0xff]   ;;  %v2588_v32 = vld [vmem:[%s2792_s15 + $0x1c0] ss:$16 sps:$4 sm:$0xff]   ;;  %v2608_v51 = vld [vmem:[%s2792_s15 + $0x2c] ss:$16 sps:$4 sm:$0xff]  }
  0x15   : > { %2520 = vmatprep.subr.bf16.mxu1 %v2564_v8  ;;  %2228 = vmatprep.subr.bf16.mxu0 %v2564_v8  ;;  %v2606_v30 = vld [vmem:[%s2792_s15 + $0x24] ss:$16 sps:$4 sm:$0xff]   ;;  %v2610_v34 = vld [vmem:[%s2792_s15 + $0x20] ss:$16 sps:$4 sm:$0xff]   ;;  %v2611_v53 = vld [vmem:[%s2792_s15 + $0x28] ss:$16 sps:$4 sm:$0xff]  }
  0x16   : > { %995 = vmatprep.mubr.bf16.mxu0 %v2602_v27  ;;  %v2612_v35 = vld [vmem:[%s2792_s15 + $0x44] ss:$16 sps:$4 sm:$0xff]   ;;  %v2595_v40 = vld [vmem:[%s2792_s15 + $0x1e0] ss:$16 sps:$4 sm:$0xff]   ;;  %v2614_v55 = vld [vmem:[%s2792_s15 + $0x4c] ss:$16 sps:$4 sm:$0xff]  }
  0x17   : > { %v2593_v37 = vld [vmem:[%s2792_s15 + $0x1e4] ss:$16 sps:$4 sm:$0xff]   ;;  %v2616_v42 = vld [vmem:[%s2792_s15 + $0x40] ss:$16 sps:$4 sm:$0xff]   ;;  %v2617_v57 = vld [vmem:[%s2792_s15 + $0x48] ss:$16 sps:$4 sm:$0xff]  }
  0x18   : > { %2528 = vmatpush3.bf16.msra.mxu1 %v2565_v9  ;;  %2229 = vmatpush3.bf16.msra.mxu0 %v2565_v9  ;;  %v2618_v43 = vld [vmem:[%s2792_s15 + $0x64] ss:$16 sps:$4 sm:$0xff]   ;;  %v2622_v49 = vld [vmem:[%s2792_s15 + $0x60] ss:$16 sps:$4 sm:$0xff]   ;;  %v2620_v59 = vld [vmem:[%s2792_s15 + $0x6c] ss:$16 sps:$4 sm:$0xff]  }
  0x19   : > { %2521 = vmatprep.subr.bf16.mxu1 %v2566_v10  ;;  %2230 = vmatprep.subr.bf16.mxu0 %v2566_v10  ;;  %v2624_v50 = vld [vmem:[%s2792_s15 + $0x84] ss:$16 sps:$4 sm:$0xff]   ;;  %v2628_v52 = vld [vmem:[%s2792_s15 + $0x80] ss:$16 sps:$4 sm:$0xff]   ;;  %v2623_v61 = vld [vmem:[%s2792_s15 + $0x68] ss:$16 sps:$4 sm:$0xff]  }
  0x1a   : > { %v2630_v54 = vld [vmem:[%s2792_s15 + $0xa4] ss:$16 sps:$4 sm:$0xff]   ;;  %v2634_v56 = vld [vmem:[%s2792_s15 + $0xa0] ss:$16 sps:$4 sm:$0xff]   ;;  %v2626_v63 = vld [vmem:[%s2792_s15 + $0x8c] ss:$16 sps:$4 sm:$0xff]  }
  0x1b   : > { %v2636_v58 = vld [vmem:[%s2792_s15 + $0xc4] ss:$16 sps:$4 sm:$0xff]   ;;  %v2640_v60 = vld [vmem:[%s2792_s15 + $0xc0] ss:$16 sps:$4 sm:$0xff]   ;;  %v2629_v1 = vld [vmem:[%s2792_s15 + $0x88] ss:$16 sps:$4 sm:$0xff]  }
  0x1c   : > { %2529 = vmatpush3.bf16.msra.mxu1 %v2567_v12  ;;  %2231 = vmatpush3.bf16.msra.mxu0 %v2567_v12  ;;  %v2642_v62 = vld [vmem:[%s2792_s15 + $0xe4] ss:$16 sps:$4 sm:$0xff]   ;;  %v2646_v0 = vld [vmem:[%s2792_s15 + $0xe0] ss:$16 sps:$4 sm:$0xff]   ;;  %v2632_v3 = vld [vmem:[%s2792_s15 + $0xac] ss:$16 sps:$4 sm:$0xff]  }
  0x1d   : > { %2522 = vmatprep.subr.bf16.mxu1 %v2568_v13  ;;  %2232 = vmatprep.subr.bf16.mxu0 %v2568_v13  ;;  %v2648_v2 = vld [vmem:[%s2792_s15 + $0x104] ss:$16 sps:$4 sm:$0xff]   ;;  %v2652_v4 = vld [vmem:[%s2792_s15 + $0x100] ss:$16 sps:$4 sm:$0xff]   ;;  %v2635_v5 = vld [vmem:[%s2792_s15 + $0xa8] ss:$16 sps:$4 sm:$0xff]  }
  0x1e   : > { %v2654_v6 = vld [vmem:[%s2792_s15 + $0x124] ss:$16 sps:$4 sm:$0xff]   ;;  %v2638_v7 = vld [vmem:[%s2792_s15 + $0xcc] ss:$16 sps:$4 sm:$0xff]   ;;  %v2658_v8 = vld [vmem:[%s2792_s15 + $0x120] ss:$16 sps:$4 sm:$0xff]  }
  0x1f   : > { %v2641_v9 = vld [vmem:[%s2792_s15 + $0xc8] ss:$16 sps:$4 sm:$0xff]   ;;  %v2660_v10 = vld [vmem:[%s2792_s15 + $0x144] ss:$16 sps:$4 sm:$0xff]   ;;  %v2644_v11 = vld [vmem:[%s2792_s15 + $0xec] ss:$16 sps:$4 sm:$0xff]  }
  0x20   : > { %2530 = vmatpush3.bf16.msra.mxu1 %v2569_v14  ;;  %2233 = vmatpush3.bf16.msra.mxu0 %v2569_v14  ;;  %v2664_v12 = vld [vmem:[%s2792_s15 + $0x140] ss:$16 sps:$4 sm:$0xff]   ;;  %v2647_v13 = vld [vmem:[%s2792_s15 + $0xe8] ss:$16 sps:$4 sm:$0xff]   ;;  %v2666_v14 = vld [vmem:[%s2792_s15 + $0x164] ss:$16 sps:$4 sm:$0xff]  }
  0x21   : > { %2523 = vmatprep.subr.bf16.mxu1 %v2570_v15  ;;  %2234 = vmatprep.subr.bf16.mxu0 %v2570_v15  ;;  %v2650_v15 = vld [vmem:[%s2792_s15 + $0x10c] ss:$16 sps:$4 sm:$0xff]   ;;  %v2671_v27 = vld [vmem:[%s2792_s15 + $0x168] ss:$16 sps:$4 sm:$0xff]  }
  0x24   : > { %2531 = vmatpush3.bf16.msra.mxu1 %v2571_v16  ;;  %2235 = vmatpush3.bf16.msra.mxu0 %v2571_v16  ;;  %v2670_v16 = vld [vmem:[%s2792_s15 + $0x160] ss:$16 sps:$4 sm:$0xff]  }
  0x25   : > { %2332 = vmatprep.subr.bf16.mxu1 %v2575_v17  ;;  %v2653_v17 = vld [vmem:[%s2792_s15 + $0x108] ss:$16 sps:$4 sm:$0xff]  }
  0x27   : > { %1092 = vmatmul.mubr.bf16.vlgmr.msra.gmra.mrb[0].mxu1 %v2572_v18  ;;  %996 = vmatmul.mubr.bf16.vlgmr.msra.gmra.mrb[0].mxu0 %v2600_v26  ;;  %v2656_v18 = vld [vmem:[%s2792_s15 + $0x12c] ss:$16 sps:$4 sm:$0xff]  }
  0x28   : > { %2333 = vmatpush3.bf16.msra.mxu1 %v2576_v19  ;;  %1099 = vmatprep.mubr.bf16.mxu1 %v2579_v20  ;;  %v2684_v19 = vld [vmem:[%s3085_s3] sm:$0xff]   ;;  %v2659_v20 = vld [vmem:[%s2792_s15 + $0x128] ss:$16 sps:$4 sm:$0xff]  }
  0x29   : > { %2334 = vmatprep.subr.bf16.mxu1 %v2577_v21  ;;  %1003 = vmatprep.mubr.bf16.mxu0 %v2606_v30  ;;  %v2662_v21 = vld [vmem:[%s2792_s15 + $0x14c] ss:$16 sps:$4 sm:$0xff]  }
  0x2a   : > { %2468 = vmatprep.subr.bf16.mxu0 %v2684_v19  ;;  %v2687_v26 = vld [vmem:[%s3085_s3 + $0x18] sm:$0xff]   ;;  %v2689_v30 = vld [vmem:[%s3085_s3 + $0x28] sm:$0xff]  }
  0x2b   : > { %2469 = vmatpush3.bf16.msra.mxu0 %v2684_v19 }
  0x2c   : > { %2335 = vmatpush3.bf16.msra.mxu1 %v2578_v22  ;;  %v2685_v22 = vld [vmem:[%s3085_s3 + $0x8] sm:$0xff]  }
  0x2d   : > { %2336 = vmatprep.subr.bf16.mxu1 %v2582_v24  ;;  %v2668_v24 = vld [vmem:[%s2792_s15 + $0x16c] ss:$16 sps:$4 sm:$0xff]   ;;  %2470 = vmatprep.subr.bf16.mxu0 %v2685_v22 }
  0x2f   : > { %1100 = vmatmul.mubr.bf16.gmra.mrb[4].mxu1 %v2581_v23  ;;  %1004 = vmatmul.mubr.bf16.gmra.mrb[4].mxu0 %v2610_v34  ;;  %v2665_v23 = vld [vmem:[%s2792_s15 + $0x148] ss:$16 sps:$4 sm:$0xff]  }
  0x30   : > { %2337 = vmatpush3.bf16.msra.mxu1 %v2583_v25  ;;  %1107 = vmatprep.mubr.bf16.mxu1 %v2586_v29  ;;  %v2686_v25 = vld [vmem:[%s3085_s3 + $0x10] sm:$0xff]   ;;  %v2688_v29 = vld [vmem:[%s3085_s3 + $0x20] sm:$0xff]   ;;  %v2691_v34 = vld [vmem:[%s3085_s3 + $0x38] sm:$0xff]  }
  0x31   : > { %2338 = vmatprep.subr.bf16.mxu1 %v2584_v28  ;;  %1011 = vmatprep.mubr.bf16.mxu0 %v2612_v35  ;;  %v2672_v28 = vld [vmem:[%s2792_s15 + $0x18c] ss:$16 sps:$4 sm:$0xff]   ;;  %v2677_v35 = vld [vmem:[%s2792_s15 + $0x1a8] ss:$16 sps:$4 sm:$0xff]  }
  0x32   : > { %2471 = vmatpush3.bf16.msra.mxu0 %v2685_v22 }
  0x33   : > { %2472 = vmatprep.subr.bf16.mxu0 %v2686_v25 }
  0x34   : > { %2339 = vmatpush3.bf16.msra.mxu1 %v2585_v31  ;;  %v2674_v31 = vld [vmem:[%s2792_s15 + $0x188] ss:$16 sps:$4 sm:$0xff]  }
  0x35   : > { %2340 = vmatprep.subr.bf16.mxu1 %v2589_v33  ;;  %v2690_v33 = vld [vmem:[%s3085_s3 + $0x30] sm:$0xff]  }
  0x36   : > { %2473 = vmatpush3.bf16.msra.mxu0 %v2686_v25 }
  0x37   : > { %1108 = vmatmul.mubr.bf16.gmra.mrb[8].mxu1 %v2588_v32  ;;  %1012 = vmatmul.mubr.bf16.gmra.mrb[8].mxu0 %v2616_v42  ;;  %v2675_v32 = vld [vmem:[%s2792_s15 + $0x1ac] ss:$16 sps:$4 sm:$0xff]  }
  0x38   : > { %2341 = vmatpush3.bf16.msra.mxu1 %v2590_v36  ;;  %1115 = vmatprep.mubr.bf16.mxu1 %v2593_v37  ;;  %v2678_v36 = vld [vmem:[%s2792_s15 + $0x1cc] ss:$16 sps:$4 sm:$0xff]   ;;  %v2680_v37 = vld [vmem:[%s2792_s15 + $0x1c8] ss:$16 sps:$4 sm:$0xff]  }
  0x39   : > { %2342 = vmatprep.subr.bf16.mxu1 %v2591_v38  ;;  %1019 = vmatprep.mubr.bf16.mxu0 %v2618_v43  ;;  %v2681_v38 = vld [vmem:[%s2792_s15 + $0x1ec] ss:$16 sps:$4 sm:$0xff]  }
  0x3a   : > { %2474 = vmatprep.subr.bf16.mxu0 %v2687_v26 }
  0x3b   : > { %2475 = vmatpush3.bf16.msra.mxu0 %v2687_v26 }
  0x3c   : > { %2343 = vmatpush3.bf16.msra.mxu1 %v2592_v39  ;;  %2476 = vmatprep.subr.bf16.mxu0 %v2688_v29  ;;  %v2683_v39 = vld [vmem:[%s2792_s15 + $0x1e8] ss:$16 sps:$4 sm:$0xff]  }
  0x3d   : > { %2344 = vmatprep.subr.bf16.mxu1 %v2596_v41 }
  0x3f   : > { %1116 = vmatmul.mubr.bf16.gmra.mrb[12].mxu1 %v2595_v40  ;;  %1020 = vmatmul.mubr.bf16.gmra.mrb[12].mxu0 %v2622_v49 }
  0x40   : > { %2345 = vmatpush3.bf16.msra.mxu1 %v2597_v44  ;;  %1156 = vmatprep.mubr.bf16.mxu1 %v2605_v45 }
  0x41   : > { %2346 = vmatprep.subr.bf16.mxu1 %v2598_v46  ;;  %1027 = vmatprep.mubr.bf16.mxu0 %v2624_v50 }
  0x42   : > { %2477 = vmatpush3.bf16.msra.mxu0 %v2688_v29 }
  0x43   : > { %2478 = vmatprep.subr.bf16.mxu0 %v2689_v30 }
  0x44   : > { %2347 = vmatpush3.bf16.msra.mxu1 %v2599_v47 }
  0x46   : > { %2479 = vmatpush3.bf16.msra.mxu0 %v2689_v30 }
  0x47   : > { %1157 = vmatmul.mubr.bf16.vlgmr.msra.gmra.mrb[16].mxu1 %v2603_v48  ;;  %1028 = vmatmul.mubr.bf16.gmra.mrb[16].mxu0 %v2628_v52 }
  0x48   : > { %1164 = vmatprep.mubr.bf16.mxu1 %v2608_v51  ;;  %1035 = vmatprep.mubr.bf16.mxu0 %v2630_v54 }
  0x49   : > { %2480 = vmatprep.subr.bf16.mxu0 %v2690_v33 }
  0x4a   : > { %2481 = vmatpush3.bf16.msra.mxu0 %v2690_v33 }
  0x4b   : > { %2482 = vmatprep.subr.bf16.mxu0 %v2691_v34 }
  0x4e   : > { %2483 = vmatpush3.bf16.msra.mxu0 %v2691_v34 }
  0x4f   : > { %1165 = vmatmul.mubr.bf16.gmra.mrb[20].mxu1 %v2611_v53  ;;  %1036 = vmatmul.mubr.bf16.gmra.mrb[20].mxu0 %v2634_v56 }
  0x50   : > { %1172 = vmatprep.mubr.bf16.mxu1 %v2614_v55  ;;  %1043 = vmatprep.mubr.bf16.mxu0 %v2636_v58 }
  0x57   : > { %1173 = vmatmul.mubr.bf16.gmra.mrb[24].mxu1 %v2617_v57  ;;  %1044 = vmatmul.mubr.bf16.gmra.mrb[24].mxu0 %v2640_v60 }
  0x58   : > { %1180 = vmatprep.mubr.bf16.mxu1 %v2620_v59  ;;  %1051 = vmatprep.mubr.bf16.mxu0 %v2642_v62 }
  0x5f   : > { %1181 = vmatmul.mubr.bf16.gmra.mrb[28].mxu1 %v2623_v61  ;;  %1052 = vmatmul.mubr.bf16.gmra.mrb[28].mxu0 %v2646_v0 }
  0x60   : > { %1188 = vmatprep.mubr.bf16.mxu1 %v2626_v63  ;;  %1059 = vmatprep.mubr.bf16.mxu0 %v2648_v2 }
  0x67   : > { %1189 = vmatmul.mubr.bf16.gmra.mrb[32].mxu1 %v2629_v1  ;;  %1060 = vmatmul.mubr.bf16.gmra.mrb[32].mxu0 %v2652_v4 }
  0x68   : > { %1196 = vmatprep.mubr.bf16.mxu1 %v2632_v3  ;;  %1067 = vmatprep.mubr.bf16.mxu0 %v2654_v6 }
  0x6f   : > { %1197 = vmatmul.mubr.bf16.gmra.mrb[36].mxu1 %v2635_v5  ;;  %1068 = vmatmul.mubr.bf16.gmra.mrb[36].mxu0 %v2658_v8 }
  0x70   : > { %1204 = vmatprep.mubr.bf16.mxu1 %v2638_v7  ;;  %1075 = vmatprep.mubr.bf16.mxu0 %v2660_v10 }
  0x77   : > { %1205 = vmatmul.mubr.bf16.gmra.mrb[40].mxu1 %v2641_v9  ;;  %1076 = vmatmul.mubr.bf16.gmra.mrb[40].mxu0 %v2664_v12 }
  0x78   : > { %1212 = vmatprep.mubr.bf16.mxu1 %v2644_v11  ;;  %1083 = vmatprep.mubr.bf16.mxu0 %v2666_v14 }
  0x7f   : > { %1213 = vmatmul.mubr.bf16.gmra.mrb[44].mxu1 %v2647_v13  ;;  %1084 = vmatmul.mubr.bf16.gmra.mrb[44].mxu0 %v2670_v16 }
  0x80   : > { %1220 = vmatprep.mubr.bf16.mxu1 %v2650_v15 }
  0x87   : > { %1221 = vmatmul.mubr.bf16.gmra.mrb[48].mxu1 %v2653_v17 }
  0x88   : > { %1228 = vmatprep.mubr.bf16.mxu1 %v2656_v18 }
  0x8f   : > { %1229 = vmatmul.mubr.bf16.gmra.mrb[52].mxu1 %v2659_v20 }
  0x90   : > { %1236 = vmatprep.mubr.bf16.mxu1 %v2662_v21 }
  0x97   : > { %1237 = vmatmul.mubr.bf16.gmra.mrb[56].mxu1 %v2665_v23 }
  0x98   : > { %1244 = vmatprep.mubr.bf16.mxu1 %v2668_v24 }
  0x9f   : > { %1245 = vmatmul.mubr.bf16.gmra.mrb[60].mxu1 %v2671_v27  ;;  %v2972_v27 = vld [vmem:[%s3084_s2] ss:$0 sm:$0xff] }
  0xa0   : > { %1252 = vmatprep.mubr.bf16.mxu1 %v2672_v28 }
  0xa7   : > { %1253 = vmatmul.mubr.bf16.gmra.mrb[64].mxu1 %v2674_v31 }
  0xa8   : > { %1260 = vmatprep.mubr.bf16.mxu1 %v2675_v32 }
  0xaf   : > { %1261 = vmatmul.mubr.bf16.gmra.mrb[68].mxu1 %v2677_v35 }
  0xb0   : > { %1268 = vmatprep.mubr.bf16.mxu1 %v2678_v36 }
  0xb7   : > { %1269 = vmatmul.mubr.bf16.gmra.mrb[72].mxu1 %v2680_v37 }
  0xb8   : > { %1276 = vmatprep.mubr.bf16.mxu1 %v2681_v38 }
  0xbf   : > { %1277 = vmatmul.mubr.bf16.gmra.mrb[76].mxu1 %v2683_v39 }
  0xfa   : > { %v2308_v40 = vpop.f32.mrb[0].mxu1  ;;  %v2236_v46 = vpop.f32.mrb[0].mxu0 }
  0xfb   : > { %v2309_v41 = vpop.f32.mrb[1].mxu1  ;;  %v2237_v48 = vpop.f32.mrb[1].mxu0 }
  0xfc   : > { %v2951_v42 = vadd.f32 %v2309_v41, %v2308_v40  ;;  %v2311_v43 = vpop.f32.mrb[2].mxu1  ;;  %v2238_v50 = vadd.f32 %v2237_v48, %v2236_v46  ;;  %v2239_v51 = vpop.f32.mrb[2].mxu0 }
  0xfd   : > { %v2312_v44 = vpop.f32.mrb[3].mxu1  ;;  %v2240_v54 = vpop.f32.mrb[3].mxu0 }
  0xfe   : > { %v2953_v45 = vadd.f32 %v2312_v44, %v2311_v43  ;;  %v2241_v56 = vadd.f32 %v2240_v54, %v2239_v51 }
 0x102   : > { %v2314_v47 = vpop.f32.mrb[4].mxu1  ;;  %v2242_v58 = vpop.f32.mrb[4].mxu0 }
 0x103   : > { %v2315_v49 = vpop.f32.mrb[5].mxu1  ;;  %v2243_v60 = vpop.f32.mrb[5].mxu0 }
 0x104   : > { %v2955_v52 = vadd.f32 %v2315_v49, %v2314_v47  ;;  %v2317_v53 = vpop.f32.mrb[6].mxu1  ;;  %v2244_v62 = vadd.f32 %v2243_v60, %v2242_v58  ;;  %v2245_v63 = vpop.f32.mrb[6].mxu0 }
 0x105   : > { %v2318_v55 = vpop.f32.mrb[7].mxu1  ;;  %v2246_v2 = vpop.f32.mrb[7].mxu0 }
 0x106   : > { %v2957_v57 = vadd.f32 %v2318_v55, %v2317_v53  ;;  %v2247_v4 = vadd.f32 %v2246_v2, %v2245_v63 }
 0x10a   : > { %v2320_v59 = vpop.f32.mrb[8].mxu1  ;;  %v2248_v6 = vpop.f32.mrb[8].mxu0 }
 0x10b   : > { %v2321_v61 = vpop.f32.mrb[9].mxu1  ;;  %v2249_v8 = vpop.f32.mrb[9].mxu0 }
 0x10c   : > { %v2959_v0 = vadd.f32 %v2321_v61, %v2320_v59  ;;  %v2323_v1 = vpop.f32.mrb[10].mxu1  ;;  %v2250_v10 = vadd.f32 %v2249_v8, %v2248_v6  ;;  %v2251_v11 = vpop.f32.mrb[10].mxu0 }
 0x10d   : > { %v2324_v3 = vpop.f32.mrb[11].mxu1  ;;  %v2252_v14 = vpop.f32.mrb[11].mxu0 }
 0x10e   : > { %v2961_v5 = vadd.f32 %v2324_v3, %v2323_v1  ;;  %v2253_v16 = vadd.f32 %v2252_v14, %v2251_v11 }
 0x112   : > { %v2326_v7 = vpop.f32.mrb[12].mxu1  ;;  %v2254_v18 = vpop.f32.mrb[12].mxu0 }
 0x113   : > { %v2327_v9 = vpop.f32.mrb[13].mxu1  ;;  %v2255_v20 = vpop.f32.mrb[13].mxu0 }
 0x114   : > { %v2963_v12 = vadd.f32 %v2327_v9, %v2326_v7  ;;  %v2329_v13 = vpop.f32.mrb[14].mxu1  ;;  %v2967_v22 = vadd.f32 %v2255_v20, %v2254_v18  ;;  %v2257_v23 = vpop.f32.mrb[14].mxu0 }
 0x115   : > { %v2330_v15 = vpop.f32.mrb[15].mxu1  ;;  %v2258_v26 = vpop.f32.mrb[15].mxu0 }
 0x116   : > { %v2965_v17 = vadd.f32 %v2330_v15, %v2329_v13  ;;  %v2974_v29 = vadd.f32 %v2258_v26, %v2257_v23 }
 0x11a   : > { %v2348_v19 = vpop.f32.mrb[16].mxu1  ;;  %v2260_v34 = vpop.f32.mrb[16].mxu0 }
 0x11b   : > { %v2349_v21 = vpop.f32.mrb[17].mxu1  ;;  %v2261_v37 = vpop.f32.mrb[17].mxu0 }
 0x11c   : > { %v2350_v24 = vadd.f32 %v2349_v21, %v2348_v19  ;;  %v2351_v25 = vpop.f32.mrb[18].mxu1  ;;  %v2978_v39 = vadd.f32 %v2261_v37, %v2260_v34  ;;  %v2263_v40 = vpop.f32.mrb[18].mxu0 }
 0x11d   : > { %v2352_v28 = vpop.f32.mrb[19].mxu1  ;;  %v2264_v47 = vpop.f32.mrb[19].mxu0 }
 0x11e   : > { %v1159_v30 = vadd.f32 %v2350_v24, %v2238_v50  ;;  %v2353_v31 = vadd.f32 %v2352_v28, %v2351_v25  ;;  %v2980_v49 = vadd.f32 %v2264_v47, %v2263_v40 }
 0x120   : > { %v1391_v32 = vadd.f32 %v2972_v27, %v1159_v30  ;;  %v1162_v33 = vadd.f32 %v2353_v31, %v2241_v56 }
 0x122   : > { %v1392_v35 = vadd.f32 %v2972_v27, %v1162_v33  ;;  %v2354_v36 = vpop.f32.mrb[20].mxu1  ;;  %v1423_v41 = vmax.f32 %v1391_v32, 0.0  ;;  %v2266_v56 = vpop.f32.mrb[20].mxu0 }
 0x123   : > { %v2355_v38 = vpop.f32.mrb[21].mxu1  ;;  %v2267_v60 = vpop.f32.mrb[21].mxu0 }
 0x124   : > { %v1424_v43 = vmax.f32 %v1392_v35, 0.0  ;;  %v2356_v44 = vadd.f32 %v2355_v38, %v2354_v36  ;;  %v2357_v46 = vpop.f32.mrb[22].mxu1  ;;  %v2984_v63 = vadd.f32 %v2267_v60, %v2266_v56  ;;  %v2269_v1 = vpop.f32.mrb[22].mxu0 }
 0x125   : > { %v2358_v48 = vpop.f32.mrb[23].mxu1 }
 0x126   : > { %v1167_v50 = vadd.f32 %v2356_v44, %v2244_v62  ;;  %v2359_v51 = vadd.f32 %v2358_v48, %v2357_v46  ;;  %v1455_v53 = vpack.c.bf16 %v1424_v43, %v1423_v41  ;;  %v2270_v62 = vpop.f32.mrb[23].mxu0 }
 0x127   : > { %v2986_v9 = vadd.f32 %v2270_v62, %v2269_v1 }
 0x128   : > { %v1393_v54 = vadd.f32 %v2972_v27, %v1167_v50  ;;  %v1170_v55 = vadd.f32 %v2359_v51, %v2247_v4  ;;  %2484 = vmatprep.mubr.bf16.mxu0 %v1455_v53 }
 0x12a   : > { %v1394_v58 = vadd.f32 %v2972_v27, %v1170_v55  ;;  %v2360_v59 = vpop.f32.mrb[24].mxu1  ;;  %v1425_v2 = vmax.f32 %v1393_v54, 0.0  ;;  %v2272_v18 = vpop.f32.mrb[24].mxu0 }
 0x12b   : > { %v2361_v61 = vpop.f32.mrb[25].mxu1  ;;  %v2273_v21 = vpop.f32.mrb[25].mxu0 }
 0x12c   : > { %v1426_v3 = vmax.f32 %v1394_v58, 0.0  ;;  %v2362_v6 = vadd.f32 %v2361_v61, %v2360_v59  ;;  %v2363_v7 = vpop.f32.mrb[26].mxu1  ;;  %v2990_v24 = vadd.f32 %v2273_v21, %v2272_v18  ;;  %v2275_v25 = vpop.f32.mrb[26].mxu0 }
 0x12d   : > { %v2364_v8 = vpop.f32.mrb[27].mxu1  ;;  %v2276_v32 = vpop.f32.mrb[27].mxu0 }
 0x12e   : > { %v1456_v11 = vpack.c.bf16 %v1426_v3, %v1425_v2  ;;  %v1175_v4 = vadd.f32 %v2362_v6, %v2250_v10  ;;  %v2365_v13 = vadd.f32 %v2364_v8, %v2363_v7  ;;  %v2992_v33 = vadd.f32 %v2276_v32, %v2275_v25 }
 0x130   : > { %v1395_v14 = vadd.f32 %v2972_v27, %v1175_v4  ;;  %v1178_v15 = vadd.f32 %v2365_v13, %v2253_v16  ;;  %2485 = vmatmul.mubr.bf16.vlgmr.msra.gmra.mrb[48].mxu0 %v1456_v11 }
 0x132   : > { %v1396_v19 = vadd.f32 %v2972_v27, %v1178_v15  ;;  %v2366_v20 = vpop.f32.mrb[28].mxu1  ;;  %v1427_v26 = vmax.f32 %v1395_v14, 0.0  ;;  %v2278_v38 = vpop.f32.mrb[28].mxu0 }
 0x133   : > { %v2367_v23 = vpop.f32.mrb[29].mxu1  ;;  %v2279_v43 = vpop.f32.mrb[29].mxu0 }
 0x134   : > { %v1428_v28 = vmax.f32 %v1396_v19, 0.0  ;;  %v2368_v30 = vadd.f32 %v2367_v23, %v2366_v20  ;;  %v2369_v31 = vpop.f32.mrb[30].mxu1  ;;  %v2998_v46 = vadd.f32 %v2279_v43, %v2278_v38  ;;  %v2281_v47 = vpop.f32.mrb[30].mxu0 }
 0x135   : > { %v2370_v10 = vpop.f32.mrb[31].mxu1  ;;  %v2282_v53 = vpop.f32.mrb[31].mxu0 }
 0x136   : > { %v1183_v16 = vadd.f32 %v2368_v30, %v2967_v22  ;;  %v2371_v34 = vadd.f32 %v2370_v10, %v2369_v31  ;;  %v1457_v35 = vpack.c.bf16 %v1428_v28, %v1427_v26  ;;  %v3000_v55 = vadd.f32 %v2282_v53, %v2281_v47 }
 0x138   : > { %v1397_v36 = vadd.f32 %v2972_v27, %v1183_v16  ;;  %v1186_v37 = vadd.f32 %v2371_v34, %v2974_v29  ;;  %2488 = vmatprep.mubr.bf16.mxu0 %v1457_v35 }
 0x13a   : > { %v1398_v40 = vadd.f32 %v2972_v27, %v1186_v37  ;;  %v2372_v41 = vpop.f32.mrb[32].mxu1  ;;  %v1429_v48 = vmax.f32 %v1397_v36, 0.0  ;;  %v2284_v61 = vpop.f32.mrb[32].mxu0 }
 0x13b   : > { %v2373_v44 = vpop.f32.mrb[33].mxu1  ;;  %v2285_v3 = vpop.f32.mrb[33].mxu0 }
 0x13c   : > { %v1430_v50 = vmax.f32 %v1398_v40, 0.0  ;;  %v2374_v51 = vadd.f32 %v2373_v44, %v2372_v41  ;;  %v2375_v22 = vpop.f32.mrb[34].mxu1  ;;  %v3006_v7 = vadd.f32 %v2285_v3, %v2284_v61  ;;  %v2287_v62 = vpop.f32.mrb[34].mxu0 }
 0x13d   : > { %v2376_v54 = vpop.f32.mrb[35].mxu1  ;;  %v2288_v13 = vpop.f32.mrb[35].mxu0 }
 0x13e   : > { %v1191_v29 = vadd.f32 %v2374_v51, %v2978_v39  ;;  %v2377_v56 = vadd.f32 %v2376_v54, %v2375_v22  ;;  %v1458_v58 = vpack.c.bf16 %v1430_v50, %v1429_v48  ;;  %v3008_v15 = vadd.f32 %v2288_v13, %v2287_v62 }
 0x140   : > { %v1399_v59 = vadd.f32 %v2972_v27, %v1191_v29  ;;  %v1194_v60 = vadd.f32 %v2377_v56, %v2980_v49  ;;  %2489 = vmatmul.mubr.bf16.gmra.mrb[52].mxu0 %v1458_v58 }
 0x142   : > { %v1400_v1 = vadd.f32 %v2972_v27, %v1194_v60  ;;  %v2378_v2 = vpop.f32.mrb[36].mxu1  ;;  %v1431_v8 = vmax.f32 %v1399_v59, 0.0  ;;  %v2290_v23 = vpop.f32.mrb[36].mxu0 }
 0x143   : > { %v2379_v6 = vpop.f32.mrb[37].mxu1  ;;  %v2291_v28 = vpop.f32.mrb[37].mxu0 }
 0x144   : > { %v1432_v11 = vmax.f32 %v1400_v1, 0.0  ;;  %v2380_v4 = vadd.f32 %v2379_v6, %v2378_v2  ;;  %v2381_v39 = vpop.f32.mrb[38].mxu1  ;;  %v3014_v31 = vadd.f32 %v2291_v28, %v2290_v23  ;;  %v2293_v32 = vpop.f32.mrb[38].mxu0 }
 0x145   : > { %v2382_v14 = vpop.f32.mrb[39].mxu1  ;;  %v2294_v35 = vpop.f32.mrb[39].mxu0 }
 0x146   : > { %v1199_v49 = vadd.f32 %v2380_v4, %v2984_v63  ;;  %v2383_v18 = vadd.f32 %v2382_v14, %v2381_v39  ;;  %v1459_v19 = vpack.c.bf16 %v1432_v11, %v1431_v8  ;;  %v2295_v37 = vadd.f32 %v2294_v35, %v2293_v32 }
 0x148   : > { %v1401_v20 = vadd.f32 %v2972_v27, %v1199_v49  ;;  %v1202_v21 = vadd.f32 %v2383_v18, %v2986_v9  ;;  %2492 = vmatprep.mubr.bf16.mxu0 %v1459_v19 }
 0x14a   : > { %v1402_v25 = vadd.f32 %v2972_v27, %v1202_v21  ;;  %v2384_v26 = vpop.f32.mrb[40].mxu1  ;;  %v1433_v10 = vmax.f32 %v1401_v20, 0.0  ;;  %v2296_v44 = vpop.f32.mrb[40].mxu0 }
 0x14b   : > { %v2385_v30 = vpop.f32.mrb[41].mxu1  ;;  %v2297_v50 = vpop.f32.mrb[41].mxu0 }
 0x14c   : > { %v1434_v16 = vmax.f32 %v1402_v25, 0.0  ;;  %v2386_v34 = vadd.f32 %v2385_v30, %v2384_v26  ;;  %v2387_v63 = vpop.f32.mrb[42].mxu1  ;;  %v2298_v22 = vadd.f32 %v2297_v50, %v2296_v44  ;;  %v2299_v53 = vpop.f32.mrb[42].mxu0 }
 0x14d   : > { %v2388_v36 = vpop.f32.mrb[43].mxu1 }
 0x14e   : > { %v1207_v38 = vadd.f32 %v2386_v34, %v2990_v24  ;;  %v2389_v9 = vadd.f32 %v2388_v36, %v2387_v63  ;;  %v1460_v40 = vpack.c.bf16 %v1434_v16, %v1433_v10  ;;  %v2300_v24 = vpop.f32.mrb[43].mxu0 }
 0x14f   : > { %v2301_v60 = vadd.f32 %v2300_v24, %v2299_v53 }
 0x150   : > { %v1403_v41 = vadd.f32 %v2972_v27, %v1207_v38  ;;  %v1210_v43 = vadd.f32 %v2389_v9, %v2992_v33  ;;  %2493 = vmatmul.mubr.bf16.gmra.mrb[56].mxu0 %v1460_v40 }
 0x152   : > { %v1404_v47 = vadd.f32 %v2972_v27, %v1210_v43  ;;  %v2390_v48 = vpop.f32.mrb[44].mxu1  ;;  %v1435_v54 = vmax.f32 %v1403_v41, 0.0  ;;  %v2302_v6 = vpop.f32.mrb[44].mxu0 }
 0x153   : > { %v2391_v51 = vpop.f32.mrb[45].mxu1  ;;  %v2303_v11 = vpop.f32.mrb[45].mxu0 }
 0x154   : > { %v1436_v29 = vmax.f32 %v1404_v47, 0.0  ;;  %v2392_v56 = vadd.f32 %v2391_v51, %v2390_v48  ;;  %v2393_v58 = vpop.f32.mrb[46].mxu1  ;;  %v2304_v39 = vadd.f32 %v2303_v11, %v2302_v6  ;;  %v2305_v13 = vpop.f32.mrb[46].mxu0 }
 0x155   : > { %v2394_v59 = vpop.f32.mrb[47].mxu1 }
 0x156   : > { %v1215_v61 = vadd.f32 %v2392_v56, %v2998_v46  ;;  %v2395_v1 = vadd.f32 %v2394_v59, %v2393_v58  ;;  %v1461_v33 = vpack.c.bf16 %v1436_v29, %v1435_v54  ;;  %v2306_v46 = vpop.f32.mrb[47].mxu0 }
 0x157   : > { %v2307_v21 = vadd.f32 %v2306_v46, %v2305_v13 }
 0x158   : > { %v1405_v2 = vadd.f32 %v2972_v27, %v1215_v61  ;;  %v1218_v3 = vadd.f32 %v2395_v1, %v3000_v55  ;;  %2496 = vmatprep.mubr.bf16.mxu0 %v1461_v33 }
 0x15a   : > { %v1406_v62 = vadd.f32 %v2972_v27, %v1218_v3  ;;  %v2396_v8 = vpop.f32.mrb[48].mxu1  ;;  %v1437_v14 = vmax.f32 %v1405_v2, 0.0 }
 0x15b   : > { %v2397_v4 = vpop.f32.mrb[49].mxu1 }
 0x15c   : > { %v1438_v49 = vmax.f32 %v1406_v62, 0.0  ;;  %v2398_v18 = vadd.f32 %v2397_v4, %v2396_v8  ;;  %v2399_v19 = vpop.f32.mrb[50].mxu1 }
 0x15d   : > { %v2400_v20 = vpop.f32.mrb[51].mxu1 }
 0x15e   : > { %v1223_v23 = vadd.f32 %v2398_v18, %v3006_v7  ;;  %v2401_v25 = vadd.f32 %v2400_v20, %v2399_v19  ;;  %v1462_v55 = vpack.c.bf16 %v1438_v49, %v1437_v14 }
 0x160   : > { %v1407_v26 = vadd.f32 %v2972_v27, %v1223_v23  ;;  %v1226_v28 = vadd.f32 %v2401_v25, %v3008_v15  ;;  %2497 = vmatmul.mubr.bf16.gmra.mrb[60].mxu0 %v1462_v55 }
 0x162   : > { %v1408_v30 = vadd.f32 %v2972_v27, %v1226_v28  ;;  %v2402_v32 = vpop.f32.mrb[52].mxu1  ;;  %v1439_v16 = vmax.f32 %v1407_v26, 0.0 }
 0x163   : > { %v2403_v10 = vpop.f32.mrb[53].mxu1 }
 0x164   : > { %v1440_v34 = vmax.f32 %v1408_v30, 0.0  ;;  %v2404_v63 = vadd.f32 %v2403_v10, %v2402_v32  ;;  %v2405_v35 = vpop.f32.mrb[54].mxu1 }
 0x165   : > { %v2406_v36 = vpop.f32.mrb[55].mxu1 }
 0x166   : > { %v1231_v38 = vadd.f32 %v2404_v63, %v3014_v31  ;;  %v2407_v9 = vadd.f32 %v2406_v36, %v2405_v35  ;;  %v1463_v7 = vpack.c.bf16 %v1440_v34, %v1439_v16 }
 0x168   : > { %v1409_v40 = vadd.f32 %v2972_v27, %v1231_v38  ;;  %v1234_v41 = vadd.f32 %v2407_v9, %v2295_v37  ;;  %2500 = vmatprep.mubr.bf16.mxu0 %v1463_v7 }
 0x16a   : > { %v1410_v15 = vadd.f32 %v2972_v27, %v1234_v41  ;;  %v2408_v43 = vpop.f32.mrb[56].mxu1  ;;  %v1441_v47 = vmax.f32 %v1409_v40, 0.0 }
 0x16b   : > { %v2409_v44 = vpop.f32.mrb[57].mxu1 }
 0x16c   : > { %v1442_v48 = vmax.f32 %v1410_v15, 0.0  ;;  %v2410_v50 = vadd.f32 %v2409_v44, %v2408_v43  ;;  %v2411_v51 = vpop.f32.mrb[58].mxu1 }
 0x16d   : > { %v2412_v53 = vpop.f32.mrb[59].mxu1 }
 0x16e   : > { %v1239_v54 = vadd.f32 %v2410_v50, %v2298_v22  ;;  %v2413_v29 = vadd.f32 %v2412_v53, %v2411_v51  ;;  %v1464_v56 = vpack.c.bf16 %v1442_v48, %v1441_v47 }
 0x170   : > { %v1411_v31 = vadd.f32 %v2972_v27, %v1239_v54  ;;  %v1242_v58 = vadd.f32 %v2413_v29, %v2301_v60  ;;  %2501 = vmatmul.mubr.bf16.gmra.mrb[64].mxu0 %v1464_v56 }
 0x172   : > { %v1412_v24 = vadd.f32 %v2972_v27, %v1242_v58  ;;  %v2414_v37 = vpop.f32.mrb[60].mxu1  ;;  %v1443_v61 = vmax.f32 %v1411_v31, 0.0 }
 0x173   : > { %v2415_v59 = vpop.f32.mrb[61].mxu1 }
 0x174   : > { %v1444_v1 = vmax.f32 %v1412_v24, 0.0  ;;  %v2416_v33 = vadd.f32 %v2415_v59, %v2414_v37  ;;  %v2417_v2 = vpop.f32.mrb[62].mxu1 }
 0x175   : > { %v2418_v3 = vpop.f32.mrb[63].mxu1 }
 0x176   : > { %v1247_v6 = vadd.f32 %v2416_v33, %v2304_v39  ;;  %v2419_v62 = vadd.f32 %v2418_v3, %v2417_v2  ;;  %v1465_v8 = vpack.c.bf16 %v1444_v1, %v1443_v61 }
 0x178   : > { %v1413_v22 = vadd.f32 %v2972_v27, %v1247_v6  ;;  %v1250_v11 = vadd.f32 %v2419_v62, %v2307_v21  ;;  %2504 = vmatprep.mubr.bf16.mxu0 %v1465_v8 }
 0x17a   : > { %v1414_v4 = vadd.f32 %v2972_v27, %v1250_v11  ;;  %v2420_v60 = vpop.f32.mrb[64].mxu1  ;;  %v1445_v14 = vmax.f32 %v1413_v22, 0.0 }
 0x17b   : > { %v2421_v13 = vpop.f32.mrb[65].mxu1 }
 0x17c   : > { %v1446_v49 = vmax.f32 %v1414_v4, 0.0  ;;  %v2422_v18 = vadd.f32 %v2421_v13, %v2420_v60  ;;  %v2423_v19 = vpop.f32.mrb[66].mxu1 }
 0x17d   : > { %v2424_v46 = vpop.f32.mrb[67].mxu1 }
 0x17e   : > { %v1255_v20 = vadd.f32 %v2422_v18, %v2951_v42  ;;  %v2425_v23 = vadd.f32 %v2424_v46, %v2423_v19  ;;  %v1466_v25 = vpack.c.bf16 %v1446_v49, %v1445_v14 }
 0x180   : > { %v1415_v39 = vadd.f32 %v2972_v27, %v1255_v20  ;;  %v1258_v55 = vadd.f32 %v2425_v23, %v2953_v45  ;;  %2505 = vmatmul.mubr.bf16.gmra.mrb[68].mxu0 %v1466_v25 }
 0x182   : > { %v1416_v21 = vadd.f32 %v2972_v27, %v1258_v55  ;;  %v2426_v26 = vpop.f32.mrb[68].mxu1  ;;  %v1447_v30 = vmax.f32 %v1415_v39, 0.0 }
 0x183   : > { %v2427_v28 = vpop.f32.mrb[69].mxu1 }
 0x184   : > { %v1448_v32 = vmax.f32 %v1416_v21, 0.0  ;;  %v2428_v10 = vadd.f32 %v2427_v28, %v2426_v26  ;;  %v2429_v16 = vpop.f32.mrb[70].mxu1 }
 0x185   : > { %v2430_v34 = vpop.f32.mrb[71].mxu1 }
 0x186   : > { %v1263_v63 = vadd.f32 %v2428_v10, %v2955_v52  ;;  %v2431_v35 = vadd.f32 %v2430_v34, %v2429_v16  ;;  %v1467_v42 = vpack.c.bf16 %v1448_v32, %v1447_v30 }
 0x188   : > { %v1417_v36 = vadd.f32 %v2972_v27, %v1263_v63  ;;  %v1266_v38 = vadd.f32 %v2431_v35, %v2957_v57  ;;  %2508 = vmatprep.mubr.bf16.mxu0 %v1467_v42 }
 0x18a   : > { %v1418_v45 = vadd.f32 %v2972_v27, %v1266_v38  ;;  %v2432_v9 = vpop.f32.mrb[72].mxu1  ;;  %v1449_v40 = vmax.f32 %v1417_v36, 0.0 }
 0x18b   : > { %v2433_v7 = vpop.f32.mrb[73].mxu1 }
 0x18c   : > { %v1450_v41 = vmax.f32 %v1418_v45, 0.0  ;;  %v2434_v15 = vadd.f32 %v2433_v7, %v2432_v9  ;;  %v2435_v43 = vpop.f32.mrb[74].mxu1 }
 0x18d   : > { %v2436_v44 = vpop.f32.mrb[75].mxu1 }
 0x18e   : > { %v1271_v47 = vadd.f32 %v2434_v15, %v2959_v0  ;;  %v2437_v48 = vadd.f32 %v2436_v44, %v2435_v43  ;;  %v1468_v52 = vpack.c.bf16 %v1450_v41, %v1449_v40 }
 0x190   : > { %v1419_v50 = vadd.f32 %v2972_v27, %v1271_v47  ;;  %v1274_v51 = vadd.f32 %v2437_v48, %v2961_v5  ;;  %2509 = vmatmul.mubr.bf16.gmra.mrb[72].mxu0 %v1468_v52 }
 0x192   : > { %v1420_v57 = vadd.f32 %v2972_v27, %v1274_v51  ;;  %v2438_v53 = vpop.f32.mrb[76].mxu1  ;;  %v1451_v29 = vmax.f32 %v1419_v50, 0.0 }
 0x193   : > { %v2439_v54 = vpop.f32.mrb[77].mxu1 }
 0x194   : > { %v1452_v56 = vmax.f32 %v1420_v57, 0.0  ;;  %v2440_v31 = vadd.f32 %v2439_v54, %v2438_v53  ;;  %v2441_v58 = vpop.f32.mrb[78].mxu1 }
 0x195   : > { %v2442_v24 = vpop.f32.mrb[79].mxu1 }
 0x196   : > { %v1279_v37 = vadd.f32 %v2440_v31, %v2963_v12  ;;  %v2443_v0 = vadd.f32 %v2442_v24, %v2441_v58  ;;  %v1469_v59 = vpack.c.bf16 %v1452_v56, %v1451_v29 }
 0x198   : > { %v1421_v61 = vadd.f32 %v2972_v27, %v1279_v37  ;;  %v1282_v1 = vadd.f32 %v2443_v0, %v2965_v17  ;;  %2512 = vmatprep.mubr.bf16.mxu0 %v1469_v59 }
 0x19a   : > { %v1422_v5 = vadd.f32 %v2972_v27, %v1282_v1  ;;  %v1453_v33 = vmax.f32 %v1421_v61, 0.0 }
 0x19c   : > { %v1454_v2 = vmax.f32 %v1422_v5, 0.0 }
 0x19e   : > { %v1470_v3 = vpack.c.bf16 %v1454_v2, %v1453_v33 }
 0x1a0   : > { %2513 = vmatmul.mubr.bf16.gmra.mrb[76].mxu0 %v1470_v3 }
 0x203   : > { %v2486_v6 = vpop.f32.mrb[48].mxu0 }
 0x204   : > { %v1569_v62 = vpop.f32.mrb[49].mxu0 }
 0x205   : > { %v2487_v12 = vpop.f32.mrb[50].mxu0 }
 0x206   : > { %v2133_v17 = vpack.c.bf16 %v2487_v12, %v2486_v6  ;;  %v1572_v8 = vpop.f32.mrb[51].mxu0 }
 0x207   : > { %v2128_v27 = vpack.c.bf16 %v1572_v8, %v1569_v62 }
 0x208   : > { %2205 = vst [vmem:[%s3055_s23 + $0x8] sm:$0xff] %v2133_v17  }
 0x209   : > { %2129 = vst [vmem:[%s3055_s23] sm:$0xff] %v2128_v27  }
 0x213   : > { %v2490_v22 = vpop.f32.mrb[52].mxu0 }
 0x214   : > { %v1585_v11 = vpop.f32.mrb[53].mxu0 }
 0x215   : > { %v2491_v4 = vpop.f32.mrb[54].mxu0 }
 0x216   : > { %v2143_v60 = vpack.c.bf16 %v2491_v4, %v2490_v22  ;;  %v1588_v13 = vpop.f32.mrb[55].mxu0 }
 0x217   : > { %v2138_v14 = vpack.c.bf16 %v1588_v13, %v1585_v11 }
 0x218   : > { %2207 = vst [vmem:[%s3055_s23 + $0x18] sm:$0xff] %v2143_v60  }
 0x219   : > { %2206 = vst [vmem:[%s3055_s23 + $0x10] sm:$0xff] %v2138_v14  }
 0x223   : > { %v2494_v49 = vpop.f32.mrb[56].mxu0 }
 0x224   : > { %v1601_v18 = vpop.f32.mrb[57].mxu0 }
 0x225   : > { %v2495_v19 = vpop.f32.mrb[58].mxu0 }
 0x226   : > { %v2153_v46 = vpack.c.bf16 %v2495_v19, %v2494_v49  ;;  %v1604_v20 = vpop.f32.mrb[59].mxu0 }
 0x227   : > { %v2148_v23 = vpack.c.bf16 %v1604_v20, %v1601_v18 }
 0x228   : > { %2209 = vst [vmem:[%s3055_s23 + $0x28] sm:$0xff] %v2153_v46  }
 0x229   : > { %2208 = vst [vmem:[%s3055_s23 + $0x20] sm:$0xff] %v2148_v23  }
 0x233   : > { %v2498_v25 = vpop.f32.mrb[60].mxu0 }
 0x234   : > { %v1617_v39 = vpop.f32.mrb[61].mxu0 }
 0x235   : > { %v2499_v55 = vpop.f32.mrb[62].mxu0 }
 0x236   : > { %v2163_v21 = vpack.c.bf16 %v2499_v55, %v2498_v25  ;;  %v1620_v26 = vpop.f32.mrb[63].mxu0 }
 0x237   : > { %v2158_v28 = vpack.c.bf16 %v1620_v26, %v1617_v39 }
 0x238   : > { %2211 = vst [vmem:[%s3055_s23 + $0x38] sm:$0xff] %v2163_v21  }
 0x239   : > { %2210 = vst [vmem:[%s3055_s23 + $0x30] sm:$0xff] %v2158_v28  }
 0x243   : > { %v2502_v30 = vpop.f32.mrb[64].mxu0 }
 0x244   : > { %v1633_v32 = vpop.f32.mrb[65].mxu0 }
 0x245   : > { %v2503_v10 = vpop.f32.mrb[66].mxu0 }
 0x246   : > { %v2173_v16 = vpack.c.bf16 %v2503_v10, %v2502_v30  ;;  %v1636_v34 = vpop.f32.mrb[67].mxu0 }
 0x247   : > { %v2168_v63 = vpack.c.bf16 %v1636_v34, %v1633_v32 }
 0x248   : > { %2213 = vst [vmem:[%s3055_s23 + $0x48] sm:$0xff] %v2173_v16  }
 0x249   : > { %2212 = vst [vmem:[%s3055_s23 + $0x40] sm:$0xff] %v2168_v63  }
 0x253   : > { %v2506_v35 = vpop.f32.mrb[68].mxu0 }
 0x254   : > { %v1649_v42 = vpop.f32.mrb[69].mxu0 }
 0x255   : > { %v2507_v36 = vpop.f32.mrb[70].mxu0 }
 0x256   : > { %v2183_v38 = vpack.c.bf16 %v2507_v36, %v2506_v35  ;;  %v1652_v45 = vpop.f32.mrb[71].mxu0 }
 0x257   : > { %v2178_v9 = vpack.c.bf16 %v1652_v45, %v1649_v42 }
 0x258   : > { %2215 = vst [vmem:[%s3055_s23 + $0x58] sm:$0xff] %v2183_v38  }
 0x259   : > { %2214 = vst [vmem:[%s3055_s23 + $0x50] sm:$0xff] %v2178_v9  }
 0x263   : > { %v2510_v7 = vpop.f32.mrb[72].mxu0 }
 0x264   : > { %v1665_v40 = vpop.f32.mrb[73].mxu0 }
 0x265   : > { %v2511_v41 = vpop.f32.mrb[74].mxu0 }
 0x266   : > { %v2193_v15 = vpack.c.bf16 %v2511_v41, %v2510_v7  ;;  %v1668_v43 = vpop.f32.mrb[75].mxu0 }
 0x267   : > { %v2188_v44 = vpack.c.bf16 %v1668_v43, %v1665_v40 }
 0x268   : > { %2217 = vst [vmem:[%s3055_s23 + $0x68] sm:$0xff] %v2193_v15  }
 0x269   : > { %2216 = vst [vmem:[%s3055_s23 + $0x60] sm:$0xff] %v2188_v44  }
 0x273   : > { %v2514_v47 = vpop.f32.mrb[76].mxu0 }
 0x274   : > { %v1681_v48 = vpop.f32.mrb[77].mxu0 }
 0x275   : > { %v2515_v52 = vpop.f32.mrb[78].mxu0 }
 0x276   : > { %v2203_v50 = vpack.c.bf16 %v2515_v52, %v2514_v47  ;;  %v1684_v51 = vpop.f32.mrb[79].mxu0 }
 0x277   : > { %v2198_v57 = vpack.c.bf16 %v1684_v51, %v1681_v48 }
 0x278   : > { %2219 = vst [vmem:[%s3055_s23 + $0x78] sm:$0xff] %v2203_v50  }
 0x279   : > { %2218 = vst [vmem:[%s3055_s23 + $0x70] sm:$0xff] %v2198_v57  }
 0x27a PF: > { %s14_s17 = sadd.s32 1, %s2714_s17   ;;  %s3087_s15 = smov %s2710_s16 }
 0x27b   : > { %p11_p5 = scmp.ge.s32.totalorder %s14_s17, 4   ;;  %s3088_s16 = smov %s3090_s18 }
 0x27d   :  { %13 = sbr.rel (!%p11_p5) target bundleno = 2 (0x2), region = 77 }

// kernel: gcn_forward.6
= control target key start
LH: loop header
LB: loop body
LE: loop exit
PB: predicated region body
PF: predicated region fallthrough
CT: control target
= control target key end

     0   :  { %s2647_s15 = smov 0   ;;  %s2649_s16 = smov 0   ;;  %s3036_s0 = inlined_call_operand.vmem [shape: bf16[512,512], index: 0, kind: input, shape index: {}]   ;;  %s3037_s1 = inlined_call_operand.vmem [shape: bf16[512,128], index: 1, kind: input, shape index: {}]   ;;  %s3038_s2 = inlined_call_operand.vmem [shape: f32[1,128], index: 2, kind: input, shape index: {}]   ;;  %s3039_s3 = inlined_call_operand.vmem [shape: bf16[128,32], index: 3, kind: input, shape index: {}]   ;;  %s3040_s4 = inlined_call_operand.vmem [shape: bf16[512,32], index: 4, kind: output, shape index: {}]  }
   0x1   :  { %s2651_s17 = smov 0  }
   0x2 LB: > { %s26_s18 = sadd.s32 1, %s2616_s16  ;;  %p1948_p0 = scmp.ge.s32.totalorder %s2620_s17, 1  ;;  %s2620_s17 = sphi %s2651_s17, %s14_s17   ;;  %s2616_s16 = sphi %s2649_s16, %s3042_s16   ;;  %s2612_s15 = sphi %s2647_s15, %s3041_s15  }
   0x3   : > { %p28_p1 = scmp.ge.s32.totalorder %s26_s18, 2  ;;  %p194_p2 = scmp.lt.s32.totalorder %s2620_s17, 3 }
   0x5   : > { %s3044_s18 = smov (%p28_p1, %s26_s18), 0  ;;  %p195_p3 = pnand %p1948_p0, %p194_p2 }
   0x6   : > { %v2462_v0 = vld [vmem:[%s3037_s1 + $0x40] sm:$0xff] (!%p195_p3)   ;;  %s1949_s21 = sshll.u32 (!%p195_p3), %s2612_s15, 5  ;;  %v2464_v2 = vld [vmem:[%s3037_s1 + $0x48] sm:$0xff] (!%p195_p3)   ;;  %v2466_v4 = vld [vmem:[%s3037_s1 + $0x50] sm:$0xff] (!%p195_p3)   ;;  %vm1824_vm0 = vcmask (!%p195_p3), 257024  }
   0x7   : > { %198 = sbr.rel (%p195_p3) target bundleno = 634 (0x27a), region = 36  ;;  %v2463_v1 = vld [vmem:[%s3037_s1] sm:$0xff] (!%p195_p3)   ;;  %2422 = vmatprep.subr.bf16.mxu1 (!%p195_p3), %v2462_v0  ;;  %2126 = vmatprep.subr.bf16.mxu0 (!%p195_p3), %v2462_v0  ;;  %v2465_v3 = vld [vmem:[%s3037_s1 + $0x8] sm:$0xff] (!%p195_p3)   ;;  %p232_p4 = scmp.lt.s32.totalorder (!%p195_p3), %s1949_s21, 63  ;;  %v2467_v5 = vld [vmem:[%s3037_s1 + $0x10] sm:$0xff] (!%p195_p3)  }
   0x8   : > { %2430 = vmatpush3.bf16.msra.mxu1 (!%p195_p3), %v2463_v1  ;;  %2127 = vmatpush3.bf16.msra.mxu0 (!%p195_p3), %v2463_v1  ;;  %v2468_v6 = vld [vmem:[%s3037_s1 + $0x58] sm:$0xff] (!%p195_p3)   ;;  %v2470_v8 = vld [vmem:[%s3037_s1 + $0x60] sm:$0xff] (!%p195_p3)   ;;  %v2472_v10 = vld [vmem:[%s3037_s1 + $0x68] sm:$0xff] (!%p195_p3)  }
   0x9   : > { %2423 = vmatprep.subr.bf16.mxu1 (!%p195_p3), %v2464_v2  ;;  %2128 = vmatprep.subr.bf16.mxu0 (!%p195_p3), %v2464_v2  ;;  %v2469_v7 = vld [vmem:[%s3037_s1 + $0x18] sm:$0xff] (!%p195_p3)   ;;  %v2471_v9 = vld [vmem:[%s3037_s1 + $0x20] sm:$0xff] (!%p195_p3)   ;;  %v2473_v12 = vld [vmem:[%s3037_s1 + $0x28] sm:$0xff] (!%p195_p3)  }
   0xa   : > { %v2474_v13 = vld [vmem:[%s3037_s1 + $0x70] sm:$0xff] (!%p195_p3)   ;;  %v2476_v15 = vld [vmem:[%s3037_s1 + $0x78] sm:$0xff] (!%p195_p3)   ;;  %v2481_v17 = vld [vmem:[%s3037_s1 + $0xc0] sm:$0xff] (!%p195_p3)  }
   0xb   : > { %v2475_v14 = vld [vmem:[%s3037_s1 + $0x30] sm:$0xff] (!%p195_p3)   ;;  %v2477_v16 = vld [vmem:[%s3037_s1 + $0x38] sm:$0xff] (!%p195_p3)   ;;  %v2482_v19 = vld [vmem:[%s3037_s1 + $0x80] sm:$0xff] (!%p195_p3)  }
   0xc   : > { %2431 = vmatpush3.bf16.msra.mxu1 (!%p195_p3), %v2465_v3  ;;  %2129 = vmatpush3.bf16.msra.mxu0 (!%p195_p3), %v2465_v3  ;;  %v2483_v21 = vld [vmem:[%s3037_s1 + $0xc8] sm:$0xff] (!%p195_p3)   ;;  %v2488_v24 = vld [vmem:[%s3037_s1 + $0xd0] sm:$0xff] (!%p195_p3)   ;;  %v2490_v28 = vld [vmem:[%s3037_s1 + $0xd8] sm:$0xff] (!%p195_p3)  }
   0xd   : > { %2424 = vmatprep.subr.bf16.mxu1 (!%p195_p3), %v2466_v4  ;;  %2130 = vmatprep.subr.bf16.mxu0 (!%p195_p3), %v2466_v4  ;;  %v2484_v22 = vld [vmem:[%s3037_s1 + $0x88] sm:$0xff] (!%p195_p3)   ;;  %v2489_v25 = vld [vmem:[%s3037_s1 + $0x90] sm:$0xff] (!%p195_p3)   ;;  %v2491_v31 = vld [vmem:[%s3037_s1 + $0x98] sm:$0xff] (!%p195_p3)  }
   0xe   : > { %s3046_s21 = smov (!%p232_p4, %s1949_s21), 63  ;;  %v2495_v33 = vld [vmem:[%s3037_s1 + $0xe0] sm:$0xff]   ;;  %v2497_v38 = vld [vmem:[%s3037_s1 + $0xe8] sm:$0xff]   ;;  %v2502_v41 = vld [vmem:[%s3037_s1 + $0xf0] sm:$0xff]  }
   0xf   : > { %s2093_s10 = sshll.u32 %s3046_s21, 4  ;;  %v2496_v36 = vld [vmem:[%s3037_s1 + $0xa0] sm:$0xff]   ;;  %v2498_v39 = vld [vmem:[%s3037_s1 + $0xa8] sm:$0xff]   ;;  %v2503_v44 = vld [vmem:[%s3037_s1 + $0xb0] sm:$0xff]   ;;  %s1953_s19 = sshll.u32 %s3046_s21, 2 }
  0x10   : > { %2432 = vmatpush3.bf16.msra.mxu1 %v2467_v5  ;;  %2131 = vmatpush3.bf16.msra.mxu0 %v2467_v5  ;;  %s2698_s15 = scalar_lea.vmem %s3036_s0, %s2093_s10  ;;  %v2504_v46 = vld [vmem:[%s3037_s1 + $0xf8] sm:$0xff]   ;;  %s2961_s23 = scalar_lea.vmem %s3040_s4, %s1953_s19 }
  0x11   : > { %2425 = vmatprep.subr.bf16.mxu1 %v2468_v6  ;;  %2132 = vmatprep.subr.bf16.mxu0 %v2468_v6  ;;  %v2480_v11 = vld [vmem:[%s2698_s15 + $0x184] ss:$16 sps:$4 sm:$0xff]   ;;  %v2478_v18 = vld [vmem:[%s2698_s15 + $0x180] ss:$16 sps:$4 sm:$0xff]   ;;  %v2511_v45 = vld [vmem:[%s2698_s15 + $0xc] ss:$16 sps:$4 sm:$0xff]  }
  0x12   : > { %1091 = vmatprep.mubr.bf16.mxu1 %v2480_v11  ;;  %v2485_v20 = vld [vmem:[%s2698_s15 + $0x1a4] ss:$16 sps:$4 sm:$0xff]   ;;  %v2487_v23 = vld [vmem:[%s2698_s15 + $0x1a0] ss:$16 sps:$4 sm:$0xff]   ;;  %v2505_v47 = vld [vmem:[%s3037_s1 + $0xb8] sm:$0xff]  }
  0x13   : > { %v2506_v26 = vld [vmem:[%s2698_s15] ss:$16 sps:$4 sm:$0xff]   ;;  %v2508_v27 = vld [vmem:[%s2698_s15 + $0x4] ss:$16 sps:$4 sm:$0xff]   ;;  %v2509_v48 = vld [vmem:[%s2698_s15 + $0x8] ss:$16 sps:$4 sm:$0xff]  }
  0x14   : > { %2433 = vmatpush3.bf16.msra.mxu1 %v2469_v7  ;;  %2133 = vmatpush3.bf16.msra.mxu0 %v2469_v7  ;;  %v2492_v29 = vld [vmem:[%s2698_s15 + $0x1c4] ss:$16 sps:$4 sm:$0xff]   ;;  %v2494_v32 = vld [vmem:[%s2698_s15 + $0x1c0] ss:$16 sps:$4 sm:$0xff]   ;;  %v2514_v51 = vld [vmem:[%s2698_s15 + $0x2c] ss:$16 sps:$4 sm:$0xff]  }
  0x15   : > { %2426 = vmatprep.subr.bf16.mxu1 %v2470_v8  ;;  %2134 = vmatprep.subr.bf16.mxu0 %v2470_v8  ;;  %v2512_v30 = vld [vmem:[%s2698_s15 + $0x24] ss:$16 sps:$4 sm:$0xff]   ;;  %v2516_v34 = vld [vmem:[%s2698_s15 + $0x20] ss:$16 sps:$4 sm:$0xff]   ;;  %v2517_v53 = vld [vmem:[%s2698_s15 + $0x28] ss:$16 sps:$4 sm:$0xff]  }
  0x16   : > { %995 = vmatprep.mubr.bf16.mxu0 %v2508_v27  ;;  %v2518_v35 = vld [vmem:[%s2698_s15 + $0x44] ss:$16 sps:$4 sm:$0xff]   ;;  %v2501_v40 = vld [vmem:[%s2698_s15 + $0x1e0] ss:$16 sps:$4 sm:$0xff]   ;;  %v2520_v55 = vld [vmem:[%s2698_s15 + $0x4c] ss:$16 sps:$4 sm:$0xff]  }
  0x17   : > { %v2499_v37 = vld [vmem:[%s2698_s15 + $0x1e4] ss:$16 sps:$4 sm:$0xff]   ;;  %v2522_v42 = vld [vmem:[%s2698_s15 + $0x40] ss:$16 sps:$4 sm:$0xff]   ;;  %v2523_v57 = vld [vmem:[%s2698_s15 + $0x48] ss:$16 sps:$4 sm:$0xff]  }
  0x18   : > { %2434 = vmatpush3.bf16.msra.mxu1 %v2471_v9  ;;  %2135 = vmatpush3.bf16.msra.mxu0 %v2471_v9  ;;  %v2524_v43 = vld [vmem:[%s2698_s15 + $0x64] ss:$16 sps:$4 sm:$0xff]   ;;  %v2528_v49 = vld [vmem:[%s2698_s15 + $0x60] ss:$16 sps:$4 sm:$0xff]   ;;  %v2526_v59 = vld [vmem:[%s2698_s15 + $0x6c] ss:$16 sps:$4 sm:$0xff]  }
  0x19   : > { %2427 = vmatprep.subr.bf16.mxu1 %v2472_v10  ;;  %2136 = vmatprep.subr.bf16.mxu0 %v2472_v10  ;;  %v2530_v50 = vld [vmem:[%s2698_s15 + $0x84] ss:$16 sps:$4 sm:$0xff]   ;;  %v2534_v52 = vld [vmem:[%s2698_s15 + $0x80] ss:$16 sps:$4 sm:$0xff]   ;;  %v2529_v61 = vld [vmem:[%s2698_s15 + $0x68] ss:$16 sps:$4 sm:$0xff]  }
  0x1a   : > { %v2536_v54 = vld [vmem:[%s2698_s15 + $0xa4] ss:$16 sps:$4 sm:$0xff]   ;;  %v2540_v56 = vld [vmem:[%s2698_s15 + $0xa0] ss:$16 sps:$4 sm:$0xff]   ;;  %v2532_v63 = vld [vmem:[%s2698_s15 + $0x8c] ss:$16 sps:$4 sm:$0xff]  }
  0x1b   : > { %v2542_v58 = vld [vmem:[%s2698_s15 + $0xc4] ss:$16 sps:$4 sm:$0xff]   ;;  %v2546_v60 = vld [vmem:[%s2698_s15 + $0xc0] ss:$16 sps:$4 sm:$0xff]   ;;  %v2535_v1 = vld [vmem:[%s2698_s15 + $0x88] ss:$16 sps:$4 sm:$0xff]  }
  0x1c   : > { %2435 = vmatpush3.bf16.msra.mxu1 %v2473_v12  ;;  %2137 = vmatpush3.bf16.msra.mxu0 %v2473_v12  ;;  %v2548_v62 = vld [vmem:[%s2698_s15 + $0xe4] ss:$16 sps:$4 sm:$0xff]   ;;  %v2552_v0 = vld [vmem:[%s2698_s15 + $0xe0] ss:$16 sps:$4 sm:$0xff]   ;;  %v2538_v3 = vld [vmem:[%s2698_s15 + $0xac] ss:$16 sps:$4 sm:$0xff]  }
  0x1d   : > { %2428 = vmatprep.subr.bf16.mxu1 %v2474_v13  ;;  %2138 = vmatprep.subr.bf16.mxu0 %v2474_v13  ;;  %v2554_v2 = vld [vmem:[%s2698_s15 + $0x104] ss:$16 sps:$4 sm:$0xff]   ;;  %v2558_v4 = vld [vmem:[%s2698_s15 + $0x100] ss:$16 sps:$4 sm:$0xff]   ;;  %v2541_v5 = vld [vmem:[%s2698_s15 + $0xa8] ss:$16 sps:$4 sm:$0xff]  }
  0x1e   : > { %v2560_v6 = vld [vmem:[%s2698_s15 + $0x124] ss:$16 sps:$4 sm:$0xff]   ;;  %v2544_v7 = vld [vmem:[%s2698_s15 + $0xcc] ss:$16 sps:$4 sm:$0xff]   ;;  %v2564_v8 = vld [vmem:[%s2698_s15 + $0x120] ss:$16 sps:$4 sm:$0xff]  }
  0x1f   : > { %v2547_v9 = vld [vmem:[%s2698_s15 + $0xc8] ss:$16 sps:$4 sm:$0xff]   ;;  %v2566_v10 = vld [vmem:[%s2698_s15 + $0x144] ss:$16 sps:$4 sm:$0xff]   ;;  %v2550_v11 = vld [vmem:[%s2698_s15 + $0xec] ss:$16 sps:$4 sm:$0xff]  }
  0x20   : > { %2436 = vmatpush3.bf16.msra.mxu1 %v2475_v14  ;;  %2139 = vmatpush3.bf16.msra.mxu0 %v2475_v14  ;;  %v2570_v12 = vld [vmem:[%s2698_s15 + $0x140] ss:$16 sps:$4 sm:$0xff]   ;;  %v2553_v13 = vld [vmem:[%s2698_s15 + $0xe8] ss:$16 sps:$4 sm:$0xff]   ;;  %v2572_v14 = vld [vmem:[%s2698_s15 + $0x164] ss:$16 sps:$4 sm:$0xff]  }
  0x21   : > { %2429 = vmatprep.subr.bf16.mxu1 %v2476_v15  ;;  %2140 = vmatprep.subr.bf16.mxu0 %v2476_v15  ;;  %v2556_v15 = vld [vmem:[%s2698_s15 + $0x10c] ss:$16 sps:$4 sm:$0xff]   ;;  %v2577_v27 = vld [vmem:[%s2698_s15 + $0x168] ss:$16 sps:$4 sm:$0xff]  }
  0x24   : > { %2437 = vmatpush3.bf16.msra.mxu1 %v2477_v16  ;;  %2141 = vmatpush3.bf16.msra.mxu0 %v2477_v16  ;;  %v2576_v16 = vld [vmem:[%s2698_s15 + $0x160] ss:$16 sps:$4 sm:$0xff]  }
  0x25   : > { %2238 = vmatprep.subr.bf16.mxu1 %v2481_v17  ;;  %v2559_v17 = vld [vmem:[%s2698_s15 + $0x108] ss:$16 sps:$4 sm:$0xff]  }
  0x27   : > { %1092 = vmatmul.mubr.bf16.vlgmr.msra.gmra.mrb[0].mxu1 %v2478_v18  ;;  %996 = vmatmul.mubr.bf16.vlgmr.msra.gmra.mrb[0].mxu0 %v2506_v26  ;;  %v2562_v18 = vld [vmem:[%s2698_s15 + $0x12c] ss:$16 sps:$4 sm:$0xff]  }
  0x28   : > { %2239 = vmatpush3.bf16.msra.mxu1 %v2482_v19  ;;  %1099 = vmatprep.mubr.bf16.mxu1 %v2485_v20  ;;  %v2590_v19 = vld [vmem:[%s3039_s3] sm:$0xff]   ;;  %v2565_v20 = vld [vmem:[%s2698_s15 + $0x128] ss:$16 sps:$4 sm:$0xff]  }
  0x29   : > { %2240 = vmatprep.subr.bf16.mxu1 %v2483_v21  ;;  %1003 = vmatprep.mubr.bf16.mxu0 %v2512_v30  ;;  %v2568_v21 = vld [vmem:[%s2698_s15 + $0x14c] ss:$16 sps:$4 sm:$0xff]  }
  0x2a   : > { %2374 = vmatprep.subr.bf16.mxu0 %v2590_v19  ;;  %v2593_v26 = vld [vmem:[%s3039_s3 + $0x18] sm:$0xff]   ;;  %v2595_v30 = vld [vmem:[%s3039_s3 + $0x28] sm:$0xff]  }
  0x2b   : > { %2375 = vmatpush3.bf16.msra.mxu0 %v2590_v19 }
  0x2c   : > { %2241 = vmatpush3.bf16.msra.mxu1 %v2484_v22  ;;  %v2591_v22 = vld [vmem:[%s3039_s3 + $0x8] sm:$0xff]  }
  0x2d   : > { %2242 = vmatprep.subr.bf16.mxu1 %v2488_v24  ;;  %v2574_v24 = vld [vmem:[%s2698_s15 + $0x16c] ss:$16 sps:$4 sm:$0xff]   ;;  %2376 = vmatprep.subr.bf16.mxu0 %v2591_v22 }
  0x2f   : > { %1100 = vmatmul.mubr.bf16.gmra.mrb[4].mxu1 %v2487_v23  ;;  %1004 = vmatmul.mubr.bf16.gmra.mrb[4].mxu0 %v2516_v34  ;;  %v2571_v23 = vld [vmem:[%s2698_s15 + $0x148] ss:$16 sps:$4 sm:$0xff]  }
  0x30   : > { %2243 = vmatpush3.bf16.msra.mxu1 %v2489_v25  ;;  %1107 = vmatprep.mubr.bf16.mxu1 %v2492_v29  ;;  %v2592_v25 = vld [vmem:[%s3039_s3 + $0x10] sm:$0xff]   ;;  %v2594_v29 = vld [vmem:[%s3039_s3 + $0x20] sm:$0xff]   ;;  %v2597_v34 = vld [vmem:[%s3039_s3 + $0x38] sm:$0xff]  }
  0x31   : > { %2244 = vmatprep.subr.bf16.mxu1 %v2490_v28  ;;  %1011 = vmatprep.mubr.bf16.mxu0 %v2518_v35  ;;  %v2578_v28 = vld [vmem:[%s2698_s15 + $0x18c] ss:$16 sps:$4 sm:$0xff]   ;;  %v2583_v35 = vld [vmem:[%s2698_s15 + $0x1a8] ss:$16 sps:$4 sm:$0xff]  }
  0x32   : > { %2377 = vmatpush3.bf16.msra.mxu0 %v2591_v22 }
  0x33   : > { %2378 = vmatprep.subr.bf16.mxu0 %v2592_v25 }
  0x34   : > { %2245 = vmatpush3.bf16.msra.mxu1 %v2491_v31  ;;  %v2580_v31 = vld [vmem:[%s2698_s15 + $0x188] ss:$16 sps:$4 sm:$0xff]  }
  0x35   : > { %2246 = vmatprep.subr.bf16.mxu1 %v2495_v33  ;;  %v2596_v33 = vld [vmem:[%s3039_s3 + $0x30] sm:$0xff]  }
  0x36   : > { %2379 = vmatpush3.bf16.msra.mxu0 %v2592_v25 }
  0x37   : > { %1108 = vmatmul.mubr.bf16.gmra.mrb[8].mxu1 %v2494_v32  ;;  %1012 = vmatmul.mubr.bf16.gmra.mrb[8].mxu0 %v2522_v42  ;;  %v2581_v32 = vld [vmem:[%s2698_s15 + $0x1ac] ss:$16 sps:$4 sm:$0xff]  }
  0x38   : > { %2247 = vmatpush3.bf16.msra.mxu1 %v2496_v36  ;;  %1115 = vmatprep.mubr.bf16.mxu1 %v2499_v37  ;;  %v2584_v36 = vld [vmem:[%s2698_s15 + $0x1cc] ss:$16 sps:$4 sm:$0xff]   ;;  %v2586_v37 = vld [vmem:[%s2698_s15 + $0x1c8] ss:$16 sps:$4 sm:$0xff]  }
  0x39   : > { %2248 = vmatprep.subr.bf16.mxu1 %v2497_v38  ;;  %1019 = vmatprep.mubr.bf16.mxu0 %v2524_v43  ;;  %v2587_v38 = vld [vmem:[%s2698_s15 + $0x1ec] ss:$16 sps:$4 sm:$0xff]  }
  0x3a   : > { %2380 = vmatprep.subr.bf16.mxu0 %v2593_v26 }
  0x3b   : > { %2381 = vmatpush3.bf16.msra.mxu0 %v2593_v26 }
  0x3c   : > { %2249 = vmatpush3.bf16.msra.mxu1 %v2498_v39  ;;  %2382 = vmatprep.subr.bf16.mxu0 %v2594_v29  ;;  %v2589_v39 = vld [vmem:[%s2698_s15 + $0x1e8] ss:$16 sps:$4 sm:$0xff]  }
  0x3d   : > { %2250 = vmatprep.subr.bf16.mxu1 %v2502_v41 }
  0x3f   : > { %1116 = vmatmul.mubr.bf16.gmra.mrb[12].mxu1 %v2501_v40  ;;  %1020 = vmatmul.mubr.bf16.gmra.mrb[12].mxu0 %v2528_v49 }
  0x40   : > { %2251 = vmatpush3.bf16.msra.mxu1 %v2503_v44  ;;  %1156 = vmatprep.mubr.bf16.mxu1 %v2511_v45 }
  0x41   : > { %2252 = vmatprep.subr.bf16.mxu1 %v2504_v46  ;;  %1027 = vmatprep.mubr.bf16.mxu0 %v2530_v50 }
  0x42   : > { %2383 = vmatpush3.bf16.msra.mxu0 %v2594_v29 }
  0x43   : > { %2384 = vmatprep.subr.bf16.mxu0 %v2595_v30 }
  0x44   : > { %2253 = vmatpush3.bf16.msra.mxu1 %v2505_v47 }
  0x46   : > { %2385 = vmatpush3.bf16.msra.mxu0 %v2595_v30 }
  0x47   : > { %1157 = vmatmul.mubr.bf16.vlgmr.msra.gmra.mrb[16].mxu1 %v2509_v48  ;;  %1028 = vmatmul.mubr.bf16.gmra.mrb[16].mxu0 %v2534_v52 }
  0x48   : > { %1164 = vmatprep.mubr.bf16.mxu1 %v2514_v51  ;;  %1035 = vmatprep.mubr.bf16.mxu0 %v2536_v54 }
  0x49   : > { %2386 = vmatprep.subr.bf16.mxu0 %v2596_v33 }
  0x4a   : > { %2387 = vmatpush3.bf16.msra.mxu0 %v2596_v33 }
  0x4b   : > { %2388 = vmatprep.subr.bf16.mxu0 %v2597_v34 }
  0x4e   : > { %2389 = vmatpush3.bf16.msra.mxu0 %v2597_v34 }
  0x4f   : > { %1165 = vmatmul.mubr.bf16.gmra.mrb[20].mxu1 %v2517_v53  ;;  %1036 = vmatmul.mubr.bf16.gmra.mrb[20].mxu0 %v2540_v56 }
  0x50   : > { %1172 = vmatprep.mubr.bf16.mxu1 %v2520_v55  ;;  %1043 = vmatprep.mubr.bf16.mxu0 %v2542_v58 }
  0x57   : > { %1173 = vmatmul.mubr.bf16.gmra.mrb[24].mxu1 %v2523_v57  ;;  %1044 = vmatmul.mubr.bf16.gmra.mrb[24].mxu0 %v2546_v60 }
  0x58   : > { %1180 = vmatprep.mubr.bf16.mxu1 %v2526_v59  ;;  %1051 = vmatprep.mubr.bf16.mxu0 %v2548_v62 }
  0x5f   : > { %1181 = vmatmul.mubr.bf16.gmra.mrb[28].mxu1 %v2529_v61  ;;  %1052 = vmatmul.mubr.bf16.gmra.mrb[28].mxu0 %v2552_v0 }
  0x60   : > { %1188 = vmatprep.mubr.bf16.mxu1 %v2532_v63  ;;  %1059 = vmatprep.mubr.bf16.mxu0 %v2554_v2 }
  0x67   : > { %1189 = vmatmul.mubr.bf16.gmra.mrb[32].mxu1 %v2535_v1  ;;  %1060 = vmatmul.mubr.bf16.gmra.mrb[32].mxu0 %v2558_v4 }
  0x68   : > { %1196 = vmatprep.mubr.bf16.mxu1 %v2538_v3  ;;  %1067 = vmatprep.mubr.bf16.mxu0 %v2560_v6 }
  0x6f   : > { %1197 = vmatmul.mubr.bf16.gmra.mrb[36].mxu1 %v2541_v5  ;;  %1068 = vmatmul.mubr.bf16.gmra.mrb[36].mxu0 %v2564_v8 }
  0x70   : > { %1204 = vmatprep.mubr.bf16.mxu1 %v2544_v7  ;;  %1075 = vmatprep.mubr.bf16.mxu0 %v2566_v10 }
  0x77   : > { %1205 = vmatmul.mubr.bf16.gmra.mrb[40].mxu1 %v2547_v9  ;;  %1076 = vmatmul.mubr.bf16.gmra.mrb[40].mxu0 %v2570_v12 }
  0x78   : > { %1212 = vmatprep.mubr.bf16.mxu1 %v2550_v11  ;;  %1083 = vmatprep.mubr.bf16.mxu0 %v2572_v14 }
  0x7f   : > { %1213 = vmatmul.mubr.bf16.gmra.mrb[44].mxu1 %v2553_v13  ;;  %1084 = vmatmul.mubr.bf16.gmra.mrb[44].mxu0 %v2576_v16 }
  0x80   : > { %1220 = vmatprep.mubr.bf16.mxu1 %v2556_v15 }
  0x87   : > { %1221 = vmatmul.mubr.bf16.gmra.mrb[48].mxu1 %v2559_v17 }
  0x88   : > { %1228 = vmatprep.mubr.bf16.mxu1 %v2562_v18 }
  0x8f   : > { %1229 = vmatmul.mubr.bf16.gmra.mrb[52].mxu1 %v2565_v20 }
  0x90   : > { %1236 = vmatprep.mubr.bf16.mxu1 %v2568_v21 }
  0x97   : > { %1237 = vmatmul.mubr.bf16.gmra.mrb[56].mxu1 %v2571_v23 }
  0x98   : > { %1244 = vmatprep.mubr.bf16.mxu1 %v2574_v24 }
  0x9f   : > { %1245 = vmatmul.mubr.bf16.gmra.mrb[60].mxu1 %v2577_v27  ;;  %v2878_v27 = vld [vmem:[%s3038_s2] ss:$0 sm:$0xff] }
  0xa0   : > { %1252 = vmatprep.mubr.bf16.mxu1 %v2578_v28 }
  0xa7   : > { %1253 = vmatmul.mubr.bf16.gmra.mrb[64].mxu1 %v2580_v31 }
  0xa8   : > { %1260 = vmatprep.mubr.bf16.mxu1 %v2581_v32 }
  0xaf   : > { %1261 = vmatmul.mubr.bf16.gmra.mrb[68].mxu1 %v2583_v35 }
  0xb0   : > { %1268 = vmatprep.mubr.bf16.mxu1 %v2584_v36 }
  0xb7   : > { %1269 = vmatmul.mubr.bf16.gmra.mrb[72].mxu1 %v2586_v37 }
  0xb8   : > { %1276 = vmatprep.mubr.bf16.mxu1 %v2587_v38 }
  0xbf   : > { %1277 = vmatmul.mubr.bf16.gmra.mrb[76].mxu1 %v2589_v39 }
  0xfa   : > { %v2214_v40 = vpop.f32.mrb[0].mxu1  ;;  %v2142_v46 = vpop.f32.mrb[0].mxu0 }
  0xfb   : > { %v2215_v41 = vpop.f32.mrb[1].mxu1  ;;  %v2143_v48 = vpop.f32.mrb[1].mxu0 }
  0xfc   : > { %v2857_v42 = vadd.f32 %v2215_v41, %v2214_v40  ;;  %v2217_v43 = vpop.f32.mrb[2].mxu1  ;;  %v2144_v50 = vadd.f32 %v2143_v48, %v2142_v46  ;;  %v2145_v51 = vpop.f32.mrb[2].mxu0 }
  0xfd   : > { %v2218_v44 = vpop.f32.mrb[3].mxu1  ;;  %v2146_v54 = vpop.f32.mrb[3].mxu0 }
  0xfe   : > { %v2859_v45 = vadd.f32 %v2218_v44, %v2217_v43  ;;  %v2147_v56 = vadd.f32 %v2146_v54, %v2145_v51 }
 0x102   : > { %v2220_v47 = vpop.f32.mrb[4].mxu1  ;;  %v2148_v58 = vpop.f32.mrb[4].mxu0 }
 0x103   : > { %v2221_v49 = vpop.f32.mrb[5].mxu1  ;;  %v2149_v60 = vpop.f32.mrb[5].mxu0 }
 0x104   : > { %v2861_v52 = vadd.f32 %v2221_v49, %v2220_v47  ;;  %v2223_v53 = vpop.f32.mrb[6].mxu1  ;;  %v2150_v62 = vadd.f32 %v2149_v60, %v2148_v58  ;;  %v2151_v63 = vpop.f32.mrb[6].mxu0 }
 0x105   : > { %v2224_v55 = vpop.f32.mrb[7].mxu1  ;;  %v2152_v2 = vpop.f32.mrb[7].mxu0 }
 0x106   : > { %v2863_v57 = vadd.f32 %v2224_v55, %v2223_v53  ;;  %v2153_v4 = vadd.f32 %v2152_v2, %v2151_v63 }
 0x10a   : > { %v2226_v59 = vpop.f32.mrb[8].mxu1  ;;  %v2154_v6 = vpop.f32.mrb[8].mxu0 }
 0x10b   : > { %v2227_v61 = vpop.f32.mrb[9].mxu1  ;;  %v2155_v8 = vpop.f32.mrb[9].mxu0 }
 0x10c   : > { %v2865_v0 = vadd.f32 %v2227_v61, %v2226_v59  ;;  %v2229_v1 = vpop.f32.mrb[10].mxu1  ;;  %v2156_v10 = vadd.f32 %v2155_v8, %v2154_v6  ;;  %v2157_v11 = vpop.f32.mrb[10].mxu0 }
 0x10d   : > { %v2230_v3 = vpop.f32.mrb[11].mxu1  ;;  %v2158_v14 = vpop.f32.mrb[11].mxu0 }
 0x10e   : > { %v2867_v5 = vadd.f32 %v2230_v3, %v2229_v1  ;;  %v2159_v16 = vadd.f32 %v2158_v14, %v2157_v11 }
 0x112   : > { %v2232_v7 = vpop.f32.mrb[12].mxu1  ;;  %v2160_v18 = vpop.f32.mrb[12].mxu0 }
 0x113   : > { %v2233_v9 = vpop.f32.mrb[13].mxu1  ;;  %v2161_v20 = vpop.f32.mrb[13].mxu0 }
 0x114   : > { %v2869_v12 = vadd.f32 %v2233_v9, %v2232_v7  ;;  %v2235_v13 = vpop.f32.mrb[14].mxu1  ;;  %v2873_v22 = vadd.f32 %v2161_v20, %v2160_v18  ;;  %v2163_v23 = vpop.f32.mrb[14].mxu0 }
 0x115   : > { %v2236_v15 = vpop.f32.mrb[15].mxu1  ;;  %v2164_v26 = vpop.f32.mrb[15].mxu0 }
 0x116   : > { %v2871_v17 = vadd.f32 %v2236_v15, %v2235_v13  ;;  %v2880_v29 = vadd.f32 %v2164_v26, %v2163_v23 }
 0x11a   : > { %v2254_v19 = vpop.f32.mrb[16].mxu1  ;;  %v2166_v34 = vpop.f32.mrb[16].mxu0 }
 0x11b   : > { %v2255_v21 = vpop.f32.mrb[17].mxu1  ;;  %v2167_v37 = vpop.f32.mrb[17].mxu0 }
 0x11c   : > { %v2256_v24 = vadd.f32 %v2255_v21, %v2254_v19  ;;  %v2257_v25 = vpop.f32.mrb[18].mxu1  ;;  %v2884_v39 = vadd.f32 %v2167_v37, %v2166_v34  ;;  %v2169_v40 = vpop.f32.mrb[18].mxu0 }
 0x11d   : > { %v2258_v28 = vpop.f32.mrb[19].mxu1  ;;  %v2170_v47 = vpop.f32.mrb[19].mxu0 }
 0x11e   : > { %v1159_v30 = vadd.f32 %v2256_v24, %v2144_v50  ;;  %v2259_v31 = vadd.f32 %v2258_v28, %v2257_v25  ;;  %v2886_v49 = vadd.f32 %v2170_v47, %v2169_v40 }
 0x120   : > { %v1391_v32 = vadd.f32 %v2878_v27, %v1159_v30  ;;  %v1162_v33 = vadd.f32 %v2259_v31, %v2147_v56 }
 0x122   : > { %v1392_v35 = vadd.f32 %v2878_v27, %v1162_v33  ;;  %v2260_v36 = vpop.f32.mrb[20].mxu1  ;;  %v1423_v41 = vmax.f32 %v1391_v32, 0.0  ;;  %v2172_v56 = vpop.f32.mrb[20].mxu0 }
 0x123   : > { %v2261_v38 = vpop.f32.mrb[21].mxu1  ;;  %v2173_v60 = vpop.f32.mrb[21].mxu0 }
 0x124   : > { %v1424_v43 = vmax.f32 %v1392_v35, 0.0  ;;  %v2262_v44 = vadd.f32 %v2261_v38, %v2260_v36  ;;  %v2263_v46 = vpop.f32.mrb[22].mxu1  ;;  %v2890_v63 = vadd.f32 %v2173_v60, %v2172_v56  ;;  %v2175_v1 = vpop.f32.mrb[22].mxu0 }
 0x125   : > { %v2264_v48 = vpop.f32.mrb[23].mxu1 }
 0x126   : > { %v1167_v50 = vadd.f32 %v2262_v44, %v2150_v62  ;;  %v2265_v51 = vadd.f32 %v2264_v48, %v2263_v46  ;;  %v1455_v53 = vpack.c.bf16 %v1424_v43, %v1423_v41  ;;  %v2176_v62 = vpop.f32.mrb[23].mxu0 }
 0x127   : > { %v2892_v9 = vadd.f32 %v2176_v62, %v2175_v1 }
 0x128   : > { %v1393_v54 = vadd.f32 %v2878_v27, %v1167_v50  ;;  %v1170_v55 = vadd.f32 %v2265_v51, %v2153_v4  ;;  %2390 = vmatprep.mubr.bf16.mxu0 %v1455_v53 }
 0x12a   : > { %v1394_v58 = vadd.f32 %v2878_v27, %v1170_v55  ;;  %v2266_v59 = vpop.f32.mrb[24].mxu1  ;;  %v1425_v2 = vmax.f32 %v1393_v54, 0.0  ;;  %v2178_v18 = vpop.f32.mrb[24].mxu0 }
 0x12b   : > { %v2267_v61 = vpop.f32.mrb[25].mxu1  ;;  %v2179_v21 = vpop.f32.mrb[25].mxu0 }
 0x12c   : > { %v1426_v3 = vmax.f32 %v1394_v58, 0.0  ;;  %v2268_v6 = vadd.f32 %v2267_v61, %v2266_v59  ;;  %v2269_v7 = vpop.f32.mrb[26].mxu1  ;;  %v2896_v24 = vadd.f32 %v2179_v21, %v2178_v18  ;;  %v2181_v25 = vpop.f32.mrb[26].mxu0 }
 0x12d   : > { %v2270_v8 = vpop.f32.mrb[27].mxu1  ;;  %v2182_v32 = vpop.f32.mrb[27].mxu0 }
 0x12e   : > { %v1456_v11 = vpack.c.bf16 %v1426_v3, %v1425_v2  ;;  %v1175_v4 = vadd.f32 %v2268_v6, %v2156_v10  ;;  %v2271_v13 = vadd.f32 %v2270_v8, %v2269_v7  ;;  %v2898_v33 = vadd.f32 %v2182_v32, %v2181_v25 }
 0x130   : > { %v1395_v14 = vadd.f32 %v2878_v27, %v1175_v4  ;;  %v1178_v15 = vadd.f32 %v2271_v13, %v2159_v16  ;;  %2391 = vmatmul.mubr.bf16.vlgmr.msra.gmra.mrb[48].mxu0 %v1456_v11 }
 0x132   : > { %v1396_v19 = vadd.f32 %v2878_v27, %v1178_v15  ;;  %v2272_v20 = vpop.f32.mrb[28].mxu1  ;;  %v1427_v26 = vmax.f32 %v1395_v14, 0.0  ;;  %v2184_v38 = vpop.f32.mrb[28].mxu0 }
 0x133   : > { %v2273_v23 = vpop.f32.mrb[29].mxu1  ;;  %v2185_v43 = vpop.f32.mrb[29].mxu0 }
 0x134   : > { %v1428_v28 = vmax.f32 %v1396_v19, 0.0  ;;  %v2274_v30 = vadd.f32 %v2273_v23, %v2272_v20  ;;  %v2275_v31 = vpop.f32.mrb[30].mxu1  ;;  %v2904_v46 = vadd.f32 %v2185_v43, %v2184_v38  ;;  %v2187_v47 = vpop.f32.mrb[30].mxu0 }
 0x135   : > { %v2276_v10 = vpop.f32.mrb[31].mxu1  ;;  %v2188_v53 = vpop.f32.mrb[31].mxu0 }
 0x136   : > { %v1183_v16 = vadd.f32 %v2274_v30, %v2873_v22  ;;  %v2277_v34 = vadd.f32 %v2276_v10, %v2275_v31  ;;  %v1457_v35 = vpack.c.bf16 %v1428_v28, %v1427_v26  ;;  %v2906_v55 = vadd.f32 %v2188_v53, %v2187_v47 }
 0x138   : > { %v1397_v36 = vadd.f32 %v2878_v27, %v1183_v16  ;;  %v1186_v37 = vadd.f32 %v2277_v34, %v2880_v29  ;;  %2394 = vmatprep.mubr.bf16.mxu0 %v1457_v35 }
 0x13a   : > { %v1398_v40 = vadd.f32 %v2878_v27, %v1186_v37  ;;  %v2278_v41 = vpop.f32.mrb[32].mxu1  ;;  %v1429_v48 = vmax.f32 %v1397_v36, 0.0  ;;  %v2190_v61 = vpop.f32.mrb[32].mxu0 }
 0x13b   : > { %v2279_v44 = vpop.f32.mrb[33].mxu1  ;;  %v2191_v3 = vpop.f32.mrb[33].mxu0 }
 0x13c   : > { %v1430_v50 = vmax.f32 %v1398_v40, 0.0  ;;  %v2280_v51 = vadd.f32 %v2279_v44, %v2278_v41  ;;  %v2281_v22 = vpop.f32.mrb[34].mxu1  ;;  %v2912_v7 = vadd.f32 %v2191_v3, %v2190_v61  ;;  %v2193_v62 = vpop.f32.mrb[34].mxu0 }
 0x13d   : > { %v2282_v54 = vpop.f32.mrb[35].mxu1  ;;  %v2194_v13 = vpop.f32.mrb[35].mxu0 }
 0x13e   : > { %v1191_v29 = vadd.f32 %v2280_v51, %v2884_v39  ;;  %v2283_v56 = vadd.f32 %v2282_v54, %v2281_v22  ;;  %v1458_v58 = vpack.c.bf16 %v1430_v50, %v1429_v48  ;;  %v2914_v15 = vadd.f32 %v2194_v13, %v2193_v62 }
 0x140   : > { %v1399_v59 = vadd.f32 %v2878_v27, %v1191_v29  ;;  %v1194_v60 = vadd.f32 %v2283_v56, %v2886_v49  ;;  %2395 = vmatmul.mubr.bf16.gmra.mrb[52].mxu0 %v1458_v58 }
 0x142   : > { %v1400_v1 = vadd.f32 %v2878_v27, %v1194_v60  ;;  %v2284_v2 = vpop.f32.mrb[36].mxu1  ;;  %v1431_v8 = vmax.f32 %v1399_v59, 0.0  ;;  %v2196_v23 = vpop.f32.mrb[36].mxu0 }
 0x143   : > { %v2285_v6 = vpop.f32.mrb[37].mxu1  ;;  %v2197_v28 = vpop.f32.mrb[37].mxu0 }
 0x144   : > { %v1432_v11 = vmax.f32 %v1400_v1, 0.0  ;;  %v2286_v4 = vadd.f32 %v2285_v6, %v2284_v2  ;;  %v2287_v39 = vpop.f32.mrb[38].mxu1  ;;  %v2920_v31 = vadd.f32 %v2197_v28, %v2196_v23  ;;  %v2199_v32 = vpop.f32.mrb[38].mxu0 }
 0x145   : > { %v2288_v14 = vpop.f32.mrb[39].mxu1  ;;  %v2200_v35 = vpop.f32.mrb[39].mxu0 }
 0x146   : > { %v1199_v49 = vadd.f32 %v2286_v4, %v2890_v63  ;;  %v2289_v18 = vadd.f32 %v2288_v14, %v2287_v39  ;;  %v1459_v19 = vpack.c.bf16 %v1432_v11, %v1431_v8  ;;  %v2201_v37 = vadd.f32 %v2200_v35, %v2199_v32 }
 0x148   : > { %v1401_v20 = vadd.f32 %v2878_v27, %v1199_v49  ;;  %v1202_v21 = vadd.f32 %v2289_v18, %v2892_v9  ;;  %2398 = vmatprep.mubr.bf16.mxu0 %v1459_v19 }
 0x14a   : > { %v1402_v25 = vadd.f32 %v2878_v27, %v1202_v21  ;;  %v2290_v26 = vpop.f32.mrb[40].mxu1  ;;  %v1433_v10 = vmax.f32 %v1401_v20, 0.0  ;;  %v2202_v44 = vpop.f32.mrb[40].mxu0 }
 0x14b   : > { %v2291_v30 = vpop.f32.mrb[41].mxu1  ;;  %v2203_v50 = vpop.f32.mrb[41].mxu0 }
 0x14c   : > { %v1434_v16 = vmax.f32 %v1402_v25, 0.0  ;;  %v2292_v34 = vadd.f32 %v2291_v30, %v2290_v26  ;;  %v2293_v63 = vpop.f32.mrb[42].mxu1  ;;  %v2204_v22 = vadd.f32 %v2203_v50, %v2202_v44  ;;  %v2205_v53 = vpop.f32.mrb[42].mxu0 }
 0x14d   : > { %v2294_v36 = vpop.f32.mrb[43].mxu1 }
 0x14e   : > { %v1207_v38 = vadd.f32 %v2292_v34, %v2896_v24  ;;  %v2295_v9 = vadd.f32 %v2294_v36, %v2293_v63  ;;  %v1460_v40 = vpack.c.bf16 %v1434_v16, %v1433_v10  ;;  %v2206_v24 = vpop.f32.mrb[43].mxu0 }
 0x14f   : > { %v2207_v60 = vadd.f32 %v2206_v24, %v2205_v53 }
 0x150   : > { %v1403_v41 = vadd.f32 %v2878_v27, %v1207_v38  ;;  %v1210_v43 = vadd.f32 %v2295_v9, %v2898_v33  ;;  %2399 = vmatmul.mubr.bf16.gmra.mrb[56].mxu0 %v1460_v40 }
 0x152   : > { %v1404_v47 = vadd.f32 %v2878_v27, %v1210_v43  ;;  %v2296_v48 = vpop.f32.mrb[44].mxu1  ;;  %v1435_v54 = vmax.f32 %v1403_v41, 0.0  ;;  %v2208_v6 = vpop.f32.mrb[44].mxu0 }
 0x153   : > { %v2297_v51 = vpop.f32.mrb[45].mxu1  ;;  %v2209_v11 = vpop.f32.mrb[45].mxu0 }
 0x154   : > { %v1436_v29 = vmax.f32 %v1404_v47, 0.0  ;;  %v2298_v56 = vadd.f32 %v2297_v51, %v2296_v48  ;;  %v2299_v58 = vpop.f32.mrb[46].mxu1  ;;  %v2210_v39 = vadd.f32 %v2209_v11, %v2208_v6  ;;  %v2211_v13 = vpop.f32.mrb[46].mxu0 }
 0x155   : > { %v2300_v59 = vpop.f32.mrb[47].mxu1 }
 0x156   : > { %v1215_v61 = vadd.f32 %v2298_v56, %v2904_v46  ;;  %v2301_v1 = vadd.f32 %v2300_v59, %v2299_v58  ;;  %v1461_v33 = vpack.c.bf16 %v1436_v29, %v1435_v54  ;;  %v2212_v46 = vpop.f32.mrb[47].mxu0 }
 0x157   : > { %v2213_v21 = vadd.f32 %v2212_v46, %v2211_v13 }
 0x158   : > { %v1405_v2 = vadd.f32 %v2878_v27, %v1215_v61  ;;  %v1218_v3 = vadd.f32 %v2301_v1, %v2906_v55  ;;  %2402 = vmatprep.mubr.bf16.mxu0 %v1461_v33 }
 0x15a   : > { %v1406_v62 = vadd.f32 %v2878_v27, %v1218_v3  ;;  %v2302_v8 = vpop.f32.mrb[48].mxu1  ;;  %v1437_v14 = vmax.f32 %v1405_v2, 0.0 }
 0x15b   : > { %v2303_v4 = vpop.f32.mrb[49].mxu1 }
 0x15c   : > { %v1438_v49 = vmax.f32 %v1406_v62, 0.0  ;;  %v2304_v18 = vadd.f32 %v2303_v4, %v2302_v8  ;;  %v2305_v19 = vpop.f32.mrb[50].mxu1 }
 0x15d   : > { %v2306_v20 = vpop.f32.mrb[51].mxu1 }
 0x15e   : > { %v1223_v23 = vadd.f32 %v2304_v18, %v2912_v7  ;;  %v2307_v25 = vadd.f32 %v2306_v20, %v2305_v19  ;;  %v1462_v55 = vpack.c.bf16 %v1438_v49, %v1437_v14 }
 0x160   : > { %v1407_v26 = vadd.f32 %v2878_v27, %v1223_v23  ;;  %v1226_v28 = vadd.f32 %v2307_v25, %v2914_v15  ;;  %2403 = vmatmul.mubr.bf16.gmra.mrb[60].mxu0 %v1462_v55 }
 0x162   : > { %v1408_v30 = vadd.f32 %v2878_v27, %v1226_v28  ;;  %v2308_v32 = vpop.f32.mrb[52].mxu1  ;;  %v1439_v16 = vmax.f32 %v1407_v26, 0.0 }
 0x163   : > { %v2309_v10 = vpop.f32.mrb[53].mxu1 }
 0x164   : > { %v1440_v34 = vmax.f32 %v1408_v30, 0.0  ;;  %v2310_v63 = vadd.f32 %v2309_v10, %v2308_v32  ;;  %v2311_v35 = vpop.f32.mrb[54].mxu1 }
 0x165   : > { %v2312_v36 = vpop.f32.mrb[55].mxu1 }
 0x166   : > { %v1231_v38 = vadd.f32 %v2310_v63, %v2920_v31  ;;  %v2313_v9 = vadd.f32 %v2312_v36, %v2311_v35  ;;  %v1463_v7 = vpack.c.bf16 %v1440_v34, %v1439_v16 }
 0x168   : > { %v1409_v40 = vadd.f32 %v2878_v27, %v1231_v38  ;;  %v1234_v41 = vadd.f32 %v2313_v9, %v2201_v37  ;;  %2406 = vmatprep.mubr.bf16.mxu0 %v1463_v7 }
 0x16a   : > { %v1410_v15 = vadd.f32 %v2878_v27, %v1234_v41  ;;  %v2314_v43 = vpop.f32.mrb[56].mxu1  ;;  %v1441_v47 = vmax.f32 %v1409_v40, 0.0 }
 0x16b   : > { %v2315_v44 = vpop.f32.mrb[57].mxu1 }
 0x16c   : > { %v1442_v48 = vmax.f32 %v1410_v15, 0.0  ;;  %v2316_v50 = vadd.f32 %v2315_v44, %v2314_v43  ;;  %v2317_v51 = vpop.f32.mrb[58].mxu1 }
 0x16d   : > { %v2318_v53 = vpop.f32.mrb[59].mxu1 }
 0x16e   : > { %v1239_v54 = vadd.f32 %v2316_v50, %v2204_v22  ;;  %v2319_v29 = vadd.f32 %v2318_v53, %v2317_v51  ;;  %v1464_v56 = vpack.c.bf16 %v1442_v48, %v1441_v47 }
 0x170   : > { %v1411_v31 = vadd.f32 %v2878_v27, %v1239_v54  ;;  %v1242_v58 = vadd.f32 %v2319_v29, %v2207_v60  ;;  %2407 = vmatmul.mubr.bf16.gmra.mrb[64].mxu0 %v1464_v56 }
 0x172   : > { %v1412_v24 = vadd.f32 %v2878_v27, %v1242_v58  ;;  %v2320_v37 = vpop.f32.mrb[60].mxu1  ;;  %v1443_v61 = vmax.f32 %v1411_v31, 0.0 }
 0x173   : > { %v2321_v59 = vpop.f32.mrb[61].mxu1 }
 0x174   : > { %v1444_v1 = vmax.f32 %v1412_v24, 0.0  ;;  %v2322_v33 = vadd.f32 %v2321_v59, %v2320_v37  ;;  %v2323_v2 = vpop.f32.mrb[62].mxu1 }
 0x175   : > { %v2324_v3 = vpop.f32.mrb[63].mxu1 }
 0x176   : > { %v1247_v6 = vadd.f32 %v2322_v33, %v2210_v39  ;;  %v2325_v62 = vadd.f32 %v2324_v3, %v2323_v2  ;;  %v1465_v8 = vpack.c.bf16 %v1444_v1, %v1443_v61 }
 0x178   : > { %v1413_v22 = vadd.f32 %v2878_v27, %v1247_v6  ;;  %v1250_v11 = vadd.f32 %v2325_v62, %v2213_v21  ;;  %2410 = vmatprep.mubr.bf16.mxu0 %v1465_v8 }
 0x17a   : > { %v1414_v4 = vadd.f32 %v2878_v27, %v1250_v11  ;;  %v2326_v60 = vpop.f32.mrb[64].mxu1  ;;  %v1445_v14 = vmax.f32 %v1413_v22, 0.0 }
 0x17b   : > { %v2327_v13 = vpop.f32.mrb[65].mxu1 }
 0x17c   : > { %v1446_v49 = vmax.f32 %v1414_v4, 0.0  ;;  %v2328_v18 = vadd.f32 %v2327_v13, %v2326_v60  ;;  %v2329_v19 = vpop.f32.mrb[66].mxu1 }
 0x17d   : > { %v2330_v46 = vpop.f32.mrb[67].mxu1 }
 0x17e   : > { %v1255_v20 = vadd.f32 %v2328_v18, %v2857_v42  ;;  %v2331_v23 = vadd.f32 %v2330_v46, %v2329_v19  ;;  %v1466_v25 = vpack.c.bf16 %v1446_v49, %v1445_v14 }
 0x180   : > { %v1415_v39 = vadd.f32 %v2878_v27, %v1255_v20  ;;  %v1258_v55 = vadd.f32 %v2331_v23, %v2859_v45  ;;  %2411 = vmatmul.mubr.bf16.gmra.mrb[68].mxu0 %v1466_v25 }
 0x182   : > { %v1416_v21 = vadd.f32 %v2878_v27, %v1258_v55  ;;  %v2332_v26 = vpop.f32.mrb[68].mxu1  ;;  %v1447_v30 = vmax.f32 %v1415_v39, 0.0 }
 0x183   : > { %v2333_v28 = vpop.f32.mrb[69].mxu1 }
 0x184   : > { %v1448_v32 = vmax.f32 %v1416_v21, 0.0  ;;  %v2334_v10 = vadd.f32 %v2333_v28, %v2332_v26  ;;  %v2335_v16 = vpop.f32.mrb[70].mxu1 }
 0x185   : > { %v2336_v34 = vpop.f32.mrb[71].mxu1 }
 0x186   : > { %v1263_v63 = vadd.f32 %v2334_v10, %v2861_v52  ;;  %v2337_v35 = vadd.f32 %v2336_v34, %v2335_v16  ;;  %v1467_v42 = vpack.c.bf16 %v1448_v32, %v1447_v30 }
 0x188   : > { %v1417_v36 = vadd.f32 %v2878_v27, %v1263_v63  ;;  %v1266_v38 = vadd.f32 %v2337_v35, %v2863_v57  ;;  %2414 = vmatprep.mubr.bf16.mxu0 %v1467_v42 }
 0x18a   : > { %v1418_v45 = vadd.f32 %v2878_v27, %v1266_v38  ;;  %v2338_v9 = vpop.f32.mrb[72].mxu1  ;;  %v1449_v40 = vmax.f32 %v1417_v36, 0.0 }
 0x18b   : > { %v2339_v7 = vpop.f32.mrb[73].mxu1 }
 0x18c   : > { %v1450_v41 = vmax.f32 %v1418_v45, 0.0  ;;  %v2340_v15 = vadd.f32 %v2339_v7, %v2338_v9  ;;  %v2341_v43 = vpop.f32.mrb[74].mxu1 }
 0x18d   : > { %v2342_v44 = vpop.f32.mrb[75].mxu1 }
 0x18e   : > { %v1271_v47 = vadd.f32 %v2340_v15, %v2865_v0  ;;  %v2343_v48 = vadd.f32 %v2342_v44, %v2341_v43  ;;  %v1468_v52 = vpack.c.bf16 %v1450_v41, %v1449_v40 }
 0x190   : > { %v1419_v50 = vadd.f32 %v2878_v27, %v1271_v47  ;;  %v1274_v51 = vadd.f32 %v2343_v48, %v2867_v5  ;;  %2415 = vmatmul.mubr.bf16.gmra.mrb[72].mxu0 %v1468_v52 }
 0x192   : > { %v1420_v57 = vadd.f32 %v2878_v27, %v1274_v51  ;;  %v2344_v53 = vpop.f32.mrb[76].mxu1  ;;  %v1451_v29 = vmax.f32 %v1419_v50, 0.0 }
 0x193   : > { %v2345_v54 = vpop.f32.mrb[77].mxu1 }
 0x194   : > { %v1452_v56 = vmax.f32 %v1420_v57, 0.0  ;;  %v2346_v31 = vadd.f32 %v2345_v54, %v2344_v53  ;;  %v2347_v58 = vpop.f32.mrb[78].mxu1 }
 0x195   : > { %v2348_v24 = vpop.f32.mrb[79].mxu1 }
 0x196   : > { %v1279_v37 = vadd.f32 %v2346_v31, %v2869_v12  ;;  %v2349_v0 = vadd.f32 %v2348_v24, %v2347_v58  ;;  %v1469_v59 = vpack.c.bf16 %v1452_v56, %v1451_v29 }
 0x198   : > { %v1421_v61 = vadd.f32 %v2878_v27, %v1279_v37  ;;  %v1282_v1 = vadd.f32 %v2349_v0, %v2871_v17  ;;  %2418 = vmatprep.mubr.bf16.mxu0 %v1469_v59 }
 0x19a   : > { %v1422_v5 = vadd.f32 %v2878_v27, %v1282_v1  ;;  %v1453_v33 = vmax.f32 %v1421_v61, 0.0 }
 0x19c   : > { %v1454_v2 = vmax.f32 %v1422_v5, 0.0 }
 0x19e   : > { %v1470_v3 = vpack.c.bf16 %v1454_v2, %v1453_v33 }
 0x1a0   : > { %2419 = vmatmul.mubr.bf16.gmra.mrb[76].mxu0 %v1470_v3 }
 0x203   : > { %v2392_v12 = vpop.f32.mrb[48].mxu0 }
 0x204   : > { %v2096_v17 = vpack.c.bf16 %v2392_v12, %v2392_v12  ;;  %v1569_v6 = vpop.f32.mrb[49].mxu0 }
 0x205   : > { %v2094_v27 = vpack.c.bf16 %v1569_v6, %v1569_v6  ;;  %v2393_v62 = vpop.f32.mrb[50].mxu0 }
 0x206   : > { %1827 = vst.msk [vmem:[%s2961_s23 + $0x8] sm:$0xf] %vm1824_vm0, %v2096_v17  ;;  %v2097_v8 = vpack.c.bf16 %v2393_v62, %v2393_v62  ;;  %v1572_v22 = vpop.f32.mrb[51].mxu0 }
 0x207   : > { %1825 = vst.msk [vmem:[%s2961_s23] sm:$0xf] %vm1824_vm0, %v2094_v27  ;;  %v2095_v11 = vpack.c.bf16 %v1572_v22, %v1572_v22 }
 0x208   : > { %1828 = vst.msk [vmem:[%s2961_s23 + $0xc] sm:$0xf] %vm1824_vm0, %v2097_v8 }
 0x209   : > { %1826 = vst.msk [vmem:[%s2961_s23 + $0x4] sm:$0xf] %vm1824_vm0, %v2095_v11 }
 0x213   : > { %v2396_v4 = vpop.f32.mrb[52].mxu0 }
 0x214   : > { %v2100_v60 = vpack.c.bf16 %v2396_v4, %v2396_v4  ;;  %v1585_v13 = vpop.f32.mrb[53].mxu0 }
 0x215   : > { %v2098_v14 = vpack.c.bf16 %v1585_v13, %v1585_v13  ;;  %v2397_v49 = vpop.f32.mrb[54].mxu0 }
 0x216   : > { %1831 = vst.msk [vmem:[%s2961_s23 + $0x18] sm:$0xf] %vm1824_vm0, %v2100_v60  ;;  %v2101_v18 = vpack.c.bf16 %v2397_v49, %v2397_v49  ;;  %v1588_v19 = vpop.f32.mrb[55].mxu0 }
 0x217   : > { %1829 = vst.msk [vmem:[%s2961_s23 + $0x10] sm:$0xf] %vm1824_vm0, %v2098_v14  ;;  %v2099_v46 = vpack.c.bf16 %v1588_v19, %v1588_v19 }
 0x218   : > { %1832 = vst.msk [vmem:[%s2961_s23 + $0x1c] sm:$0xf] %vm1824_vm0, %v2101_v18 }
 0x219   : > { %1830 = vst.msk [vmem:[%s2961_s23 + $0x14] sm:$0xf] %vm1824_vm0, %v2099_v46 }
 0x223   : > { %v2400_v20 = vpop.f32.mrb[56].mxu0 }
 0x224   : > { %v2104_v23 = vpack.c.bf16 %v2400_v20, %v2400_v20  ;;  %v1601_v25 = vpop.f32.mrb[57].mxu0 }
 0x225   : > { %v2102_v39 = vpack.c.bf16 %v1601_v25, %v1601_v25  ;;  %v2401_v55 = vpop.f32.mrb[58].mxu0 }
 0x226   : > { %1835 = vst.msk [vmem:[%s2961_s23 + $0x28] sm:$0xf] %vm1824_vm0, %v2104_v23  ;;  %v2105_v21 = vpack.c.bf16 %v2401_v55, %v2401_v55  ;;  %v1604_v26 = vpop.f32.mrb[59].mxu0 }
 0x227   : > { %1833 = vst.msk [vmem:[%s2961_s23 + $0x20] sm:$0xf] %vm1824_vm0, %v2102_v39  ;;  %v2103_v28 = vpack.c.bf16 %v1604_v26, %v1604_v26 }
 0x228   : > { %1836 = vst.msk [vmem:[%s2961_s23 + $0x2c] sm:$0xf] %vm1824_vm0, %v2105_v21 }
 0x229   : > { %1834 = vst.msk [vmem:[%s2961_s23 + $0x24] sm:$0xf] %vm1824_vm0, %v2103_v28 }
 0x233   : > { %v2404_v30 = vpop.f32.mrb[60].mxu0 }
 0x234   : > { %v2108_v32 = vpack.c.bf16 %v2404_v30, %v2404_v30  ;;  %v1617_v10 = vpop.f32.mrb[61].mxu0 }
 0x235   : > { %v2106_v16 = vpack.c.bf16 %v1617_v10, %v1617_v10  ;;  %v2405_v34 = vpop.f32.mrb[62].mxu0 }
 0x236   : > { %1839 = vst.msk [vmem:[%s2961_s23 + $0x38] sm:$0xf] %vm1824_vm0, %v2108_v32  ;;  %v2109_v63 = vpack.c.bf16 %v2405_v34, %v2405_v34  ;;  %v1620_v35 = vpop.f32.mrb[63].mxu0 }
 0x237   : > { %1837 = vst.msk [vmem:[%s2961_s23 + $0x30] sm:$0xf] %vm1824_vm0, %v2106_v16  ;;  %v2107_v42 = vpack.c.bf16 %v1620_v35, %v1620_v35 }
 0x238   : > { %1840 = vst.msk [vmem:[%s2961_s23 + $0x3c] sm:$0xf] %vm1824_vm0, %v2109_v63 }
 0x239   : > { %1838 = vst.msk [vmem:[%s2961_s23 + $0x34] sm:$0xf] %vm1824_vm0, %v2107_v42 }
 0x243   : > { %v2408_v36 = vpop.f32.mrb[64].mxu0 }
 0x244   : > { %v2112_v38 = vpack.c.bf16 %v2408_v36, %v2408_v36  ;;  %v1633_v45 = vpop.f32.mrb[65].mxu0 }
 0x245   : > { %v2110_v9 = vpack.c.bf16 %v1633_v45, %v1633_v45  ;;  %v2409_v7 = vpop.f32.mrb[66].mxu0 }
 0x246   : > { %1843 = vst.msk [vmem:[%s2961_s23 + $0x48] sm:$0xf] %vm1824_vm0, %v2112_v38  ;;  %v2113_v40 = vpack.c.bf16 %v2409_v7, %v2409_v7  ;;  %v1636_v41 = vpop.f32.mrb[67].mxu0 }
 0x247   : > { %1841 = vst.msk [vmem:[%s2961_s23 + $0x40] sm:$0xf] %vm1824_vm0, %v2110_v9  ;;  %v2111_v15 = vpack.c.bf16 %v1636_v41, %v1636_v41 }
 0x248   : > { %1844 = vst.msk [vmem:[%s2961_s23 + $0x4c] sm:$0xf] %vm1824_vm0, %v2113_v40 }
 0x249   : > { %1842 = vst.msk [vmem:[%s2961_s23 + $0x44] sm:$0xf] %vm1824_vm0, %v2111_v15 }
 0x253   : > { %v2412_v43 = vpop.f32.mrb[68].mxu0 }
 0x254   : > { %v2116_v44 = vpack.c.bf16 %v2412_v43, %v2412_v43  ;;  %v1649_v47 = vpop.f32.mrb[69].mxu0 }
 0x255   : > { %v2114_v48 = vpack.c.bf16 %v1649_v47, %v1649_v47  ;;  %v2413_v52 = vpop.f32.mrb[70].mxu0 }
 0x256   : > { %1847 = vst.msk [vmem:[%s2961_s23 + $0x58] sm:$0xf] %vm1824_vm0, %v2116_v44  ;;  %v2117_v50 = vpack.c.bf16 %v2413_v52, %v2413_v52  ;;  %v1652_v51 = vpop.f32.mrb[71].mxu0 }
 0x257   : > { %1845 = vst.msk [vmem:[%s2961_s23 + $0x50] sm:$0xf] %vm1824_vm0, %v2114_v48  ;;  %v2115_v57 = vpack.c.bf16 %v1652_v51, %v1652_v51 }
 0x258   : > { %1848 = vst.msk [vmem:[%s2961_s23 + $0x5c] sm:$0xf] %vm1824_vm0, %v2117_v50 }
 0x259   : > { %1846 = vst.msk [vmem:[%s2961_s23 + $0x54] sm:$0xf] %vm1824_vm0, %v2115_v57 }
 0x263   : > { %v2416_v53 = vpop.f32.mrb[72].mxu0 }
 0x264   : > { %v2120_v54 = vpack.c.bf16 %v2416_v53, %v2416_v53  ;;  %v1665_v29 = vpop.f32.mrb[73].mxu0 }
 0x265   : > { %v2118_v56 = vpack.c.bf16 %v1665_v29, %v1665_v29  ;;  %v2417_v31 = vpop.f32.mrb[74].mxu0 }
 0x266   : > { %1851 = vst.msk [vmem:[%s2961_s23 + $0x68] sm:$0xf] %vm1824_vm0, %v2120_v54  ;;  %v2121_v58 = vpack.c.bf16 %v2417_v31, %v2417_v31  ;;  %v1668_v24 = vpop.f32.mrb[75].mxu0 }
 0x267   : > { %1849 = vst.msk [vmem:[%s2961_s23 + $0x60] sm:$0xf] %vm1824_vm0, %v2118_v56  ;;  %v2119_v37 = vpack.c.bf16 %v1668_v24, %v1668_v24 }
 0x268   : > { %1852 = vst.msk [vmem:[%s2961_s23 + $0x6c] sm:$0xf] %vm1824_vm0, %v2121_v58 }
 0x269   : > { %1850 = vst.msk [vmem:[%s2961_s23 + $0x64] sm:$0xf] %vm1824_vm0, %v2119_v37 }
 0x273   : > { %v2420_v0 = vpop.f32.mrb[76].mxu0 }
 0x274   : > { %v2124_v59 = vpack.c.bf16 %v2420_v0, %v2420_v0  ;;  %v1681_v61 = vpop.f32.mrb[77].mxu0 }
 0x275   : > { %v2122_v1 = vpack.c.bf16 %v1681_v61, %v1681_v61  ;;  %v2421_v5 = vpop.f32.mrb[78].mxu0 }
 0x276   : > { %1855 = vst.msk [vmem:[%s2961_s23 + $0x78] sm:$0xf] %vm1824_vm0, %v2124_v59  ;;  %v2125_v33 = vpack.c.bf16 %v2421_v5, %v2421_v5  ;;  %v1684_v2 = vpop.f32.mrb[79].mxu0 }
 0x277   : > { %1853 = vst.msk [vmem:[%s2961_s23 + $0x70] sm:$0xf] %vm1824_vm0, %v2122_v1  ;;  %v2123_v3 = vpack.c.bf16 %v1684_v2, %v1684_v2 }
 0x278   : > { %1856 = vst.msk [vmem:[%s2961_s23 + $0x7c] sm:$0xf] %vm1824_vm0, %v2125_v33 }
 0x279   : > { %1854 = vst.msk [vmem:[%s2961_s23 + $0x74] sm:$0xf] %vm1824_vm0, %v2123_v3 }
 0x27a PF: > { %s14_s17 = sadd.s32 1, %s2620_s17   ;;  %s3041_s15 = smov %s2616_s16 }
 0x27b   : > { %p11_p5 = scmp.ge.s32.totalorder %s14_s17, 4   ;;  %s3042_s16 = smov %s3044_s18 }
 0x27d   :  { %13 = sbr.rel (!%p11_p5) target bundleno = 2 (0x2), region = 77 }

// kernel: gcn_forward.7
= control target key start
LH: loop header
LB: loop body
LE: loop exit
PB: predicated region body
PF: predicated region fallthrough
CT: control target
= control target key end

     0   :  { %s2049_s12 = smov 0   ;;  %s2051_s13 = smov 0   ;;  %s2418_s0 = inlined_call_operand.vmem [shape: bf16[512,512], index: 0, kind: input, shape index: {}]   ;;  %s2419_s1 = inlined_call_operand.vmem [shape: bf16[512,32], index: 1, kind: input, shape index: {}]   ;;  %s2420_s2 = inlined_call_operand.vmem [shape: f32[1,32], index: 2, kind: input, shape index: {}]   ;;  %s2421_s3 = inlined_call_operand.vmem [shape: f32[512,32], index: 3, kind: output, shape index: {}]  }
   0x1   :  { %s2053_s14 = smov 0  }
   0x2 LB: > { %s25_s15 = sadd.s32 1, %s2022_s13  ;;  %p1521_p0 = scmp.ge.s32.totalorder %s2026_s14, 1  ;;  %s2026_s14 = sphi %s2053_s14, %s13_s14   ;;  %s2022_s13 = sphi %s2051_s13, %s2423_s13   ;;  %s2018_s12 = sphi %s2049_s12, %s2422_s12  }
   0x3   : > { %p27_p1 = scmp.ge.s32.totalorder %s25_s15, 2  ;;  %p169_p2 = scmp.lt.s32.totalorder %s2026_s14, 3 }
   0x5   : > { %s2425_s15 = smov (%p27_p1, %s25_s15), 0  ;;  %p170_p3 = pnand %p1521_p0, %p169_p2 }
   0x6   : > { %v1876_v0 = vld [vmem:[%s2419_s1 + $0x40] sm:$0xff] (!%p170_p3)   ;;  %v1880_v4 = vld [vmem:[%s2419_s1 + $0x48] sm:$0xff] (!%p170_p3)   ;;  %v1884_v8 = vld [vmem:[%s2419_s1 + $0x50] sm:$0xff] (!%p170_p3)   ;;  %s1522_s25 = sshll.u32 (!%p170_p3), %s2018_s12, 5  ;;  %vm232_vm0 = vcmask (!%p170_p3), 261120  }
   0x7   : > { %173 = sbr.rel (%p170_p3) target bundleno = 393 (0x189), region = 32  ;;  %v1877_v1 = vld [vmem:[%s2419_s1 + $0xc0] sm:$0xff] (!%p170_p3)   ;;  %1627 = vmatprep.subr.bf16.mxu0 (!%p170_p3), %v1876_v0  ;;  %v1881_v5 = vld [vmem:[%s2419_s1 + $0xc8] sm:$0xff] (!%p170_p3)   ;;  %v1885_v9 = vld [vmem:[%s2419_s1 + $0xd0] sm:$0xff] (!%p170_p3)   ;;  %p205_p4 = scmp.lt.s32.totalorder (!%p170_p3), %s1522_s25, 63 }
   0x8   : > { %v1878_v2 = vld [vmem:[%s2419_s1] sm:$0xff] (!%p170_p3)   ;;  %1739 = vmatprep.subr.bf16.mxu1 (!%p170_p3), %v1877_v1  ;;  %v1882_v6 = vld [vmem:[%s2419_s1 + $0x8] sm:$0xff] (!%p170_p3)   ;;  %v1886_v10 = vld [vmem:[%s2419_s1 + $0x10] sm:$0xff] (!%p170_p3)  }
   0x9   : > { %v1879_v3 = vld [vmem:[%s2419_s1 + $0x80] sm:$0xff] (!%p170_p3)   ;;  %1628 = vmatpush3.bf16.msra.mxu0 (!%p170_p3), %v1878_v2  ;;  %v1883_v7 = vld [vmem:[%s2419_s1 + $0x88] sm:$0xff] (!%p170_p3)   ;;  %v1887_v11 = vld [vmem:[%s2419_s1 + $0x90] sm:$0xff] (!%p170_p3)  }
   0xa   : > { %1740 = vmatpush3.bf16.msra.mxu1 (!%p170_p3), %v1879_v3  ;;  %1629 = vmatprep.subr.bf16.mxu0 (!%p170_p3), %v1880_v4  ;;  %v1888_v12 = vld [vmem:[%s2419_s1 + $0x58] sm:$0xff] (!%p170_p3)   ;;  %v1892_v16 = vld [vmem:[%s2419_s1 + $0x60] sm:$0xff] (!%p170_p3)   ;;  %v1896_v20 = vld [vmem:[%s2419_s1 + $0x68] sm:$0xff] (!%p170_p3)  }
   0xb   : > { %1741 = vmatprep.subr.bf16.mxu1 (!%p170_p3), %v1881_v5  ;;  %v1889_v13 = vld [vmem:[%s2419_s1 + $0xd8] sm:$0xff] (!%p170_p3)   ;;  %v1893_v17 = vld [vmem:[%s2419_s1 + $0xe0] sm:$0xff] (!%p170_p3)   ;;  %v1897_v21 = vld [vmem:[%s2419_s1 + $0xe8] sm:$0xff] (!%p170_p3)  }
   0xc   : > { %v1890_v14 = vld [vmem:[%s2419_s1 + $0x18] sm:$0xff] (!%p170_p3)   ;;  %v1894_v18 = vld [vmem:[%s2419_s1 + $0x20] sm:$0xff] (!%p170_p3)   ;;  %v1898_v22 = vld [vmem:[%s2419_s1 + $0x28] sm:$0xff] (!%p170_p3)  }
   0xd   : > { %1630 = vmatpush3.bf16.msra.mxu0 (!%p170_p3), %v1882_v6  ;;  %v1891_v15 = vld [vmem:[%s2419_s1 + $0x98] sm:$0xff] (!%p170_p3)   ;;  %v1895_v19 = vld [vmem:[%s2419_s1 + $0xa0] sm:$0xff] (!%p170_p3)   ;;  %v1899_v23 = vld [vmem:[%s2419_s1 + $0xa8] sm:$0xff] (!%p170_p3)  }
   0xe   : > { %1742 = vmatpush3.bf16.msra.mxu1 %v1883_v7  ;;  %1631 = vmatprep.subr.bf16.mxu0 %v1884_v8  ;;  %s2427_s25 = smov (!%p205_p4, %s1522_s25), 63  ;;  %v1900_v24 = vld [vmem:[%s2419_s1 + $0x70] sm:$0xff]   ;;  %v1904_v28 = vld [vmem:[%s2419_s1 + $0x78] sm:$0xff]  }
   0xf   : > { %1743 = vmatprep.subr.bf16.mxu1 %v1885_v9  ;;  %v1901_v25 = vld [vmem:[%s2419_s1 + $0xf0] sm:$0xff]   ;;  %s1626_s24 = sshll.u32 %s2427_s25, 4  ;;  %v1905_v29 = vld [vmem:[%s2419_s1 + $0xf8] sm:$0xff]   ;;  %s1526_s11 = sshll.u32 %s2427_s25, 3 }
  0x10   : > { %v1902_v26 = vld [vmem:[%s2419_s1 + $0x30] sm:$0xff]   ;;  %s2166_s12 = scalar_lea.vmem %s2418_s0, %s1626_s24  ;;  %v1906_v30 = vld [vmem:[%s2419_s1 + $0x38] sm:$0xff]   ;;  %s2281_s20 = scalar_lea.vmem %s2421_s3, %s1526_s11 }
  0x11   : > { %1632 = vmatpush3.bf16.msra.mxu0 %v1886_v10  ;;  %v1903_v27 = vld [vmem:[%s2419_s1 + $0xb0] sm:$0xff]   ;;  %v1907_v31 = vld [vmem:[%s2419_s1 + $0xb8] sm:$0xff]  }
  0x12   : > { %1744 = vmatpush3.bf16.msra.mxu1 %v1887_v11  ;;  %1633 = vmatprep.subr.bf16.mxu0 %v1888_v12  ;;  %v1908_v32 = vld [vmem:[%s2166_s12] ss:$16 sps:$4 sm:$0xff]   ;;  %v1910_v33 = vld [vmem:[%s2166_s12 + $0x4] ss:$16 sps:$4 sm:$0xff]   ;;  %v1911_v34 = vld [vmem:[%s2166_s12 + $0x8] ss:$16 sps:$4 sm:$0xff]  }
  0x13   : > { %1745 = vmatprep.subr.bf16.mxu1 %v1889_v13  ;;  %v1913_v35 = vld [vmem:[%s2166_s12 + $0xc] ss:$16 sps:$4 sm:$0xff]   ;;  %969 = vmatprep.mubr.bf16.mxu0 %v1910_v33  ;;  %v1914_v36 = vld [vmem:[%s2166_s12 + $0x24] ss:$16 sps:$4 sm:$0xff]   ;;  %v1918_v38 = vld [vmem:[%s2166_s12 + $0x20] ss:$16 sps:$4 sm:$0xff]  }
  0x14   : > { %1130 = vmatprep.mubr.bf16.mxu1 %v1913_v35  ;;  %v1916_v37 = vld [vmem:[%s2166_s12 + $0x2c] ss:$16 sps:$4 sm:$0xff]   ;;  %v1919_v39 = vld [vmem:[%s2166_s12 + $0x28] ss:$16 sps:$4 sm:$0xff]   ;;  %v1920_v40 = vld [vmem:[%s2166_s12 + $0x44] ss:$16 sps:$4 sm:$0xff]  }
  0x15   : > { %1634 = vmatpush3.bf16.msra.mxu0 %v1890_v14  ;;  %v1922_v41 = vld [vmem:[%s2166_s12 + $0x4c] ss:$16 sps:$4 sm:$0xff]   ;;  %v1924_v42 = vld [vmem:[%s2166_s12 + $0x40] ss:$16 sps:$4 sm:$0xff]   ;;  %v1925_v43 = vld [vmem:[%s2166_s12 + $0x48] ss:$16 sps:$4 sm:$0xff]  }
  0x16   : > { %1746 = vmatpush3.bf16.msra.mxu1 %v1891_v15  ;;  %1635 = vmatprep.subr.bf16.mxu0 %v1892_v16  ;;  %v1926_v44 = vld [vmem:[%s2166_s12 + $0x64] ss:$16 sps:$4 sm:$0xff]   ;;  %v1928_v45 = vld [vmem:[%s2166_s12 + $0x6c] ss:$16 sps:$4 sm:$0xff]   ;;  %v1930_v46 = vld [vmem:[%s2166_s12 + $0x60] ss:$16 sps:$4 sm:$0xff]  }
  0x17   : > { %1747 = vmatprep.subr.bf16.mxu1 %v1893_v17  ;;  %v1931_v47 = vld [vmem:[%s2166_s12 + $0x68] ss:$16 sps:$4 sm:$0xff]   ;;  %v1932_v48 = vld [vmem:[%s2166_s12 + $0x84] ss:$16 sps:$4 sm:$0xff]   ;;  %v1934_v49 = vld [vmem:[%s2166_s12 + $0x8c] ss:$16 sps:$4 sm:$0xff]  }
  0x18   : > { %v1936_v50 = vld [vmem:[%s2166_s12 + $0x80] ss:$16 sps:$4 sm:$0xff]   ;;  %v1937_v51 = vld [vmem:[%s2166_s12 + $0x88] ss:$16 sps:$4 sm:$0xff]   ;;  %v1938_v52 = vld [vmem:[%s2166_s12 + $0xa4] ss:$16 sps:$4 sm:$0xff]  }
  0x19   : > { %1636 = vmatpush3.bf16.msra.mxu0 %v1894_v18  ;;  %v1940_v53 = vld [vmem:[%s2166_s12 + $0xac] ss:$16 sps:$4 sm:$0xff]   ;;  %v1942_v54 = vld [vmem:[%s2166_s12 + $0xa0] ss:$16 sps:$4 sm:$0xff]   ;;  %v1943_v55 = vld [vmem:[%s2166_s12 + $0xa8] ss:$16 sps:$4 sm:$0xff]  }
  0x1a   : > { %1748 = vmatpush3.bf16.msra.mxu1 %v1895_v19  ;;  %1637 = vmatprep.subr.bf16.mxu0 %v1896_v20  ;;  %v1944_v56 = vld [vmem:[%s2166_s12 + $0xc4] ss:$16 sps:$4 sm:$0xff]   ;;  %v1946_v57 = vld [vmem:[%s2166_s12 + $0xcc] ss:$16 sps:$4 sm:$0xff]   ;;  %v1948_v58 = vld [vmem:[%s2166_s12 + $0xc0] ss:$16 sps:$4 sm:$0xff]  }
  0x1b   : > { %1749 = vmatprep.subr.bf16.mxu1 %v1897_v21  ;;  %v1949_v59 = vld [vmem:[%s2166_s12 + $0xc8] ss:$16 sps:$4 sm:$0xff]   ;;  %v1950_v60 = vld [vmem:[%s2166_s12 + $0xe4] ss:$16 sps:$4 sm:$0xff]   ;;  %v1952_v61 = vld [vmem:[%s2166_s12 + $0xec] ss:$16 sps:$4 sm:$0xff]  }
  0x1c   : > { %v1954_v62 = vld [vmem:[%s2166_s12 + $0xe0] ss:$16 sps:$4 sm:$0xff]   ;;  %v1955_v63 = vld [vmem:[%s2166_s12 + $0xe8] ss:$16 sps:$4 sm:$0xff]   ;;  %v1956_v0 = vld [vmem:[%s2166_s12 + $0x104] ss:$16 sps:$4 sm:$0xff]  }
  0x1d   : > { %1638 = vmatpush3.bf16.msra.mxu0 %v1898_v22  ;;  %v1958_v1 = vld [vmem:[%s2166_s12 + $0x10c] ss:$16 sps:$4 sm:$0xff]   ;;  %v1960_v2 = vld [vmem:[%s2166_s12 + $0x100] ss:$16 sps:$4 sm:$0xff]   ;;  %v1961_v3 = vld [vmem:[%s2166_s12 + $0x108] ss:$16 sps:$4 sm:$0xff]  }
  0x1e   : > { %1750 = vmatpush3.bf16.msra.mxu1 %v1899_v23  ;;  %1639 = vmatprep.subr.bf16.mxu0 %v1900_v24  ;;  %v1962_v4 = vld [vmem:[%s2166_s12 + $0x124] ss:$16 sps:$4 sm:$0xff]   ;;  %v1964_v5 = vld [vmem:[%s2166_s12 + $0x12c] ss:$16 sps:$4 sm:$0xff]   ;;  %v1966_v6 = vld [vmem:[%s2166_s12 + $0x120] ss:$16 sps:$4 sm:$0xff]  }
  0x1f   : > { %1751 = vmatprep.subr.bf16.mxu1 %v1901_v25  ;;  %v1967_v7 = vld [vmem:[%s2166_s12 + $0x128] ss:$16 sps:$4 sm:$0xff]   ;;  %v1968_v8 = vld [vmem:[%s2166_s12 + $0x144] ss:$16 sps:$4 sm:$0xff]   ;;  %v1970_v9 = vld [vmem:[%s2166_s12 + $0x14c] ss:$16 sps:$4 sm:$0xff]  }
  0x20   : > { %v1972_v10 = vld [vmem:[%s2166_s12 + $0x140] ss:$16 sps:$4 sm:$0xff]   ;;  %v1973_v11 = vld [vmem:[%s2166_s12 + $0x148] ss:$16 sps:$4 sm:$0xff]   ;;  %v1974_v12 = vld [vmem:[%s2166_s12 + $0x164] ss:$16 sps:$4 sm:$0xff]  }
  0x21   : > { %1640 = vmatpush3.bf16.msra.mxu0 %v1902_v26  ;;  %v1976_v13 = vld [vmem:[%s2166_s12 + $0x16c] ss:$16 sps:$4 sm:$0xff]   ;;  %v2028_v14 = vmov 0.0   ;;  %v1978_v15 = vld [vmem:[%s2166_s12 + $0x160] ss:$16 sps:$4 sm:$0xff]  }
  0x22   : > { %1752 = vmatpush3.bf16.msra.mxu1 %v1903_v27  ;;  %1641 = vmatprep.subr.bf16.mxu0 %v1904_v28  ;;  %233 = vst.msk [vmem:[#allocation2] sm:$0xff] %vm232_vm0, %v2028_v14  ;;  %234 = vst.msk [vmem:[#allocation2 + $0x8] sm:$0xff] %vm232_vm0, %v2028_v14  ;;  %v1979_v16 = vld [vmem:[%s2166_s12 + $0x168] ss:$16 sps:$4 sm:$0xff]   ;;  %v1980_v17 = vld [vmem:[%s2166_s12 + $0x184] ss:$16 sps:$4 sm:$0xff]  }
  0x23   : > { %1753 = vmatprep.subr.bf16.mxu1 %v1905_v29  ;;  %235 = vst.msk [vmem:[#allocation2 + $0x10] sm:$0xff] %vm232_vm0, %v2028_v14  ;;  %236 = vst.msk [vmem:[#allocation2 + $0x18] sm:$0xff] %vm232_vm0, %v2028_v14  ;;  %v1982_v18 = vld [vmem:[%s2166_s12 + $0x18c] ss:$16 sps:$4 sm:$0xff]   ;;  %v1984_v19 = vld [vmem:[%s2166_s12 + $0x180] ss:$16 sps:$4 sm:$0xff]  }
  0x24   : > { %237 = vst.msk [vmem:[#allocation2 + $0x20] sm:$0xff] %vm232_vm0, %v2028_v14  ;;  %238 = vst.msk [vmem:[#allocation2 + $0x28] sm:$0xff] %vm232_vm0, %v2028_v14  ;;  %v1985_v20 = vld [vmem:[%s2166_s12 + $0x188] ss:$16 sps:$4 sm:$0xff]   ;;  %v1986_v21 = vld [vmem:[%s2166_s12 + $0x1a4] ss:$16 sps:$4 sm:$0xff]  }
  0x25   : > { %1642 = vmatpush3.bf16.msra.mxu0 %v1906_v30  ;;  %239 = vst.msk [vmem:[#allocation2 + $0x30] sm:$0xff] %vm232_vm0, %v2028_v14  ;;  %240 = vst.msk [vmem:[#allocation2 + $0x38] sm:$0xff] %vm232_vm0, %v2028_v14  ;;  %v1988_v22 = vld [vmem:[%s2166_s12 + $0x1ac] ss:$16 sps:$4 sm:$0xff]   ;;  %v1990_v23 = vld [vmem:[%s2166_s12 + $0x1a0] ss:$16 sps:$4 sm:$0xff]  }
  0x26   : > { %1754 = vmatpush3.bf16.msra.mxu1 %v1907_v31  ;;  %241 = vst.msk [vmem:[#allocation2 + $0x40] sm:$0xff] %vm232_vm0, %v2028_v14  ;;  %242 = vst.msk [vmem:[#allocation2 + $0x48] sm:$0xff] %vm232_vm0, %v2028_v14  ;;  %v1991_v24 = vld [vmem:[%s2166_s12 + $0x1a8] ss:$16 sps:$4 sm:$0xff]   ;;  %v1992_v25 = vld [vmem:[%s2166_s12 + $0x1c4] ss:$16 sps:$4 sm:$0xff]  }
  0x27   : > { %243 = vst.msk [vmem:[#allocation2 + $0x50] sm:$0xff] %vm232_vm0, %v2028_v14  ;;  %244 = vst.msk [vmem:[#allocation2 + $0x58] sm:$0xff] %vm232_vm0, %v2028_v14  ;;  %v1994_v26 = vld [vmem:[%s2166_s12 + $0x1cc] ss:$16 sps:$4 sm:$0xff]   ;;  %v1996_v27 = vld [vmem:[%s2166_s12 + $0x1c0] ss:$16 sps:$4 sm:$0xff]  }
  0x28   : > { %970 = vmatmul.mubr.bf16.vlgmr.msra.gmra.mrb[0].mxu0 %v1908_v32  ;;  %245 = vst.msk [vmem:[#allocation2 + $0x60] sm:$0xff] %vm232_vm0, %v2028_v14  ;;  %246 = vst.msk [vmem:[#allocation2 + $0x68] sm:$0xff] %vm232_vm0, %v2028_v14  ;;  %v1997_v28 = vld [vmem:[%s2166_s12 + $0x1c8] ss:$16 sps:$4 sm:$0xff]   ;;  %v1998_v29 = vld [vmem:[%s2166_s12 + $0x1e4] ss:$16 sps:$4 sm:$0xff]  }
  0x29   : > { %1131 = vmatmul.mubr.bf16.vlgmr.msra.gmra.mrb[0].mxu1 %v1911_v34  ;;  %977 = vmatprep.mubr.bf16.mxu0 %v1914_v36  ;;  %247 = vst.msk [vmem:[#allocation2 + $0x70] sm:$0xff] %vm232_vm0, %v2028_v14  ;;  %248 = vst.msk [vmem:[#allocation2 + $0x78] sm:$0xff] %vm232_vm0, %v2028_v14  ;;  %v2000_v30 = vld [vmem:[%s2166_s12 + $0x1ec] ss:$16 sps:$4 sm:$0xff]   ;;  %v2002_v31 = vld [vmem:[%s2166_s12 + $0x1e0] ss:$16 sps:$4 sm:$0xff]  }
  0x2a   : > { %1138 = vmatprep.mubr.bf16.mxu1 %v1916_v37  ;;  %249 = vst.msk [vmem:[#allocation2 + $0x80] sm:$0xff] %vm232_vm0, %v2028_v14  ;;  %250 = vst.msk [vmem:[#allocation2 + $0x88] sm:$0xff] %vm232_vm0, %v2028_v14  ;;  %v2003_v32 = vld [vmem:[%s2166_s12 + $0x1e8] ss:$16 sps:$4 sm:$0xff]  }
  0x2b   : > { %251 = vst.msk [vmem:[#allocation2 + $0x90] sm:$0xff] %vm232_vm0, %v2028_v14  ;;  %252 = vst.msk [vmem:[#allocation2 + $0x98] sm:$0xff] %vm232_vm0, %v2028_v14 }
  0x2c   : > { %253 = vst.msk [vmem:[#allocation2 + $0xa0] sm:$0xff] %vm232_vm0, %v2028_v14  ;;  %254 = vst.msk [vmem:[#allocation2 + $0xa8] sm:$0xff] %vm232_vm0, %v2028_v14 }
  0x2d   : > { %255 = vst.msk [vmem:[#allocation2 + $0xb0] sm:$0xff] %vm232_vm0, %v2028_v14  ;;  %256 = vst.msk [vmem:[#allocation2 + $0xb8] sm:$0xff] %vm232_vm0, %v2028_v14 }
  0x2e   : > { %257 = vst.msk [vmem:[#allocation2 + $0xc0] sm:$0xff] %vm232_vm0, %v2028_v14  ;;  %258 = vst.msk [vmem:[#allocation2 + $0xc8] sm:$0xff] %vm232_vm0, %v2028_v14 }
  0x2f   : > { %259 = vst.msk [vmem:[#allocation2 + $0xd0] sm:$0xff] %vm232_vm0, %v2028_v14  ;;  %260 = vst.msk [vmem:[#allocation2 + $0xd8] sm:$0xff] %vm232_vm0, %v2028_v14 }
  0x30   : > { %978 = vmatmul.mubr.bf16.gmra.mrb[4].mxu0 %v1918_v38  ;;  %261 = vst.msk [vmem:[#allocation2 + $0xe0] sm:$0xff] %vm232_vm0, %v2028_v14  ;;  %262 = vst.msk [vmem:[#allocation2 + $0xe8] sm:$0xff] %vm232_vm0, %v2028_v14 }
  0x31   : > { %1139 = vmatmul.mubr.bf16.gmra.mrb[4].mxu1 %v1919_v39  ;;  %985 = vmatprep.mubr.bf16.mxu0 %v1920_v40  ;;  %263 = vst.msk [vmem:[#allocation2 + $0xf0] sm:$0xff] %vm232_vm0, %v2028_v14  ;;  %264 = vst.msk [vmem:[#allocation2 + $0xf8] sm:$0xff] %vm232_vm0, %v2028_v14 }
  0x32   : > { %1146 = vmatprep.mubr.bf16.mxu1 %v1922_v41 }
  0x38   : > { %986 = vmatmul.mubr.bf16.gmra.mrb[8].mxu0 %v1924_v42  ;;  %v265_v42 = vld [vmem:[#allocation2] sm:$0xff] }
  0x39   : > { %1147 = vmatmul.mubr.bf16.gmra.mrb[8].mxu1 %v1925_v43  ;;  %993 = vmatprep.mubr.bf16.mxu0 %v1926_v44 }
  0x3a   : > { %1154 = vmatprep.mubr.bf16.mxu1 %v1928_v45 }
  0x40   : > { %994 = vmatmul.mubr.bf16.gmra.mrb[12].mxu0 %v1930_v46 }
  0x41   : > { %1155 = vmatmul.mubr.bf16.gmra.mrb[12].mxu1 %v1931_v47  ;;  %1001 = vmatprep.mubr.bf16.mxu0 %v1932_v48  ;;  %v266_v47 = vld [vmem:[#allocation2 + $0x8] sm:$0xff] }
  0x42   : > { %1162 = vmatprep.mubr.bf16.mxu1 %v1934_v49 }
  0x48   : > { %1002 = vmatmul.mubr.bf16.gmra.mrb[16].mxu0 %v1936_v50 }
  0x49   : > { %1163 = vmatmul.mubr.bf16.gmra.mrb[16].mxu1 %v1937_v51  ;;  %1009 = vmatprep.mubr.bf16.mxu0 %v1938_v52 }
  0x4a   : > { %1170 = vmatprep.mubr.bf16.mxu1 %v1940_v53 }
  0x50   : > { %1010 = vmatmul.mubr.bf16.gmra.mrb[20].mxu0 %v1942_v54 }
  0x51   : > { %1171 = vmatmul.mubr.bf16.gmra.mrb[20].mxu1 %v1943_v55  ;;  %1017 = vmatprep.mubr.bf16.mxu0 %v1944_v56 }
  0x52   : > { %1178 = vmatprep.mubr.bf16.mxu1 %v1946_v57 }
  0x58   : > { %1018 = vmatmul.mubr.bf16.gmra.mrb[24].mxu0 %v1948_v58 }
  0x59   : > { %1179 = vmatmul.mubr.bf16.gmra.mrb[24].mxu1 %v1949_v59  ;;  %1025 = vmatprep.mubr.bf16.mxu0 %v1950_v60  ;;  %v267_v60 = vld [vmem:[#allocation2 + $0x10] sm:$0xff] }
  0x5a   : > { %1186 = vmatprep.mubr.bf16.mxu1 %v1952_v61 }
  0x60   : > { %1026 = vmatmul.mubr.bf16.gmra.mrb[28].mxu0 %v1954_v62 }
  0x61   : > { %1187 = vmatmul.mubr.bf16.gmra.mrb[28].mxu1 %v1955_v63  ;;  %1033 = vmatprep.mubr.bf16.mxu0 %v1956_v0 }
  0x62   : > { %1194 = vmatprep.mubr.bf16.mxu1 %v1958_v1  ;;  %v2276_v1 = vld [vmem:[%s2420_s2] ss:$0 sm:$0xff] }
  0x68   : > { %1034 = vmatmul.mubr.bf16.gmra.mrb[32].mxu0 %v1960_v2  ;;  %v268_v2 = vld [vmem:[#allocation2 + $0x18] sm:$0xff] }
  0x69   : > { %1195 = vmatmul.mubr.bf16.gmra.mrb[32].mxu1 %v1961_v3  ;;  %1041 = vmatprep.mubr.bf16.mxu0 %v1962_v4 }
  0x6a   : > { %1202 = vmatprep.mubr.bf16.mxu1 %v1964_v5 }
  0x70   : > { %1042 = vmatmul.mubr.bf16.gmra.mrb[36].mxu0 %v1966_v6 }
  0x71   : > { %1203 = vmatmul.mubr.bf16.gmra.mrb[36].mxu1 %v1967_v7  ;;  %1049 = vmatprep.mubr.bf16.mxu0 %v1968_v8 }
  0x72   : > { %1210 = vmatprep.mubr.bf16.mxu1 %v1970_v9 }
  0x78   : > { %1050 = vmatmul.mubr.bf16.gmra.mrb[40].mxu0 %v1972_v10 }
  0x79   : > { %1211 = vmatmul.mubr.bf16.gmra.mrb[40].mxu1 %v1973_v11  ;;  %1057 = vmatprep.mubr.bf16.mxu0 %v1974_v12 }
  0x7a   : > { %1218 = vmatprep.mubr.bf16.mxu1 %v1976_v13 }
  0x80   : > { %1058 = vmatmul.mubr.bf16.gmra.mrb[44].mxu0 %v1978_v15 }
  0x81   : > { %1219 = vmatmul.mubr.bf16.gmra.mrb[44].mxu1 %v1979_v16  ;;  %1065 = vmatprep.mubr.bf16.mxu0 %v1980_v17 }
  0x82   : > { %1226 = vmatprep.mubr.bf16.mxu1 %v1982_v18 }
  0x88   : > { %1066 = vmatmul.mubr.bf16.gmra.mrb[48].mxu0 %v1984_v19  ;;  %v269_v19 = vld [vmem:[#allocation2 + $0x20] sm:$0xff] }
  0x89   : > { %1227 = vmatmul.mubr.bf16.gmra.mrb[48].mxu1 %v1985_v20  ;;  %1073 = vmatprep.mubr.bf16.mxu0 %v1986_v21 }
  0x8a   : > { %1234 = vmatprep.mubr.bf16.mxu1 %v1988_v22 }
  0x90   : > { %1074 = vmatmul.mubr.bf16.gmra.mrb[52].mxu0 %v1990_v23 }
  0x91   : > { %1235 = vmatmul.mubr.bf16.gmra.mrb[52].mxu1 %v1991_v24  ;;  %1081 = vmatprep.mubr.bf16.mxu0 %v1992_v25  ;;  %v270_v24 = vld [vmem:[#allocation2 + $0x28] sm:$0xff] }
  0x92   : > { %1242 = vmatprep.mubr.bf16.mxu1 %v1994_v26 }
  0x98   : > { %1082 = vmatmul.mubr.bf16.gmra.mrb[56].mxu0 %v1996_v27 }
  0x99   : > { %1243 = vmatmul.mubr.bf16.gmra.mrb[56].mxu1 %v1997_v28  ;;  %1089 = vmatprep.mubr.bf16.mxu0 %v1998_v29 }
  0x9a   : > { %1250 = vmatprep.mubr.bf16.mxu1 %v2000_v30 }
  0xa0   : > { %1090 = vmatmul.mubr.bf16.gmra.mrb[60].mxu0 %v2002_v31 }
  0xa1   : > { %1251 = vmatmul.mubr.bf16.gmra.mrb[60].mxu1 %v2003_v32 }
  0xfb   : > { %v1643_v33 = vpop.f32.mrb[0].mxu0 }
  0xfc   : > { %v1755_v34 = vpop.f32.mrb[0].mxu1  ;;  %v1644_v35 = vpop.f32.mrb[1].mxu0 }
  0xfd   : > { %v1645_v36 = vadd.f32 %v1644_v35, %v1643_v33  ;;  %v1756_v37 = vpop.f32.mrb[1].mxu1  ;;  %v1646_v38 = vpop.f32.mrb[2].mxu0 }
  0xfe   : > { %v1757_v39 = vadd.f32 %v1756_v37, %v1755_v34  ;;  %v1758_v40 = vpop.f32.mrb[2].mxu1  ;;  %v1647_v41 = vpop.f32.mrb[3].mxu0 }
  0xff   : > { %v1648_v43 = vadd.f32 %v1647_v41, %v1646_v38  ;;  %v1759_v44 = vpop.f32.mrb[3].mxu1  ;;  %v271_v41 = vld [vmem:[#allocation2 + $0x30] sm:$0xff] }
 0x100   : > { %v1133_v45 = vadd.f32 %v1757_v39, %v1645_v36  ;;  %v1760_v46 = vadd.f32 %v1759_v44, %v1758_v40 }
 0x102   : > { %v1259_v48 = vadd.f32 %v1133_v45, %v265_v42  ;;  %v1136_v49 = vadd.f32 %v1760_v46, %v1648_v43  ;;  %v272_v46 = vld [vmem:[#allocation2 + $0x38] sm:$0xff] }
 0x103   : > { %v1649_v50 = vpop.f32.mrb[4].mxu0 }
 0x104   : > { %1292 = vst.msk [vmem:[#allocation2] sm:$0xff] %vm232_vm0, %v1259_v48  ;;  %v1260_v51 = vadd.f32 %v1136_v49, %v266_v47  ;;  %v1761_v52 = vpop.f32.mrb[4].mxu1  ;;  %v1650_v53 = vpop.f32.mrb[5].mxu0 }
 0x105   : > { %v1651_v54 = vadd.f32 %v1650_v53, %v1649_v50  ;;  %v1762_v55 = vpop.f32.mrb[5].mxu1  ;;  %v1652_v56 = vpop.f32.mrb[6].mxu0 }
 0x106   : > { %1293 = vst.msk [vmem:[#allocation2 + $0x8] sm:$0xff] %vm232_vm0, %v1260_v51  ;;  %v1763_v57 = vadd.f32 %v1762_v55, %v1761_v52  ;;  %v1764_v58 = vpop.f32.mrb[6].mxu1  ;;  %v1653_v59 = vpop.f32.mrb[7].mxu0 }
 0x107   : > { %v1654_v61 = vadd.f32 %v1653_v59, %v1652_v56  ;;  %v1765_v62 = vpop.f32.mrb[7].mxu1 }
 0x108   : > { %v1141_v63 = vadd.f32 %v1763_v57, %v1651_v54  ;;  %v1766_v0 = vadd.f32 %v1765_v62, %v1764_v58 }
 0x10a   : > { %v1261_v3 = vadd.f32 %v1141_v63, %v267_v60  ;;  %v1144_v4 = vadd.f32 %v1766_v0, %v1654_v61  ;;  %v273_v63 = vld [vmem:[#allocation2 + $0x40] sm:$0xff] }
 0x10b   : > { %v1327_v5 = vld [vmem:[#allocation2] sm:$0xff]  ;;  %v1655_v6 = vpop.f32.mrb[8].mxu0 }
 0x10c   : > { %v1366_v7 = vadd.f32 %v2276_v1, %v1327_v5  ;;  %1294 = vst.msk [vmem:[#allocation2 + $0x10] sm:$0xff] %vm232_vm0, %v1261_v3  ;;  %v1262_v8 = vadd.f32 %v1144_v4, %v268_v2  ;;  %v1767_v9 = vpop.f32.mrb[8].mxu1  ;;  %v1656_v10 = vpop.f32.mrb[9].mxu0  ;;  %v274_v5 = vld [vmem:[#allocation2 + $0x48] sm:$0xff] }
 0x10d   : > { %v1328_v11 = vld [vmem:[#allocation2 + $0x8] sm:$0xff]  ;;  %v1657_v12 = vadd.f32 %v1656_v10, %v1655_v6  ;;  %v1768_v13 = vpop.f32.mrb[9].mxu1  ;;  %v1658_v14 = vpop.f32.mrb[10].mxu0 }
 0x10e   : > { %1398 = vst.msk [vmem:[%s2281_s20] sm:$0xff] %vm232_vm0, %v1366_v7  ;;  %v1367_v15 = vadd.f32 %v2276_v1, %v1328_v11  ;;  %1295 = vst.msk [vmem:[#allocation2 + $0x18] sm:$0xff] %vm232_vm0, %v1262_v8  ;;  %v1769_v16 = vadd.f32 %v1768_v13, %v1767_v9  ;;  %v1770_v17 = vpop.f32.mrb[10].mxu1  ;;  %v1659_v18 = vpop.f32.mrb[11].mxu0 }
 0x10f   : > { %v1660_v20 = vadd.f32 %v1659_v18, %v1658_v14  ;;  %v1771_v21 = vpop.f32.mrb[11].mxu1 }
 0x110   : > { %1399 = vst.msk [vmem:[%s2281_s20 + $0x8] sm:$0xff] %vm232_vm0, %v1367_v15  ;;  %v1149_v22 = vadd.f32 %v1769_v16, %v1657_v12  ;;  %v1772_v23 = vadd.f32 %v1771_v21, %v1770_v17 }
 0x112   : > { %v1263_v25 = vadd.f32 %v1149_v22, %v269_v19  ;;  %v1152_v26 = vadd.f32 %v1772_v23, %v1660_v20  ;;  %v275_v22 = vld [vmem:[#allocation2 + $0x50] sm:$0xff] }
 0x113   : > { %v1329_v27 = vld [vmem:[#allocation2 + $0x10] sm:$0xff]  ;;  %v1661_v28 = vpop.f32.mrb[12].mxu0 }
 0x114   : > { %v1368_v29 = vadd.f32 %v2276_v1, %v1329_v27  ;;  %1296 = vst.msk [vmem:[#allocation2 + $0x20] sm:$0xff] %vm232_vm0, %v1263_v25  ;;  %v1264_v30 = vadd.f32 %v1152_v26, %v270_v24  ;;  %v1773_v31 = vpop.f32.mrb[12].mxu1  ;;  %v1662_v32 = vpop.f32.mrb[13].mxu0  ;;  %v276_v27 = vld [vmem:[#allocation2 + $0x58] sm:$0xff] }
 0x115   : > { %v1330_v33 = vld [vmem:[#allocation2 + $0x18] sm:$0xff]  ;;  %v1663_v34 = vadd.f32 %v1662_v32, %v1661_v28  ;;  %v1774_v35 = vpop.f32.mrb[13].mxu1  ;;  %v1664_v36 = vpop.f32.mrb[14].mxu0 }
 0x116   : > { %1400 = vst.msk [vmem:[%s2281_s20 + $0x10] sm:$0xff] %vm232_vm0, %v1368_v29  ;;  %v1369_v37 = vadd.f32 %v2276_v1, %v1330_v33  ;;  %1297 = vst.msk [vmem:[#allocation2 + $0x28] sm:$0xff] %vm232_vm0, %v1264_v30  ;;  %v1775_v38 = vadd.f32 %v1774_v35, %v1773_v31  ;;  %v1776_v39 = vpop.f32.mrb[14].mxu1  ;;  %v1665_v40 = vpop.f32.mrb[15].mxu0 }
 0x117   : > { %v1666_v42 = vadd.f32 %v1665_v40, %v1664_v36  ;;  %v1777_v43 = vpop.f32.mrb[15].mxu1 }
 0x118   : > { %1401 = vst.msk [vmem:[%s2281_s20 + $0x18] sm:$0xff] %vm232_vm0, %v1369_v37  ;;  %v1157_v44 = vadd.f32 %v1775_v38, %v1663_v34  ;;  %v1778_v45 = vadd.f32 %v1777_v43, %v1776_v39 }
 0x11a   : > { %v1265_v47 = vadd.f32 %v1157_v44, %v271_v41  ;;  %v1160_v48 = vadd.f32 %v1778_v45, %v1666_v42  ;;  %v277_v44 = vld [vmem:[#allocation2 + $0x60] sm:$0xff] }
 0x11b   : > { %v1331_v49 = vld [vmem:[#allocation2 + $0x20] sm:$0xff]  ;;  %v1667_v50 = vpop.f32.mrb[16].mxu0 }
 0x11c   : > { %v1370_v51 = vadd.f32 %v2276_v1, %v1331_v49  ;;  %1298 = vst.msk [vmem:[#allocation2 + $0x30] sm:$0xff] %vm232_vm0, %v1265_v47  ;;  %v1266_v52 = vadd.f32 %v1160_v48, %v272_v46  ;;  %v1779_v53 = vpop.f32.mrb[16].mxu1  ;;  %v1668_v54 = vpop.f32.mrb[17].mxu0  ;;  %v278_v49 = vld [vmem:[#allocation2 + $0x68] sm:$0xff] }
 0x11d   : > { %v1332_v55 = vld [vmem:[#allocation2 + $0x28] sm:$0xff]  ;;  %v1669_v56 = vadd.f32 %v1668_v54, %v1667_v50  ;;  %v1780_v57 = vpop.f32.mrb[17].mxu1  ;;  %v1670_v58 = vpop.f32.mrb[18].mxu0 }
 0x11e   : > { %1402 = vst.msk [vmem:[%s2281_s20 + $0x20] sm:$0xff] %vm232_vm0, %v1370_v51  ;;  %v1371_v59 = vadd.f32 %v2276_v1, %v1332_v55  ;;  %1299 = vst.msk [vmem:[#allocation2 + $0x38] sm:$0xff] %vm232_vm0, %v1266_v52  ;;  %v1781_v60 = vadd.f32 %v1780_v57, %v1779_v53  ;;  %v1782_v61 = vpop.f32.mrb[18].mxu1  ;;  %v1671_v62 = vpop.f32.mrb[19].mxu0 }
 0x11f   : > { %v1672_v0 = vadd.f32 %v1671_v62, %v1670_v58  ;;  %v1783_v2 = vpop.f32.mrb[19].mxu1 }
 0x120   : > { %1403 = vst.msk [vmem:[%s2281_s20 + $0x28] sm:$0xff] %vm232_vm0, %v1371_v59  ;;  %v1165_v3 = vadd.f32 %v1781_v60, %v1669_v56  ;;  %v1784_v4 = vadd.f32 %v1783_v2, %v1782_v61 }
 0x122   : > { %v1267_v6 = vadd.f32 %v1165_v3, %v273_v63  ;;  %v1168_v7 = vadd.f32 %v1784_v4, %v1672_v0  ;;  %v279_v3 = vld [vmem:[#allocation2 + $0x70] sm:$0xff] }
 0x123   : > { %v1333_v8 = vld [vmem:[#allocation2 + $0x30] sm:$0xff]  ;;  %v1673_v9 = vpop.f32.mrb[20].mxu0 }
 0x124   : > { %v1372_v10 = vadd.f32 %v2276_v1, %v1333_v8  ;;  %1300 = vst.msk [vmem:[#allocation2 + $0x40] sm:$0xff] %vm232_vm0, %v1267_v6  ;;  %v1268_v11 = vadd.f32 %v1168_v7, %v274_v5  ;;  %v1785_v12 = vpop.f32.mrb[20].mxu1  ;;  %v1674_v13 = vpop.f32.mrb[21].mxu0  ;;  %v280_v8 = vld [vmem:[#allocation2 + $0x78] sm:$0xff] }
 0x125   : > { %v1334_v14 = vld [vmem:[#allocation2 + $0x38] sm:$0xff]  ;;  %v1675_v15 = vadd.f32 %v1674_v13, %v1673_v9  ;;  %v1786_v16 = vpop.f32.mrb[21].mxu1  ;;  %v1676_v17 = vpop.f32.mrb[22].mxu0 }
 0x126   : > { %1404 = vst.msk [vmem:[%s2281_s20 + $0x30] sm:$0xff] %vm232_vm0, %v1372_v10  ;;  %v1373_v18 = vadd.f32 %v2276_v1, %v1334_v14  ;;  %1301 = vst.msk [vmem:[#allocation2 + $0x48] sm:$0xff] %vm232_vm0, %v1268_v11  ;;  %v1787_v19 = vadd.f32 %v1786_v16, %v1785_v12  ;;  %v1788_v20 = vpop.f32.mrb[22].mxu1  ;;  %v1677_v21 = vpop.f32.mrb[23].mxu0 }
 0x127   : > { %v1678_v23 = vadd.f32 %v1677_v21, %v1676_v17  ;;  %v1789_v24 = vpop.f32.mrb[23].mxu1 }
 0x128   : > { %1405 = vst.msk [vmem:[%s2281_s20 + $0x38] sm:$0xff] %vm232_vm0, %v1373_v18  ;;  %v1173_v25 = vadd.f32 %v1787_v19, %v1675_v15  ;;  %v1790_v26 = vadd.f32 %v1789_v24, %v1788_v20 }
 0x12a   : > { %v1269_v28 = vadd.f32 %v1173_v25, %v275_v22  ;;  %v1176_v29 = vadd.f32 %v1790_v26, %v1678_v23  ;;  %v281_v25 = vld [vmem:[#allocation2 + $0x80] sm:$0xff] }
 0x12b   : > { %v1335_v30 = vld [vmem:[#allocation2 + $0x40] sm:$0xff]  ;;  %v1679_v31 = vpop.f32.mrb[24].mxu0 }
 0x12c   : > { %v1374_v32 = vadd.f32 %v2276_v1, %v1335_v30  ;;  %1302 = vst.msk [vmem:[#allocation2 + $0x50] sm:$0xff] %vm232_vm0, %v1269_v28  ;;  %v1270_v33 = vadd.f32 %v1176_v29, %v276_v27  ;;  %v1791_v34 = vpop.f32.mrb[24].mxu1  ;;  %v1680_v35 = vpop.f32.mrb[25].mxu0  ;;  %v282_v30 = vld [vmem:[#allocation2 + $0x88] sm:$0xff] }
 0x12d   : > { %v1336_v36 = vld [vmem:[#allocation2 + $0x48] sm:$0xff]  ;;  %v1681_v37 = vadd.f32 %v1680_v35, %v1679_v31  ;;  %v1792_v38 = vpop.f32.mrb[25].mxu1  ;;  %v1682_v39 = vpop.f32.mrb[26].mxu0 }
 0x12e   : > { %1406 = vst.msk [vmem:[%s2281_s20 + $0x40] sm:$0xff] %vm232_vm0, %v1374_v32  ;;  %v1375_v40 = vadd.f32 %v2276_v1, %v1336_v36  ;;  %1303 = vst.msk [vmem:[#allocation2 + $0x58] sm:$0xff] %vm232_vm0, %v1270_v33  ;;  %v1793_v41 = vadd.f32 %v1792_v38, %v1791_v34  ;;  %v1794_v42 = vpop.f32.mrb[26].mxu1  ;;  %v1683_v43 = vpop.f32.mrb[27].mxu0 }
 0x12f   : > { %v1684_v45 = vadd.f32 %v1683_v43, %v1682_v39  ;;  %v1795_v46 = vpop.f32.mrb[27].mxu1 }
 0x130   : > { %1407 = vst.msk [vmem:[%s2281_s20 + $0x48] sm:$0xff] %vm232_vm0, %v1375_v40  ;;  %v1181_v47 = vadd.f32 %v1793_v41, %v1681_v37  ;;  %v1796_v48 = vadd.f32 %v1795_v46, %v1794_v42 }
 0x132   : > { %v1271_v50 = vadd.f32 %v1181_v47, %v277_v44  ;;  %v1184_v51 = vadd.f32 %v1796_v48, %v1684_v45  ;;  %v283_v47 = vld [vmem:[#allocation2 + $0x90] sm:$0xff] }
 0x133   : > { %v1337_v52 = vld [vmem:[#allocation2 + $0x50] sm:$0xff]  ;;  %v1685_v53 = vpop.f32.mrb[28].mxu0 }
 0x134   : > { %v1376_v54 = vadd.f32 %v2276_v1, %v1337_v52  ;;  %1304 = vst.msk [vmem:[#allocation2 + $0x60] sm:$0xff] %vm232_vm0, %v1271_v50  ;;  %v1272_v55 = vadd.f32 %v1184_v51, %v278_v49  ;;  %v1797_v56 = vpop.f32.mrb[28].mxu1  ;;  %v1686_v57 = vpop.f32.mrb[29].mxu0  ;;  %v284_v52 = vld [vmem:[#allocation2 + $0x98] sm:$0xff] }
 0x135   : > { %v1338_v58 = vld [vmem:[#allocation2 + $0x58] sm:$0xff]  ;;  %v1687_v59 = vadd.f32 %v1686_v57, %v1685_v53  ;;  %v1798_v60 = vpop.f32.mrb[29].mxu1  ;;  %v1688_v61 = vpop.f32.mrb[30].mxu0 }
 0x136   : > { %1408 = vst.msk [vmem:[%s2281_s20 + $0x50] sm:$0xff] %vm232_vm0, %v1376_v54  ;;  %v1377_v62 = vadd.f32 %v2276_v1, %v1338_v58  ;;  %1305 = vst.msk [vmem:[#allocation2 + $0x68] sm:$0xff] %vm232_vm0, %v1272_v55  ;;  %v1799_v63 = vadd.f32 %v1798_v60, %v1797_v56  ;;  %v1800_v0 = vpop.f32.mrb[30].mxu1  ;;  %v1689_v2 = vpop.f32.mrb[31].mxu0 }
 0x137   : > { %v1690_v4 = vadd.f32 %v1689_v2, %v1688_v61  ;;  %v1801_v5 = vpop.f32.mrb[31].mxu1 }
 0x138   : > { %1409 = vst.msk [vmem:[%s2281_s20 + $0x58] sm:$0xff] %vm232_vm0, %v1377_v62  ;;  %v1189_v6 = vadd.f32 %v1799_v63, %v1687_v59  ;;  %v1802_v7 = vadd.f32 %v1801_v5, %v1800_v0 }
 0x13a   : > { %v1273_v9 = vadd.f32 %v1189_v6, %v279_v3  ;;  %v1192_v10 = vadd.f32 %v1802_v7, %v1690_v4  ;;  %v285_v6 = vld [vmem:[#allocation2 + $0xa0] sm:$0xff] }
 0x13b   : > { %v1339_v11 = vld [vmem:[#allocation2 + $0x60] sm:$0xff]  ;;  %v1691_v12 = vpop.f32.mrb[32].mxu0 }
 0x13c   : > { %v1378_v13 = vadd.f32 %v2276_v1, %v1339_v11  ;;  %1306 = vst.msk [vmem:[#allocation2 + $0x70] sm:$0xff] %vm232_vm0, %v1273_v9  ;;  %v1274_v14 = vadd.f32 %v1192_v10, %v280_v8  ;;  %v1803_v15 = vpop.f32.mrb[32].mxu1  ;;  %v1692_v16 = vpop.f32.mrb[33].mxu0  ;;  %v286_v11 = vld [vmem:[#allocation2 + $0xa8] sm:$0xff] }
 0x13d   : > { %v1340_v17 = vld [vmem:[#allocation2 + $0x68] sm:$0xff]  ;;  %v1693_v18 = vadd.f32 %v1692_v16, %v1691_v12  ;;  %v1804_v19 = vpop.f32.mrb[33].mxu1  ;;  %v1694_v20 = vpop.f32.mrb[34].mxu0 }
 0x13e   : > { %1410 = vst.msk [vmem:[%s2281_s20 + $0x60] sm:$0xff] %vm232_vm0, %v1378_v13  ;;  %v1379_v21 = vadd.f32 %v2276_v1, %v1340_v17  ;;  %1307 = vst.msk [vmem:[#allocation2 + $0x78] sm:$0xff] %vm232_vm0, %v1274_v14  ;;  %v1805_v22 = vadd.f32 %v1804_v19, %v1803_v15  ;;  %v1806_v23 = vpop.f32.mrb[34].mxu1  ;;  %v1695_v24 = vpop.f32.mrb[35].mxu0 }
 0x13f   : > { %v1696_v26 = vadd.f32 %v1695_v24, %v1694_v20  ;;  %v1807_v27 = vpop.f32.mrb[35].mxu1 }
 0x140   : > { %1411 = vst.msk [vmem:[%s2281_s20 + $0x68] sm:$0xff] %vm232_vm0, %v1379_v21  ;;  %v1197_v28 = vadd.f32 %v1805_v22, %v1693_v18  ;;  %v1808_v29 = vadd.f32 %v1807_v27, %v1806_v23 }
 0x142   : > { %v1275_v31 = vadd.f32 %v1197_v28, %v281_v25  ;;  %v1200_v32 = vadd.f32 %v1808_v29, %v1696_v26  ;;  %v287_v28 = vld [vmem:[#allocation2 + $0xb0] sm:$0xff] }
 0x143   : > { %v1341_v33 = vld [vmem:[#allocation2 + $0x70] sm:$0xff]  ;;  %v1697_v34 = vpop.f32.mrb[36].mxu0 }
 0x144   : > { %v1380_v35 = vadd.f32 %v2276_v1, %v1341_v33  ;;  %1308 = vst.msk [vmem:[#allocation2 + $0x80] sm:$0xff] %vm232_vm0, %v1275_v31  ;;  %v1276_v36 = vadd.f32 %v1200_v32, %v282_v30  ;;  %v1809_v37 = vpop.f32.mrb[36].mxu1  ;;  %v1698_v38 = vpop.f32.mrb[37].mxu0  ;;  %v288_v33 = vld [vmem:[#allocation2 + $0xb8] sm:$0xff] }
 0x145   : > { %v1342_v39 = vld [vmem:[#allocation2 + $0x78] sm:$0xff]  ;;  %v1699_v40 = vadd.f32 %v1698_v38, %v1697_v34  ;;  %v1810_v41 = vpop.f32.mrb[37].mxu1  ;;  %v1700_v42 = vpop.f32.mrb[38].mxu0 }
 0x146   : > { %1412 = vst.msk [vmem:[%s2281_s20 + $0x70] sm:$0xff] %vm232_vm0, %v1380_v35  ;;  %v1381_v43 = vadd.f32 %v2276_v1, %v1342_v39  ;;  %1309 = vst.msk [vmem:[#allocation2 + $0x88] sm:$0xff] %vm232_vm0, %v1276_v36  ;;  %v1811_v44 = vadd.f32 %v1810_v41, %v1809_v37  ;;  %v1812_v45 = vpop.f32.mrb[38].mxu1  ;;  %v1701_v46 = vpop.f32.mrb[39].mxu0 }
 0x147   : > { %v1702_v48 = vadd.f32 %v1701_v46, %v1700_v42  ;;  %v1813_v49 = vpop.f32.mrb[39].mxu1 }
 0x148   : > { %1413 = vst.msk [vmem:[%s2281_s20 + $0x78] sm:$0xff] %vm232_vm0, %v1381_v43  ;;  %v1205_v50 = vadd.f32 %v1811_v44, %v1699_v40  ;;  %v1814_v51 = vadd.f32 %v1813_v49, %v1812_v45 }
 0x14a   : > { %v1277_v53 = vadd.f32 %v1205_v50, %v283_v47  ;;  %v1208_v54 = vadd.f32 %v1814_v51, %v1702_v48  ;;  %v289_v50 = vld [vmem:[#allocation2 + $0xc0] sm:$0xff] }
 0x14b   : > { %v1343_v55 = vld [vmem:[#allocation2 + $0x80] sm:$0xff]  ;;  %v1703_v56 = vpop.f32.mrb[40].mxu0 }
 0x14c   : > { %v1382_v57 = vadd.f32 %v2276_v1, %v1343_v55  ;;  %1310 = vst.msk [vmem:[#allocation2 + $0x90] sm:$0xff] %vm232_vm0, %v1277_v53  ;;  %v1278_v58 = vadd.f32 %v1208_v54, %v284_v52  ;;  %v1815_v59 = vpop.f32.mrb[40].mxu1  ;;  %v1704_v60 = vpop.f32.mrb[41].mxu0  ;;  %v290_v55 = vld [vmem:[#allocation2 + $0xc8] sm:$0xff] }
 0x14d   : > { %v1344_v61 = vld [vmem:[#allocation2 + $0x88] sm:$0xff]  ;;  %v1705_v62 = vadd.f32 %v1704_v60, %v1703_v56  ;;  %v1816_v63 = vpop.f32.mrb[41].mxu1  ;;  %v1706_v0 = vpop.f32.mrb[42].mxu0 }
 0x14e   : > { %1414 = vst.msk [vmem:[%s2281_s20 + $0x80] sm:$0xff] %vm232_vm0, %v1382_v57  ;;  %v1383_v2 = vadd.f32 %v2276_v1, %v1344_v61  ;;  %1311 = vst.msk [vmem:[#allocation2 + $0x98] sm:$0xff] %vm232_vm0, %v1278_v58  ;;  %v1817_v3 = vadd.f32 %v1816_v63, %v1815_v59  ;;  %v1818_v4 = vpop.f32.mrb[42].mxu1  ;;  %v1707_v5 = vpop.f32.mrb[43].mxu0 }
 0x14f   : > { %v1708_v7 = vadd.f32 %v1707_v5, %v1706_v0  ;;  %v1819_v8 = vpop.f32.mrb[43].mxu1 }
 0x150   : > { %1415 = vst.msk [vmem:[%s2281_s20 + $0x88] sm:$0xff] %vm232_vm0, %v1383_v2  ;;  %v1213_v9 = vadd.f32 %v1817_v3, %v1705_v62  ;;  %v1820_v10 = vadd.f32 %v1819_v8, %v1818_v4 }
 0x152   : > { %v1279_v12 = vadd.f32 %v1213_v9, %v285_v6  ;;  %v1216_v13 = vadd.f32 %v1820_v10, %v1708_v7  ;;  %v291_v9 = vld [vmem:[#allocation2 + $0xd0] sm:$0xff] }
 0x153   : > { %v1345_v14 = vld [vmem:[#allocation2 + $0x90] sm:$0xff]  ;;  %v1709_v15 = vpop.f32.mrb[44].mxu0 }
 0x154   : > { %v1384_v16 = vadd.f32 %v2276_v1, %v1345_v14  ;;  %1312 = vst.msk [vmem:[#allocation2 + $0xa0] sm:$0xff] %vm232_vm0, %v1279_v12  ;;  %v1280_v17 = vadd.f32 %v1216_v13, %v286_v11  ;;  %v1821_v18 = vpop.f32.mrb[44].mxu1  ;;  %v1710_v19 = vpop.f32.mrb[45].mxu0  ;;  %v292_v14 = vld [vmem:[#allocation2 + $0xd8] sm:$0xff] }
 0x155   : > { %v1346_v20 = vld [vmem:[#allocation2 + $0x98] sm:$0xff]  ;;  %v1711_v21 = vadd.f32 %v1710_v19, %v1709_v15  ;;  %v1822_v22 = vpop.f32.mrb[45].mxu1  ;;  %v1712_v23 = vpop.f32.mrb[46].mxu0 }
 0x156   : > { %1416 = vst.msk [vmem:[%s2281_s20 + $0x90] sm:$0xff] %vm232_vm0, %v1384_v16  ;;  %v1385_v24 = vadd.f32 %v2276_v1, %v1346_v20  ;;  %1313 = vst.msk [vmem:[#allocation2 + $0xa8] sm:$0xff] %vm232_vm0, %v1280_v17  ;;  %v1823_v25 = vadd.f32 %v1822_v22, %v1821_v18  ;;  %v1824_v26 = vpop.f32.mrb[46].mxu1  ;;  %v1713_v27 = vpop.f32.mrb[47].mxu0 }
 0x157   : > { %v1714_v29 = vadd.f32 %v1713_v27, %v1712_v23  ;;  %v1825_v30 = vpop.f32.mrb[47].mxu1 }
 0x158   : > { %1417 = vst.msk [vmem:[%s2281_s20 + $0x98] sm:$0xff] %vm232_vm0, %v1385_v24  ;;  %v1221_v31 = vadd.f32 %v1823_v25, %v1711_v21  ;;  %v1826_v32 = vadd.f32 %v1825_v30, %v1824_v26 }
 0x15a   : > { %v1281_v34 = vadd.f32 %v1221_v31, %v287_v28  ;;  %v1224_v35 = vadd.f32 %v1826_v32, %v1714_v29  ;;  %v293_v31 = vld [vmem:[#allocation2 + $0xe0] sm:$0xff] }
 0x15b   : > { %v1347_v36 = vld [vmem:[#allocation2 + $0xa0] sm:$0xff]  ;;  %v1715_v37 = vpop.f32.mrb[48].mxu0 }
 0x15c   : > { %v1386_v38 = vadd.f32 %v2276_v1, %v1347_v36  ;;  %1314 = vst.msk [vmem:[#allocation2 + $0xb0] sm:$0xff] %vm232_vm0, %v1281_v34  ;;  %v1282_v39 = vadd.f32 %v1224_v35, %v288_v33  ;;  %v1827_v40 = vpop.f32.mrb[48].mxu1  ;;  %v1716_v41 = vpop.f32.mrb[49].mxu0  ;;  %v294_v36 = vld [vmem:[#allocation2 + $0xe8] sm:$0xff] }
 0x15d   : > { %v1348_v42 = vld [vmem:[#allocation2 + $0xa8] sm:$0xff]  ;;  %v1717_v43 = vadd.f32 %v1716_v41, %v1715_v37  ;;  %v1828_v44 = vpop.f32.mrb[49].mxu1  ;;  %v1718_v45 = vpop.f32.mrb[50].mxu0 }
 0x15e   : > { %1418 = vst.msk [vmem:[%s2281_s20 + $0xa0] sm:$0xff] %vm232_vm0, %v1386_v38  ;;  %v1387_v46 = vadd.f32 %v2276_v1, %v1348_v42  ;;  %1315 = vst.msk [vmem:[#allocation2 + $0xb8] sm:$0xff] %vm232_vm0, %v1282_v39  ;;  %v1829_v47 = vadd.f32 %v1828_v44, %v1827_v40  ;;  %v1830_v48 = vpop.f32.mrb[50].mxu1  ;;  %v1719_v49 = vpop.f32.mrb[51].mxu0 }
 0x15f   : > { %v1720_v51 = vadd.f32 %v1719_v49, %v1718_v45  ;;  %v1831_v52 = vpop.f32.mrb[51].mxu1 }
 0x160   : > { %1419 = vst.msk [vmem:[%s2281_s20 + $0xa8] sm:$0xff] %vm232_vm0, %v1387_v46  ;;  %v1229_v53 = vadd.f32 %v1829_v47, %v1717_v43  ;;  %v1832_v54 = vadd.f32 %v1831_v52, %v1830_v48 }
 0x162   : > { %v1283_v56 = vadd.f32 %v1229_v53, %v289_v50  ;;  %v1232_v57 = vadd.f32 %v1832_v54, %v1720_v51  ;;  %v295_v53 = vld [vmem:[#allocation2 + $0xf0] sm:$0xff] }
 0x163   : > { %v1349_v58 = vld [vmem:[#allocation2 + $0xb0] sm:$0xff]  ;;  %v1721_v59 = vpop.f32.mrb[52].mxu0 }
 0x164   : > { %v1388_v60 = vadd.f32 %v2276_v1, %v1349_v58  ;;  %1316 = vst.msk [vmem:[#allocation2 + $0xc0] sm:$0xff] %vm232_vm0, %v1283_v56  ;;  %v1284_v61 = vadd.f32 %v1232_v57, %v290_v55  ;;  %v1833_v62 = vpop.f32.mrb[52].mxu1  ;;  %v1722_v63 = vpop.f32.mrb[53].mxu0  ;;  %v296_v58 = vld [vmem:[#allocation2 + $0xf8] sm:$0xff] }
 0x165   : > { %v1350_v0 = vld [vmem:[#allocation2 + $0xb8] sm:$0xff]  ;;  %v1723_v2 = vadd.f32 %v1722_v63, %v1721_v59  ;;  %v1834_v3 = vpop.f32.mrb[53].mxu1  ;;  %v1724_v4 = vpop.f32.mrb[54].mxu0 }
 0x166   : > { %1420 = vst.msk [vmem:[%s2281_s20 + $0xb0] sm:$0xff] %vm232_vm0, %v1388_v60  ;;  %v1389_v5 = vadd.f32 %v2276_v1, %v1350_v0  ;;  %1317 = vst.msk [vmem:[#allocation2 + $0xc8] sm:$0xff] %vm232_vm0, %v1284_v61  ;;  %v1835_v6 = vadd.f32 %v1834_v3, %v1833_v62  ;;  %v1836_v7 = vpop.f32.mrb[54].mxu1  ;;  %v1725_v8 = vpop.f32.mrb[55].mxu0 }
 0x167   : > { %v1726_v10 = vadd.f32 %v1725_v8, %v1724_v4  ;;  %v1837_v11 = vpop.f32.mrb[55].mxu1 }
 0x168   : > { %1421 = vst.msk [vmem:[%s2281_s20 + $0xb8] sm:$0xff] %vm232_vm0, %v1389_v5  ;;  %v1237_v12 = vadd.f32 %v1835_v6, %v1723_v2  ;;  %v1838_v13 = vadd.f32 %v1837_v11, %v1836_v7 }
 0x16a   : > { %v1285_v15 = vadd.f32 %v1237_v12, %v291_v9  ;;  %v1240_v16 = vadd.f32 %v1838_v13, %v1726_v10 }
 0x16b   : > { %v1351_v17 = vld [vmem:[#allocation2 + $0xc0] sm:$0xff]  ;;  %v1727_v18 = vpop.f32.mrb[56].mxu0 }
 0x16c   : > { %v1390_v19 = vadd.f32 %v2276_v1, %v1351_v17  ;;  %1318 = vst.msk [vmem:[#allocation2 + $0xd0] sm:$0xff] %vm232_vm0, %v1285_v15  ;;  %v1286_v20 = vadd.f32 %v1240_v16, %v292_v14  ;;  %v1839_v21 = vpop.f32.mrb[56].mxu1  ;;  %v1728_v22 = vpop.f32.mrb[57].mxu0 }
 0x16d   : > { %v1352_v23 = vld [vmem:[#allocation2 + $0xc8] sm:$0xff]  ;;  %v1729_v24 = vadd.f32 %v1728_v22, %v1727_v18  ;;  %v1840_v25 = vpop.f32.mrb[57].mxu1  ;;  %v1730_v26 = vpop.f32.mrb[58].mxu0 }
 0x16e   : > { %1422 = vst.msk [vmem:[%s2281_s20 + $0xc0] sm:$0xff] %vm232_vm0, %v1390_v19  ;;  %v1391_v27 = vadd.f32 %v2276_v1, %v1352_v23  ;;  %1319 = vst.msk [vmem:[#allocation2 + $0xd8] sm:$0xff] %vm232_vm0, %v1286_v20  ;;  %v1841_v28 = vadd.f32 %v1840_v25, %v1839_v21  ;;  %v1842_v29 = vpop.f32.mrb[58].mxu1  ;;  %v1731_v30 = vpop.f32.mrb[59].mxu0 }
 0x16f   : > { %v1732_v32 = vadd.f32 %v1731_v30, %v1730_v26  ;;  %v1843_v33 = vpop.f32.mrb[59].mxu1 }
 0x170   : > { %1423 = vst.msk [vmem:[%s2281_s20 + $0xc8] sm:$0xff] %vm232_vm0, %v1391_v27  ;;  %v1245_v34 = vadd.f32 %v1841_v28, %v1729_v24  ;;  %v1844_v35 = vadd.f32 %v1843_v33, %v1842_v29 }
 0x172   : > { %v1287_v37 = vadd.f32 %v1245_v34, %v293_v31  ;;  %v1248_v38 = vadd.f32 %v1844_v35, %v1732_v32 }
 0x173   : > { %v1353_v39 = vld [vmem:[#allocation2 + $0xd0] sm:$0xff]  ;;  %v1733_v40 = vpop.f32.mrb[60].mxu0 }
 0x174   : > { %v1392_v41 = vadd.f32 %v2276_v1, %v1353_v39  ;;  %1320 = vst.msk [vmem:[#allocation2 + $0xe0] sm:$0xff] %vm232_vm0, %v1287_v37  ;;  %v1288_v42 = vadd.f32 %v1248_v38, %v294_v36  ;;  %v1845_v43 = vpop.f32.mrb[60].mxu1  ;;  %v1734_v44 = vpop.f32.mrb[61].mxu0 }
 0x175   : > { %v1354_v45 = vld [vmem:[#allocation2 + $0xd8] sm:$0xff]  ;;  %v1735_v46 = vadd.f32 %v1734_v44, %v1733_v40  ;;  %v1846_v47 = vpop.f32.mrb[61].mxu1  ;;  %v1736_v48 = vpop.f32.mrb[62].mxu0 }
 0x176   : > { %1424 = vst.msk [vmem:[%s2281_s20 + $0xd0] sm:$0xff] %vm232_vm0, %v1392_v41  ;;  %v1393_v49 = vadd.f32 %v2276_v1, %v1354_v45  ;;  %1321 = vst.msk [vmem:[#allocation2 + $0xe8] sm:$0xff] %vm232_vm0, %v1288_v42  ;;  %v1847_v50 = vadd.f32 %v1846_v47, %v1845_v43  ;;  %v1848_v51 = vpop.f32.mrb[62].mxu1  ;;  %v1737_v52 = vpop.f32.mrb[63].mxu0 }
 0x177   : > { %v1738_v54 = vadd.f32 %v1737_v52, %v1736_v48  ;;  %v1849_v55 = vpop.f32.mrb[63].mxu1 }
 0x178   : > { %1425 = vst.msk [vmem:[%s2281_s20 + $0xd8] sm:$0xff] %vm232_vm0, %v1393_v49  ;;  %v1253_v56 = vadd.f32 %v1847_v50, %v1735_v46  ;;  %v1850_v57 = vadd.f32 %v1849_v55, %v1848_v51 }
 0x17a   : > { %v1289_v59 = vadd.f32 %v1253_v56, %v295_v53  ;;  %v1256_v60 = vadd.f32 %v1850_v57, %v1738_v54 }
 0x17b   : > { %v1355_v61 = vld [vmem:[#allocation2 + $0xe0] sm:$0xff] }
 0x17c   : > { %v1394_v62 = vadd.f32 %v2276_v1, %v1355_v61  ;;  %1322 = vst.msk [vmem:[#allocation2 + $0xf0] sm:$0xff] %vm232_vm0, %v1289_v59  ;;  %v1290_v63 = vadd.f32 %v1256_v60, %v296_v58 }
 0x17d   : > { %v1356_v0 = vld [vmem:[#allocation2 + $0xe8] sm:$0xff] }
 0x17e   : > { %1426 = vst.msk [vmem:[%s2281_s20 + $0xe0] sm:$0xff] %vm232_vm0, %v1394_v62  ;;  %v1395_v2 = vadd.f32 %v2276_v1, %v1356_v0  ;;  %1323 = vst.msk [vmem:[#allocation2 + $0xf8] sm:$0xff] %vm232_vm0, %v1290_v63 }
 0x180   : > { %1427 = vst.msk [vmem:[%s2281_s20 + $0xe8] sm:$0xff] %vm232_vm0, %v1395_v2 }
 0x183   : > { %v1357_v3 = vld [vmem:[#allocation2 + $0xf0] sm:$0xff] }
 0x184   : > { %v1396_v4 = vadd.f32 %v2276_v1, %v1357_v3 }
 0x185   : > { %v1358_v5 = vld [vmem:[#allocation2 + $0xf8] sm:$0xff] }
 0x186   : > { %1428 = vst.msk [vmem:[%s2281_s20 + $0xf0] sm:$0xff] %vm232_vm0, %v1396_v4  ;;  %v1397_v6 = vadd.f32 %v2276_v1, %v1358_v5 }
 0x188   : > { %1429 = vst.msk [vmem:[%s2281_s20 + $0xf8] sm:$0xff] %vm232_vm0, %v1397_v6 }
 0x189 PF: > { %s13_s14 = sadd.s32 1, %s2026_s14   ;;  %s2422_s12 = smov %s2022_s13 }
 0x18a   : > { %p10_p5 = scmp.ge.s32.totalorder %s13_s14, 4   ;;  %s2423_s13 = smov %s2425_s15 }
 0x18c   :  { %12 = sbr.rel (!%p10_p5) target bundleno = 2 (0x2), region = 73 }

</bundles_post_ra>
